<compile_context>
chip_gen: v7x
topology: tpu7x:2x2x1
jax: 0.10.0
libtpu: 0.0.40
codegen_flags: <defaults>
</compile_context>

<pallas_src>
import functools

import jax
import jax.numpy as jnp
from jax.experimental import pallas as pl
from jax.experimental.pallas import tpu as pltpu


def _fill_im2col(col_ref, slab, *, tr, wo, stride, cin):
    """Stage the 9 shifted conv windows into one contiguous (tr*wo, 9*cin) VMEM buffer."""
    for kh in range(3):
        for kw in range(3):
            win = slab[kh:kh + (tr - 1) * stride + 1:stride,
                       kw:kw + (wo - 1) * stride + 1:stride, :]
            j = kh * 3 + kw
            col_ref[:, j * cin:(j + 1) * cin] = win.reshape(tr * wo, cin)


def _partial_stats(y):
    # single-pass BN statistics for this tile: per-channel [sum, sum-of-squares]
    return jnp.concatenate(
        [jnp.sum(y, axis=0, keepdims=True),
         jnp.sum(y * y, axis=0, keepdims=True)], axis=0)


def _conv1_kernel(x_ref, w1_ref, wsc_ref,
                  y1_ref, sc_ref, st1_ref, stsc_ref,
                  padx_ref, col_ref,
                  *, H, W, Cin, TR, Wo, stride, cpad):
    t = pl.program_id(1)

    # Build the zero-padded image in VMEM once per image (t == 0).  Only the 1-pixel
    # border strips are zero-filled; the interior is written exactly once.
    @pl.when(t == 0)
    def _():
        zr = jnp.zeros((1, W + 2, Cin), padx_ref.dtype)
        zc = jnp.zeros((H + 2, 1, Cin), padx_ref.dtype)
        padx_ref[0:1, :, :] = zr
        padx_ref[H + 1:H + 2, :, :] = zr
        padx_ref[:, 0:1, :] = zc
        padx_ref[:, W + 1:W + 2, :] = zc
        padx_ref[1:H + 1, 1:W + 1, :] = x_ref[0]

    in_rows = (TR - 1) * stride + 3
    row0 = pl.multiple_of(t * (TR * stride), TR * stride)
    slab = padx_ref[pl.ds(row0, in_rows), :, :]          # (in_rows, W+2, Cin) bf16

    # conv1: a single im2col matmul on the MXU (bf16 x bf16 -> f32 accumulation)
    _fill_im2col(col_ref, slab, tr=TR, wo=Wo, stride=stride, cin=Cin)
    y1 = jnp.dot(col_ref[...], w1_ref[...], preferred_element_type=jnp.float32)

    # shortcut (1x1 conv, stride s) reuses the same staged slab
    xs = slab[1:1 + (TR - 1) * stride + 1:stride,
              1:1 + (Wo - 1) * stride + 1:stride, :].reshape(TR * Wo, Cin)
    sc = jnp.dot(xs, wsc_ref[...], preferred_element_type=jnp.float32)

    st1_ref[...] = _partial_stats(y1).reshape(1, 1, 2, cpad)
    stsc_ref[...] = _partial_stats(sc).reshape(1, 1, 2, cpad)
    y1_ref[...] = y1.reshape(1, TR, Wo, cpad).astype(y1_ref.dtype)
    sc_ref[...] = sc.reshape(1, TR, Wo, cpad).astype(sc_ref.dtype)


def _conv2_kernel(y1_ref, s1_ref, b1_ref, w2_ref,
                  y2_ref, st2_ref,
                  act_ref, col_ref,
                  *, Ho, Wo, C, TR, cpad):
    t = pl.program_id(1)

    # Apply BN1 (precomputed scale/shift) + ReLU to the whole image and stage it,
    # zero-padded, once per image.
    @pl.when(t == 0)
    def _():
        zr = jnp.zeros((1, Wo + 2, C), act_ref.dtype)
        zc = jnp.zeros((Ho + 2, 1, C), act_ref.dtype)
        act_ref[0:1, :, :] = zr
        act_ref[Ho + 1:Ho + 2, :, :] = zr
        act_ref[:, 0:1, :] = zc
        act_ref[:, Wo + 1:Wo + 2, :] = zc
        h = y1_ref[0].astype(jnp.float32)                 # (Ho, Wo, cpad)
        h = jnp.maximum(h * s1_ref[...] + b1_ref[...], 0.0)
        act_ref[1:Ho + 1, 1:Wo + 1, :] = h[:, :, :C].astype(act_ref.dtype)

    row0 = pl.multiple_of(t * TR, TR)
    slab = act_ref[pl.ds(row0, TR + 2), :, :]             # (TR+2, Wo+2, C) bf16

    _fill_im2col(col_ref, slab, tr=TR, wo=Wo, stride=1, cin=C)
    y2 = jnp.dot(col_ref[...], w2_ref[...], preferred_element_type=jnp.float32)

    st2_ref[...] = _partial_stats(y2).reshape(1, 1, 2, cpad)
    y2_ref[...] = y2.reshape(1, TR, Wo, cpad).astype(y2_ref.dtype)


def _bn_add_relu_kernel(y2_ref, sc_ref, s2_ref, b2_ref, ssc_ref, bsc_ref, out_ref):
    # pure lane-dense elementwise finalize: BN2 + BN(shortcut) + add + ReLU (f32 math)
    y2 = y2_ref[...].astype(jnp.float32)
    sc = sc_ref[...].astype(jnp.float32)
    out = (y2 * s2_ref[...] + b2_ref[...]) + (sc * ssc_ref[...] + bsc_ref[...])
    out_ref[...] = jnp.maximum(out, 0.0).astype(out_ref.dtype)


def _bn_affine(part_stats, gamma_p, beta_p, count, eps):
    """Finalize single-pass BN stats -> per-channel (scale, shift) in f32."""
    s = jnp.sum(part_stats, axis=(0, 1))                  # (2, cpad)
    mean = s[0] / count
    var = jnp.maximum(s[1] / count - mean * mean, 0.0)    # biased variance (training BN)
    scale = gamma_p * jax.lax.rsqrt(var + eps)
    shift = beta_p - mean * scale
    return scale.reshape(1, -1), shift.reshape(1, -1)


def coblock_pallas(x_nhwc, params, *, stride, eps=1e-5, block_rows=8):
    N, H, W, Cin = x_nhwc.shape
    Cout = params["w1"].shape[-1]
    Ho = (H + 2 - 3) // stride + 1
    Wo = (W + 2 - 3) // stride + 1
    cpad = ((Cout + 127) // 128) * 128                    # pad channels to the lane width
    TR = min(block_rows, Ho)
    assert Ho % TR == 0, "block_rows must divide the conv output height"
    T = Ho // TR
    has_proj = (stride != 1) or (Cin != Cout)
    f32, bf16 = jnp.float32, jnp.bfloat16

    def pad_c(a):
        return jnp.pad(a, [(0, 0)] * (a.ndim - 1) + [(0, cpad - a.shape[-1])])

    # bf16 activations / weights for the MXU (f32 accumulation); BN math stays f32.
    x_bf = x_nhwc.astype(bf16)
    w1p = pad_c(params["w1"].reshape(9 * Cin, Cout)).astype(bf16)       # (9*Cin, cpad)
    w2p = pad_c(params["w2"].reshape(9 * Cout, Cout)).astype(bf16)      # (9*Cout, cpad)
    wsc = params["wsc"] if has_proj else jnp.eye(Cin, Cout, dtype=f32)
    wscp = pad_c(wsc).astype(bf16)                                      # (Cin, cpad)

    grid = (N, T)
    seq_params = pltpu.CompilerParams(
        dimension_semantics=("parallel", "arbitrary"),
        vmem_limit_bytes=32 * 1024 * 1024)
    par_params = pltpu.CompilerParams(
        dimension_semantics=("parallel", "parallel"),
        vmem_limit_bytes=32 * 1024 * 1024)
    rows = N * Ho * Wo

    # ---- pass 1: conv1 + raw projection shortcut + partial BN statistics ----
    y1, sc, st1, stsc = pl.pallas_call(
        functools.partial(_conv1_kernel, H=H, W=W, Cin=Cin, TR=TR, Wo=Wo,
                          stride=stride, cpad=cpad),
        grid=grid,
        in_specs=[
            pl.BlockSpec((1, H, W, Cin), lambda n, t: (n, 0, 0, 0)),
            pl.BlockSpec((9 * Cin, cpad), lambda n, t: (0, 0)),
            pl.BlockSpec((Cin, cpad), lambda n, t: (0, 0)),
        ],
        out_specs=[
            pl.BlockSpec((1, TR, Wo, cpad), lambda n, t: (n, t, 0, 0)),
            pl.BlockSpec((1, TR, Wo, cpad), lambda n, t: (n, t, 0, 0)),
            pl.BlockSpec((1, 1, 2, cpad), lambda n, t: (n, t, 0, 0)),
            pl.BlockSpec((1, 1, 2, cpad), lambda n, t: (n, t, 0, 0)),
        ],
        out_shape=[
            jax.ShapeDtypeStruct((N, Ho, Wo, cpad), bf16),
            jax.ShapeDtypeStruct((N, Ho, Wo, cpad), bf16),
            jax.ShapeDtypeStruct((N, T, 2, cpad), f32),
            jax.ShapeDtypeStruct((N, T, 2, cpad), f32),
        ],
        scratch_shapes=[
            pltpu.VMEM((H + 2, W + 2, Cin), bf16),        # per-image padded input
            pltpu.VMEM((TR * Wo, 9 * Cin), bf16),         # staged im2col patches
        ],
        compiler_params=seq_params,
        cost_estimate=pl.CostEstimate(
            flops=2 * rows * (9 * Cin + Cin) * cpad,
            transcendentals=0,
            bytes_accessed=(x_bf.size + w1p.size + wscp.size) * 2
                           + 2 * rows * cpad * 2 + 2 * N * T * 2 * cpad * 4),
    )(x_bf, w1p, wscp)

    scale1, shift1 = _bn_affine(st1, pad_c(params["g1"]), pad_c(params["b1"]), rows, eps)

    # ---- pass 2: BN1 + ReLU + conv2 + partial BN2 statistics ----
    y2, st2 = pl.pallas_call(
        functools.partial(_conv2_kernel, Ho=Ho, Wo=Wo, C=Cout, TR=TR, cpad=cpad),
        grid=grid,
        in_specs=[
            pl.BlockSpec((1, Ho, Wo, cpad), lambda n, t: (n, 0, 0, 0)),
            pl.BlockSpec((1, cpad), lambda n, t: (0, 0)),
            pl.BlockSpec((1, cpad), lambda n, t: (0, 0)),
            pl.BlockSpec((9 * Cout, cpad), lambda n, t: (0, 0)),
        ],
        out_specs=[
            pl.BlockSpec((1, TR, Wo, cpad), lambda n, t: (n, t, 0, 0)),
            pl.BlockSpec((1, 1, 2, cpad), lambda n, t: (n, t, 0, 0)),
        ],
        out_shape=[
            jax.ShapeDtypeStruct((N, Ho, Wo, cpad), bf16),
            jax.ShapeDtypeStruct((N, T, 2, cpad), f32),
        ],
        scratch_shapes=[
            pltpu.VMEM((Ho + 2, Wo + 2, Cout), bf16),     # per-image padded activation
            pltpu.VMEM((TR * Wo, 9 * Cout), bf16),        # staged im2col patches
        ],
        compiler_params=seq_params,
        cost_estimate=pl.CostEstimate(
            flops=2 * rows * 9 * Cout * cpad,
            transcendentals=0,
            bytes_accessed=2 * rows * cpad * 2 + w2p.size * 2 + N * T * 2 * cpad * 4),
    )(y1, scale1, shift1, w2p)

    scale2, shift2 = _bn_affine(st2, pad_c(params["g2"]), pad_c(params["b2"]), rows, eps)
    if has_proj:
        scale_s, shift_s = _bn_affine(stsc, pad_c(params["gsc"]), pad_c(params["bsc"]),
                                      rows, eps)
    else:
        # identity shortcut: no BN on the skip path
        scale_s = pad_c(jnp.ones((Cout,), f32)).reshape(1, cpad)
        shift_s = jnp.zeros((1, cpad), f32)

    # ---- pass 3: BN2 + BN(shortcut) + add + ReLU ----
    out = pl.pallas_call(
        _bn_add_relu_kernel,
        grid=grid,
        in_specs=[
            pl.BlockSpec((1, TR, Wo, cpad), lambda n, t: (n, t, 0, 0)),
            pl.BlockSpec((1, TR, Wo, cpad), lambda n, t: (n, t, 0, 0)),
            pl.BlockSpec((1, cpad), lambda n, t: (0, 0)),
            pl.BlockSpec((1, cpad), lambda n, t: (0, 0)),
            pl.BlockSpec((1, cpad), lambda n, t: (0, 0)),
            pl.BlockSpec((1, cpad), lambda n, t: (0, 0)),
        ],
        out_specs=pl.BlockSpec((1, TR, Wo, cpad), lambda n, t: (n, t, 0, 0)),
        out_shape=jax.ShapeDtypeStruct((N, Ho, Wo, cpad), f32),
        compiler_params=par_params,
        cost_estimate=pl.CostEstimate(
            flops=6 * rows * cpad,
            transcendentals=0,
            bytes_accessed=2 * rows * cpad * 2 + rows * cpad * 4),
    )(y2, sc, scale2, shift2, scale_s, shift_s)

    return out[..., :Cout]   # strip channel padding; NHWC layout


def coblock_reference(x_nchw, params, *, stride, eps=1e-5):
    """Pure-JAX NCHW reference mirroring the PyTorch forward (training-mode BN)."""
    def conv(x, w_hwio, s, pad):
        w_oihw = jnp.transpose(w_hwio, (3, 2, 0, 1))
        return jax.lax.conv_general_dilated(
            x, w_oihw, (s, s), ((pad, pad), (pad, pad)),
            dimension_numbers=("NCHW", "OIHW", "NCHW"))

    def bn(y, g, b):
        mean = jnp.mean(y, axis=(0, 2, 3), keepdims=True)
        var = jnp.mean((y - mean) ** 2, axis=(0, 2, 3), keepdims=True)
        return ((y - mean) * jax.lax.rsqrt(var + eps) * g[None, :, None, None]
                + b[None, :, None, None])

    out = jax.nn.relu(bn(conv(x_nchw, params["w1"], stride, 1), params["g1"], params["b1"]))
    out = bn(conv(out, params["w2"], 1, 1), params["g2"], params["b2"])
    Cin, Cout = x_nchw.shape[1], params["w1"].shape[-1]
    if stride != 1 or Cin != Cout:
        sc = bn(conv(x_nchw, params["wsc"][None, None], stride, 0),
                params["gsc"], params["bsc"])
    else:
        sc = x_nchw
    return jax.nn.relu(out + sc)


if __name__ == "__main__":
    N, Cin, H, W = 2, 4, 16, 16      # NCHW, like the PyTorch module input
    Cout, stride = 8, 1              # in_planes != planes -> projection shortcut

    key = jax.random.PRNGKey(0)
    keys = jax.random.split(key, 8)
    x_nchw = jax.random.normal(keys[0], (N, Cin, H, W), jnp.float32)

    params = {
        "w1": 0.1 * jax.random.normal(keys[1], (3, 3, Cin, Cout), jnp.float32),
        "g1": 1.0 + 0.1 * jax.random.normal(keys[2], (Cout,), jnp.float32),
        "b1": 0.1 * jax.random.normal(keys[3], (Cout,), jnp.float32),
        "w2": 0.1 * jax.random.normal(keys[4], (3, 3, Cout, Cout), jnp.float32),
        "g2": 1.0 + 0.1 * jax.random.normal(keys[5], (Cout,), jnp.float32),
        "b2": 0.1 * jax.random.normal(keys[6], (Cout,), jnp.float32),
        "wsc": 0.1 * jax.random.normal(keys[7], (Cin, Cout), jnp.float32),
        "gsc": jnp.ones((Cout,), jnp.float32),
        "bsc": jnp.zeros((Cout,), jnp.float32),
    }

    # NCHW -> NHWC for the kernel
    x_nhwc = jnp.transpose(x_nchw, (0, 2, 3, 1))

    fwd = jax.jit(functools.partial(coblock_pallas, stride=stride))
    out_nhwc = jax.block_until_ready(fwd(x_nhwc, params))

    # compare against pure-JAX NCHW reference (f32); kernel matmuls are bf16 -> loose tol
    out_nchw = jnp.transpose(out_nhwc, (0, 3, 1, 2))
    ref_nchw = coblock_reference(x_nchw, params, stride=stride)
    assert out_nchw.shape == ref_nchw.shape
    max_err = float(jnp.max(jnp.abs(out_nchw - ref_nchw)))
    assert jnp.allclose(out_nchw, ref_nchw, rtol=7.5e-2, atol=7.5e-2), max_err

    print("KERNEL_OK")
</pallas_src>

<mosaic_0001>
module attributes {stable_mosaic.version = 11 : i64} {
  func.func @_conv1_kernel(%arg0: i32, %arg1: i32, %arg2: memref<1x16x16x4xbf16, #tpu.memory_space<vmem>>, %arg3: memref<36x128xbf16, #tpu.memory_space<vmem>>, %arg4: memref<4x128xbf16, #tpu.memory_space<vmem>>, %arg5: memref<1x8x16x128xbf16, #tpu.memory_space<vmem>>, %arg6: memref<1x8x16x128xbf16, #tpu.memory_space<vmem>>, %arg7: memref<1x1x2x128xf32, #tpu.memory_space<vmem>>, %arg8: memref<1x1x2x128xf32, #tpu.memory_space<vmem>>, %arg9: memref<18x18x4xbf16, #tpu.memory_space<vmem>>, %arg10: memref<128x36xbf16, #tpu.memory_space<vmem>>) attributes {dimension_semantics = [#tpu.dimension_semantics<parallel>, #tpu.dimension_semantics<arbitrary>], iteration_bounds = array<i64: 2, 2>, scalar_prefetch = 0 : i64, scratch_operands = 2 : i64, tpu.core_type = #tpu.core_type<tc>, window_params = [{transform_indices = @transform_0, window_bounds = array<i64: 1, 16, 16, 4>}, {pipeline_mode = #tpu.pipeline_mode<synchronous>, transform_indices = @transform_1, window_bounds = array<i64: 36, 128>}, {pipeline_mode = #tpu.pipeline_mode<synchronous>, transform_indices = @transform_2, window_bounds = array<i64: 4, 128>}, {transform_indices = @transform_3, window_bounds = array<i64: 1, 8, 16, 128>}, {transform_indices = @transform_4, window_bounds = array<i64: 1, 8, 16, 128>}, {transform_indices = @transform_5, window_bounds = array<i64: 1, 1, 2, 128>}, {transform_indices = @transform_6, window_bounds = array<i64: 1, 1, 2, 128>}]} {
    %c0_i32 = arith.constant 0 : i32
    %0 = arith.cmpi eq, %arg1, %c0_i32 : i32
    %1 = arith.extui %0 : i1 to i32
    %c0_i32_0 = arith.constant 0 : i32
    %2 = arith.cmpi ne, %1, %c0_i32_0 : i32
    scf.if %2 {
      %cst_39 = arith.constant 0.000000e+00 : bf16
      %63 = vector.broadcast %cst_39 : bf16 to vector<1x18x4xbf16>
      %cst_40 = arith.constant 0.000000e+00 : bf16
      %64 = vector.broadcast %cst_40 : bf16 to vector<18x1x4xbf16>
      %c0_41 = arith.constant 0 : index
      %c0_42 = arith.constant 0 : index
      %c0_43 = arith.constant 0 : index
      %65 = vector.load %arg9[%c0_41, %c0_42, %c0_43] : memref<18x18x4xbf16, #tpu.memory_space<vmem>>, vector<1x18x4xbf16>
      tpu.vector_store %arg9[%c0_41, %c0_42, %c0_43], %63 {strides = array<i32>} : memref<18x18x4xbf16, #tpu.memory_space<vmem>>, vector<1x18x4xbf16>,
      %c17 = arith.constant 17 : index
      %c0_44 = arith.constant 0 : index
      %c0_45 = arith.constant 0 : index
      %66 = vector.load %arg9[%c17, %c0_44, %c0_45] : memref<18x18x4xbf16, #tpu.memory_space<vmem>>, vector<1x18x4xbf16>
      tpu.vector_store %arg9[%c17, %c0_44, %c0_45], %63 {strides = array<i32>} : memref<18x18x4xbf16, #tpu.memory_space<vmem>>, vector<1x18x4xbf16>,
      %c0_46 = arith.constant 0 : index
      %c0_47 = arith.constant 0 : index
      %c0_48 = arith.constant 0 : index
      %67 = vector.load %arg9[%c0_46, %c0_47, %c0_48] : memref<18x18x4xbf16, #tpu.memory_space<vmem>>, vector<18x1x4xbf16>
      tpu.vector_store %arg9[%c0_46, %c0_47, %c0_48], %64 {strides = array<i32>} : memref<18x18x4xbf16, #tpu.memory_space<vmem>>, vector<18x1x4xbf16>,
      %c0_49 = arith.constant 0 : index
      %c17_50 = arith.constant 17 : index
      %c0_51 = arith.constant 0 : index
      %68 = vector.load %arg9[%c0_49, %c17_50, %c0_51] : memref<18x18x4xbf16, #tpu.memory_space<vmem>>, vector<18x1x4xbf16>
      tpu.vector_store %arg9[%c0_49, %c17_50, %c0_51], %64 {strides = array<i32>} : memref<18x18x4xbf16, #tpu.memory_space<vmem>>, vector<18x1x4xbf16>,
      %c0_52 = arith.constant 0 : index
      %c0_53 = arith.constant 0 : index
      %c0_54 = arith.constant 0 : index
      %c0_55 = arith.constant 0 : index
      %69 = vector.load %arg2[%c0_52, %c0_53, %c0_54, %c0_55] : memref<1x16x16x4xbf16, #tpu.memory_space<vmem>>, vector<1x16x16x4xbf16>
      %70 = vector.shape_cast %69 : vector<1x16x16x4xbf16> to vector<16x16x4xbf16>
      %c1 = arith.constant 1 : index
      %c1_56 = arith.constant 1 : index
      %c0_57 = arith.constant 0 : index
      %71 = vector.load %arg9[%c1, %c1_56, %c0_57] : memref<18x18x4xbf16, #tpu.memory_space<vmem>>, vector<16x16x4xbf16>
      tpu.vector_store %arg9[%c1, %c1_56, %c0_57], %70 {strides = array<i32>} : memref<18x18x4xbf16, #tpu.memory_space<vmem>>, vector<16x16x4xbf16>,
    } else {
    }
    %c8_i32 = arith.constant 8 : i32
    %3 = arith.muli %arg1, %c8_i32 : i32
    %4 = tpu.assume_multiple %3, 8 : i32
    %5 = arith.index_cast %4 : i32 to index
    %c0 = arith.constant 0 : index
    %c0_1 = arith.constant 0 : index
    %6 = vector.load %arg9[%5, %c0, %c0_1] : memref<18x18x4xbf16, #tpu.memory_space<vmem>>, vector<10x18x4xbf16>
    %7 = vector.extract_strided_slice %6 {offsets = [0, 0, 0], sizes = [8, 16, 4], strides = [1, 1, 1]} : vector<10x18x4xbf16> to vector<8x16x4xbf16>
    %8 = vector.shape_cast %7 : vector<8x16x4xbf16> to vector<128x4xbf16>
    %c0_2 = arith.constant 0 : index
    %c0_3 = arith.constant 0 : index
    %9 = vector.load %arg10[%c0_2, %c0_3] : memref<128x36xbf16, #tpu.memory_space<vmem>>, vector<128x4xbf16>
    tpu.vector_store %arg10[%c0_2, %c0_3], %8 {strides = array<i32>} : memref<128x36xbf16, #tpu.memory_space<vmem>>, vector<128x4xbf16>,
    %10 = vector.extract_strided_slice %6 {offsets = [0, 1, 0], sizes = [8, 16, 4], strides = [1, 1, 1]} : vector<10x18x4xbf16> to vector<8x16x4xbf16>
    %11 = vector.shape_cast %10 : vector<8x16x4xbf16> to vector<128x4xbf16>
    %c0_4 = arith.constant 0 : index
    %c4 = arith.constant 4 : index
    %12 = vector.load %arg10[%c0_4, %c4] : memref<128x36xbf16, #tpu.memory_space<vmem>>, vector<128x4xbf16>
    tpu.vector_store %arg10[%c0_4, %c4], %11 {strides = array<i32>} : memref<128x36xbf16, #tpu.memory_space<vmem>>, vector<128x4xbf16>,
    %13 = vector.extract_strided_slice %6 {offsets = [0, 2, 0], sizes = [8, 16, 4], strides = [1, 1, 1]} : vector<10x18x4xbf16> to vector<8x16x4xbf16>
    %14 = vector.shape_cast %13 : vector<8x16x4xbf16> to vector<128x4xbf16>
    %c0_5 = arith.constant 0 : index
    %c8 = arith.constant 8 : index
    %15 = vector.load %arg10[%c0_5, %c8] : memref<128x36xbf16, #tpu.memory_space<vmem>>, vector<128x4xbf16>
    tpu.vector_store %arg10[%c0_5, %c8], %14 {strides = array<i32>} : memref<128x36xbf16, #tpu.memory_space<vmem>>, vector<128x4xbf16>,
    %16 = vector.extract_strided_slice %6 {offsets = [1, 0, 0], sizes = [8, 16, 4], strides = [1, 1, 1]} : vector<10x18x4xbf16> to vector<8x16x4xbf16>
    %17 = vector.shape_cast %16 : vector<8x16x4xbf16> to vector<128x4xbf16>
    %c0_6 = arith.constant 0 : index
    %c12 = arith.constant 12 : index
    %18 = vector.load %arg10[%c0_6, %c12] : memref<128x36xbf16, #tpu.memory_space<vmem>>, vector<128x4xbf16>
    tpu.vector_store %arg10[%c0_6, %c12], %17 {strides = array<i32>} : memref<128x36xbf16, #tpu.memory_space<vmem>>, vector<128x4xbf16>,
    %19 = vector.extract_strided_slice %6 {offsets = [1, 1, 0], sizes = [8, 16, 4], strides = [1, 1, 1]} : vector<10x18x4xbf16> to vector<8x16x4xbf16>
    %20 = vector.shape_cast %19 : vector<8x16x4xbf16> to vector<128x4xbf16>
    %c0_7 = arith.constant 0 : index
    %c16 = arith.constant 16 : index
    %21 = vector.load %arg10[%c0_7, %c16] : memref<128x36xbf16, #tpu.memory_space<vmem>>, vector<128x4xbf16>
    tpu.vector_store %arg10[%c0_7, %c16], %20 {strides = array<i32>} : memref<128x36xbf16, #tpu.memory_space<vmem>>, vector<128x4xbf16>,
    %22 = vector.extract_strided_slice %6 {offsets = [1, 2, 0], sizes = [8, 16, 4], strides = [1, 1, 1]} : vector<10x18x4xbf16> to vector<8x16x4xbf16>
    %23 = vector.shape_cast %22 : vector<8x16x4xbf16> to vector<128x4xbf16>
    %c0_8 = arith.constant 0 : index
    %c20 = arith.constant 20 : index
    %24 = vector.load %arg10[%c0_8, %c20] : memref<128x36xbf16, #tpu.memory_space<vmem>>, vector<128x4xbf16>
    tpu.vector_store %arg10[%c0_8, %c20], %23 {strides = array<i32>} : memref<128x36xbf16, #tpu.memory_space<vmem>>, vector<128x4xbf16>,
    %25 = vector.extract_strided_slice %6 {offsets = [2, 0, 0], sizes = [8, 16, 4], strides = [1, 1, 1]} : vector<10x18x4xbf16> to vector<8x16x4xbf16>
    %26 = vector.shape_cast %25 : vector<8x16x4xbf16> to vector<128x4xbf16>
    %c0_9 = arith.constant 0 : index
    %c24 = arith.constant 24 : index
    %27 = vector.load %arg10[%c0_9, %c24] : memref<128x36xbf16, #tpu.memory_space<vmem>>, vector<128x4xbf16>
    tpu.vector_store %arg10[%c0_9, %c24], %26 {strides = array<i32>} : memref<128x36xbf16, #tpu.memory_space<vmem>>, vector<128x4xbf16>,
    %28 = vector.extract_strided_slice %6 {offsets = [2, 1, 0], sizes = [8, 16, 4], strides = [1, 1, 1]} : vector<10x18x4xbf16> to vector<8x16x4xbf16>
    %29 = vector.shape_cast %28 : vector<8x16x4xbf16> to vector<128x4xbf16>
    %c0_10 = arith.constant 0 : index
    %c28 = arith.constant 28 : index
    %30 = vector.load %arg10[%c0_10, %c28] : memref<128x36xbf16, #tpu.memory_space<vmem>>, vector<128x4xbf16>
    tpu.vector_store %arg10[%c0_10, %c28], %29 {strides = array<i32>} : memref<128x36xbf16, #tpu.memory_space<vmem>>, vector<128x4xbf16>,
    %31 = vector.extract_strided_slice %6 {offsets = [2, 2, 0], sizes = [8, 16, 4], strides = [1, 1, 1]} : vector<10x18x4xbf16> to vector<8x16x4xbf16>
    %32 = vector.shape_cast %31 : vector<8x16x4xbf16> to vector<128x4xbf16>
    %c0_11 = arith.constant 0 : index
    %c32 = arith.constant 32 : index
    %33 = vector.load %arg10[%c0_11, %c32] : memref<128x36xbf16, #tpu.memory_space<vmem>>, vector<128x4xbf16>
    tpu.vector_store %arg10[%c0_11, %c32], %32 {strides = array<i32>} : memref<128x36xbf16, #tpu.memory_space<vmem>>, vector<128x4xbf16>,
    %c0_12 = arith.constant 0 : index
    %c0_13 = arith.constant 0 : index
    %34 = vector.load %arg10[%c0_12, %c0_13] : memref<128x36xbf16, #tpu.memory_space<vmem>>, vector<128x36xbf16>
    %c0_14 = arith.constant 0 : index
    %c0_15 = arith.constant 0 : index
    %35 = vector.load %arg3[%c0_14, %c0_15] : memref<36x128xbf16, #tpu.memory_space<vmem>>, vector<36x128xbf16>
    %cst = arith.constant dense<0.000000e+00> : vector<128x128xf32>
    %36 = tpu.matmul %34, %35, %cst {dimension_numbers = #tpu.dot_dimension_numbers<[1], [0], [0], [1], [0, 0, 1, 1], [], []>} : vector<128x36xbf16>, vector<36x128xbf16>, vector<128x128xf32> -> vector<128x128xf32>
    %37 = vector.extract_strided_slice %6 {offsets = [1, 1, 0], sizes = [8, 16, 4], strides = [1, 1, 1]} : vector<10x18x4xbf16> to vector<8x16x4xbf16>
    %38 = vector.shape_cast %37 : vector<8x16x4xbf16> to vector<128x4xbf16>
    %c0_16 = arith.constant 0 : index
    %c0_17 = arith.constant 0 : index
    %39 = vector.load %arg4[%c0_16, %c0_17] : memref<4x128xbf16, #tpu.memory_space<vmem>>, vector<4x128xbf16>
    %cst_18 = arith.constant dense<0.000000e+00> : vector<128x128xf32>
    %40 = tpu.matmul %38, %39, %cst_18 {dimension_numbers = #tpu.dot_dimension_numbers<[1], [0], [0], [1], [0, 0, 1, 1], [], []>} : vector<128x4xbf16>, vector<4x128xbf16>, vector<128x128xf32> -> vector<128x128xf32>
    %cst_19 = arith.constant dense<0.000000e+00> : vector<128xf32>
    %41 = vector.multi_reduction <add>, %36, %cst_19 [0] : vector<128x128xf32> to vector<128xf32>
    %42 = vector.shape_cast %41 : vector<128xf32> to vector<1x128xf32>
    %43 = arith.mulf %36, %36 : vector<128x128xf32>
    %cst_20 = arith.constant dense<0.000000e+00> : vector<128xf32>
    %44 = vector.multi_reduction <add>, %43, %cst_20 [0] : vector<128x128xf32> to vector<128xf32>
    %45 = vector.shape_cast %44 : vector<128xf32> to vector<1x128xf32>
    %46 = tpu.concatenate %42, %45 in 0 : vector<1x128xf32>, vector<1x128xf32> -> vector<2x128xf32>
    %47 = vector.shape_cast %46 : vector<2x128xf32> to vector<1x1x2x128xf32>
    %c0_21 = arith.constant 0 : index
    %c0_22 = arith.constant 0 : index
    %c0_23 = arith.constant 0 : index
    %c0_24 = arith.constant 0 : index
    %48 = vector.load %arg7[%c0_21, %c0_22, %c0_23, %c0_24] : memref<1x1x2x128xf32, #tpu.memory_space<vmem>>, vector<1x1x2x128xf32>
    tpu.vector_store %arg7[%c0_21, %c0_22, %c0_23, %c0_24], %47 {strides = array<i32>} : memref<1x1x2x128xf32, #tpu.memory_space<vmem>>, vector<1x1x2x128xf32>,
    %cst_25 = arith.constant dense<0.000000e+00> : vector<128xf32>
    %49 = vector.multi_reduction <add>, %40, %cst_25 [0] : vector<128x128xf32> to vector<128xf32>
    %50 = vector.shape_cast %49 : vector<128xf32> to vector<1x128xf32>
    %51 = arith.mulf %40, %40 : vector<128x128xf32>
    %cst_26 = arith.constant dense<0.000000e+00> : vector<128xf32>
    %52 = vector.multi_reduction <add>, %51, %cst_26 [0] : vector<128x128xf32> to vector<128xf32>
    %53 = vector.shape_cast %52 : vector<128xf32> to vector<1x128xf32>
    %54 = tpu.concatenate %50, %53 in 0 : vector<1x128xf32>, vector<1x128xf32> -> vector<2x128xf32>
    %55 = vector.shape_cast %54 : vector<2x128xf32> to vector<1x1x2x128xf32>
    %c0_27 = arith.constant 0 : index
    %c0_28 = arith.constant 0 : index
    %c0_29 = arith.constant 0 : index
    %c0_30 = arith.constant 0 : index
    %56 = vector.load %arg8[%c0_27, %c0_28, %c0_29, %c0_30] : memref<1x1x2x128xf32, #tpu.memory_space<vmem>>, vector<1x1x2x128xf32>
    tpu.vector_store %arg8[%c0_27, %c0_28, %c0_29, %c0_30], %55 {strides = array<i32>} : memref<1x1x2x128xf32, #tpu.memory_space<vmem>>, vector<1x1x2x128xf32>,
    %57 = vector.shape_cast %36 : vector<128x128xf32> to vector<1x8x16x128xf32>
    %58 = arith.truncf %57 : vector<1x8x16x128xf32> to vector<1x8x16x128xbf16>
    %c0_31 = arith.constant 0 : index
    %c0_32 = arith.constant 0 : index
    %c0_33 = arith.constant 0 : index
    %c0_34 = arith.constant 0 : index
    %59 = vector.load %arg5[%c0_31, %c0_32, %c0_33, %c0_34] : memref<1x8x16x128xbf16, #tpu.memory_space<vmem>>, vector<1x8x16x128xbf16>
    tpu.vector_store %arg5[%c0_31, %c0_32, %c0_33, %c0_34], %58 {strides = array<i32>} : memref<1x8x16x128xbf16, #tpu.memory_space<vmem>>, vector<1x8x16x128xbf16>,
    %60 = vector.shape_cast %40 : vector<128x128xf32> to vector<1x8x16x128xf32>
    %61 = arith.truncf %60 : vector<1x8x16x128xf32> to vector<1x8x16x128xbf16>
    %c0_35 = arith.constant 0 : index
    %c0_36 = arith.constant 0 : index
    %c0_37 = arith.constant 0 : index
    %c0_38 = arith.constant 0 : index
    %62 = vector.load %arg6[%c0_35, %c0_36, %c0_37, %c0_38] : memref<1x8x16x128xbf16, #tpu.memory_space<vmem>>, vector<1x8x16x128xbf16>
    tpu.vector_store %arg6[%c0_35, %c0_36, %c0_37, %c0_38], %61 {strides = array<i32>} : memref<1x8x16x128xbf16, #tpu.memory_space<vmem>>, vector<1x8x16x128xbf16>,
    return
  }
  func.func @transform_0(%arg0: i32, %arg1: i32) -> (i32, i32, i32, i32) {
    %c0_i32 = arith.constant 0 : i32
    %c0_i32_0 = arith.constant 0 : i32
    %c0_i32_1 = arith.constant 0 : i32
    %c0_i32_2 = arith.constant 0 : i32
    return %arg0, %c0_i32, %c0_i32_0, %c0_i32_1 : i32, i32, i32, i32
  }
  func.func @transform_1(%arg0: i32, %arg1: i32) -> (i32, i32) {
    %c0_i32 = arith.constant 0 : i32
    %c0_i32_0 = arith.constant 0 : i32
    %c0_i32_1 = arith.constant 0 : i32
    return %c0_i32, %c0_i32_0 : i32, i32
  }
  func.func @transform_2(%arg0: i32, %arg1: i32) -> (i32, i32) {
    %c0_i32 = arith.constant 0 : i32
    %c0_i32_0 = arith.constant 0 : i32
    %c0_i32_1 = arith.constant 0 : i32
    return %c0_i32, %c0_i32_0 : i32, i32
  }
  func.func @transform_3(%arg0: i32, %arg1: i32) -> (i32, i32, i32, i32) {
    %c0_i32 = arith.constant 0 : i32
    %c0_i32_0 = arith.constant 0 : i32
    %c0_i32_1 = arith.constant 0 : i32
    return %arg0, %arg1, %c0_i32, %c0_i32_0 : i32, i32, i32, i32
  }
  func.func @transform_4(%arg0: i32, %arg1: i32) -> (i32, i32, i32, i32) {
    %c0_i32 = arith.constant 0 : i32
    %c0_i32_0 = arith.constant 0 : i32
    %c0_i32_1 = arith.constant 0 : i32
    return %arg0, %arg1, %c0_i32, %c0_i32_0 : i32, i32, i32, i32
  }
  func.func @transform_5(%arg0: i32, %arg1: i32) -> (i32, i32, i32, i32) {
    %c0_i32 = arith.constant 0 : i32
    %c0_i32_0 = arith.constant 0 : i32
    %c0_i32_1 = arith.constant 0 : i32
    return %arg0, %arg1, %c0_i32, %c0_i32_0 : i32, i32, i32, i32
  }
  func.func @transform_6(%arg0: i32, %arg1: i32) -> (i32, i32, i32, i32) {
    %c0_i32 = arith.constant 0 : i32
    %c0_i32_0 = arith.constant 0 : i32
    %c0_i32_1 = arith.constant 0 : i32
    return %arg0, %arg1, %c0_i32, %c0_i32_0 : i32, i32, i32, i32
  }
}

module attributes {stable_mosaic.version = 11 : i64} {
  func.func @_conv2_kernel(%arg0: i32, %arg1: i32, %arg2: memref<1x16x16x128xbf16, #tpu.memory_space<vmem>>, %arg3: memref<1x128xf32, #tpu.memory_space<vmem>>, %arg4: memref<1x128xf32, #tpu.memory_space<vmem>>, %arg5: memref<72x128xbf16, #tpu.memory_space<vmem>>, %arg6: memref<1x8x16x128xbf16, #tpu.memory_space<vmem>>, %arg7: memref<1x1x2x128xf32, #tpu.memory_space<vmem>>, %arg8: memref<18x18x8xbf16, #tpu.memory_space<vmem>>, %arg9: memref<128x72xbf16, #tpu.memory_space<vmem>>) attributes {dimension_semantics = [#tpu.dimension_semantics<parallel>, #tpu.dimension_semantics<arbitrary>], iteration_bounds = array<i64: 2, 2>, scalar_prefetch = 0 : i64, scratch_operands = 2 : i64, tpu.core_type = #tpu.core_type<tc>, window_params = [{transform_indices = @transform_0, window_bounds = array<i64: 1, 16, 16, 128>}, {pipeline_mode = #tpu.pipeline_mode<synchronous>, transform_indices = @transform_1, window_bounds = array<i64: 1, 128>}, {pipeline_mode = #tpu.pipeline_mode<synchronous>, transform_indices = @transform_2, window_bounds = array<i64: 1, 128>}, {pipeline_mode = #tpu.pipeline_mode<synchronous>, transform_indices = @transform_3, window_bounds = array<i64: 72, 128>}, {transform_indices = @transform_4, window_bounds = array<i64: 1, 8, 16, 128>}, {transform_indices = @transform_5, window_bounds = array<i64: 1, 1, 2, 128>}]} {
    %c0_i32 = arith.constant 0 : i32
    %0 = arith.cmpi eq, %arg1, %c0_i32 : i32
    %1 = arith.extui %0 : i1 to i32
    %c0_i32_0 = arith.constant 0 : i32
    %2 = arith.cmpi ne, %1, %c0_i32_0 : i32
    scf.if %2 {
      %cst_26 = arith.constant 0.000000e+00 : bf16
      %48 = vector.broadcast %cst_26 : bf16 to vector<1x18x8xbf16>
      %cst_27 = arith.constant 0.000000e+00 : bf16
      %49 = vector.broadcast %cst_27 : bf16 to vector<18x1x8xbf16>
      %c0_28 = arith.constant 0 : index
      %c0_29 = arith.constant 0 : index
      %c0_30 = arith.constant 0 : index
      %50 = vector.load %arg8[%c0_28, %c0_29, %c0_30] : memref<18x18x8xbf16, #tpu.memory_space<vmem>>, vector<1x18x8xbf16>
      tpu.vector_store %arg8[%c0_28, %c0_29, %c0_30], %48 {strides = array<i32>} : memref<18x18x8xbf16, #tpu.memory_space<vmem>>, vector<1x18x8xbf16>,
      %c17 = arith.constant 17 : index
      %c0_31 = arith.constant 0 : index
      %c0_32 = arith.constant 0 : index
      %51 = vector.load %arg8[%c17, %c0_31, %c0_32] : memref<18x18x8xbf16, #tpu.memory_space<vmem>>, vector<1x18x8xbf16>
      tpu.vector_store %arg8[%c17, %c0_31, %c0_32], %48 {strides = array<i32>} : memref<18x18x8xbf16, #tpu.memory_space<vmem>>, vector<1x18x8xbf16>,
      %c0_33 = arith.constant 0 : index
      %c0_34 = arith.constant 0 : index
      %c0_35 = arith.constant 0 : index
      %52 = vector.load %arg8[%c0_33, %c0_34, %c0_35] : memref<18x18x8xbf16, #tpu.memory_space<vmem>>, vector<18x1x8xbf16>
      tpu.vector_store %arg8[%c0_33, %c0_34, %c0_35], %49 {strides = array<i32>} : memref<18x18x8xbf16, #tpu.memory_space<vmem>>, vector<18x1x8xbf16>,
      %c0_36 = arith.constant 0 : index
      %c17_37 = arith.constant 17 : index
      %c0_38 = arith.constant 0 : index
      %53 = vector.load %arg8[%c0_36, %c17_37, %c0_38] : memref<18x18x8xbf16, #tpu.memory_space<vmem>>, vector<18x1x8xbf16>
      tpu.vector_store %arg8[%c0_36, %c17_37, %c0_38], %49 {strides = array<i32>} : memref<18x18x8xbf16, #tpu.memory_space<vmem>>, vector<18x1x8xbf16>,
      %c0_39 = arith.constant 0 : index
      %c0_40 = arith.constant 0 : index
      %c0_41 = arith.constant 0 : index
      %c0_42 = arith.constant 0 : index
      %54 = vector.load %arg2[%c0_39, %c0_40, %c0_41, %c0_42] : memref<1x16x16x128xbf16, #tpu.memory_space<vmem>>, vector<1x16x16x128xbf16>
      %55 = vector.shape_cast %54 : vector<1x16x16x128xbf16> to vector<16x16x128xbf16>
      %56 = arith.extf %55 : vector<16x16x128xbf16> to vector<16x16x128xf32>
      %c0_43 = arith.constant 0 : index
      %c0_44 = arith.constant 0 : index
      %57 = vector.load %arg3[%c0_43, %c0_44] : memref<1x128xf32, #tpu.memory_space<vmem>>, vector<1x128xf32>
      %58 = vector.shape_cast %57 : vector<1x128xf32> to vector<1x1x128xf32>
      %59 = vector.broadcast %58 : vector<1x1x128xf32> to vector<16x16x128xf32>
      %60 = arith.mulf %56, %59 : vector<16x16x128xf32>
      %c0_45 = arith.constant 0 : index
      %c0_46 = arith.constant 0 : index
      %61 = vector.load %arg4[%c0_45, %c0_46] : memref<1x128xf32, #tpu.memory_space<vmem>>, vector<1x128xf32>
      %62 = vector.shape_cast %61 : vector<1x128xf32> to vector<1x1x128xf32>
      %63 = vector.broadcast %62 : vector<1x1x128xf32> to vector<16x16x128xf32>
      %64 = arith.addf %60, %63 : vector<16x16x128xf32>
      %cst_47 = arith.constant 0.000000e+00 : f32
      %65 = vector.broadcast %cst_47 : f32 to vector<16x16x128xf32>
      %66 = arith.maximumf %64, %65 : vector<16x16x128xf32>
      %67 = vector.extract_strided_slice %66 {offsets = [0, 0, 0], sizes = [16, 16, 8], strides = [1, 1, 1]} : vector<16x16x128xf32> to vector<16x16x8xf32>
      %68 = arith.truncf %67 : vector<16x16x8xf32> to vector<16x16x8xbf16>
      %c1 = arith.constant 1 : index
      %c1_48 = arith.constant 1 : index
      %c0_49 = arith.constant 0 : index
      %69 = vector.load %arg8[%c1, %c1_48, %c0_49] : memref<18x18x8xbf16, #tpu.memory_space<vmem>>, vector<16x16x8xbf16>
      tpu.vector_store %arg8[%c1, %c1_48, %c0_49], %68 {strides = array<i32>} : memref<18x18x8xbf16, #tpu.memory_space<vmem>>, vector<16x16x8xbf16>,
    } else {
    }
    %c8_i32 = arith.constant 8 : i32
    %3 = arith.muli %arg1, %c8_i32 : i32
    %4 = tpu.assume_multiple %3, 8 : i32
    %5 = arith.index_cast %4 : i32 to index
    %c0 = arith.constant 0 : index
    %c0_1 = arith.constant 0 : index
    %6 = vector.load %arg8[%5, %c0, %c0_1] : memref<18x18x8xbf16, #tpu.memory_space<vmem>>, vector<10x18x8xbf16>
    %7 = vector.extract_strided_slice %6 {offsets = [0, 0, 0], sizes = [8, 16, 8], strides = [1, 1, 1]} : vector<10x18x8xbf16> to vector<8x16x8xbf16>
    %8 = vector.shape_cast %7 : vector<8x16x8xbf16> to vector<128x8xbf16>
    %c0_2 = arith.constant 0 : index
    %c0_3 = arith.constant 0 : index
    %9 = vector.load %arg9[%c0_2, %c0_3] : memref<128x72xbf16, #tpu.memory_space<vmem>>, vector<128x8xbf16>
    tpu.vector_store %arg9[%c0_2, %c0_3], %8 {strides = array<i32>} : memref<128x72xbf16, #tpu.memory_space<vmem>>, vector<128x8xbf16>,
    %10 = vector.extract_strided_slice %6 {offsets = [0, 1, 0], sizes = [8, 16, 8], strides = [1, 1, 1]} : vector<10x18x8xbf16> to vector<8x16x8xbf16>
    %11 = vector.shape_cast %10 : vector<8x16x8xbf16> to vector<128x8xbf16>
    %c0_4 = arith.constant 0 : index
    %c8 = arith.constant 8 : index
    %12 = vector.load %arg9[%c0_4, %c8] : memref<128x72xbf16, #tpu.memory_space<vmem>>, vector<128x8xbf16>
    tpu.vector_store %arg9[%c0_4, %c8], %11 {strides = array<i32>} : memref<128x72xbf16, #tpu.memory_space<vmem>>, vector<128x8xbf16>,
    %13 = vector.extract_strided_slice %6 {offsets = [0, 2, 0], sizes = [8, 16, 8], strides = [1, 1, 1]} : vector<10x18x8xbf16> to vector<8x16x8xbf16>
    %14 = vector.shape_cast %13 : vector<8x16x8xbf16> to vector<128x8xbf16>
    %c0_5 = arith.constant 0 : index
    %c16 = arith.constant 16 : index
    %15 = vector.load %arg9[%c0_5, %c16] : memref<128x72xbf16, #tpu.memory_space<vmem>>, vector<128x8xbf16>
    tpu.vector_store %arg9[%c0_5, %c16], %14 {strides = array<i32>} : memref<128x72xbf16, #tpu.memory_space<vmem>>, vector<128x8xbf16>,
    %16 = vector.extract_strided_slice %6 {offsets = [1, 0, 0], sizes = [8, 16, 8], strides = [1, 1, 1]} : vector<10x18x8xbf16> to vector<8x16x8xbf16>
    %17 = vector.shape_cast %16 : vector<8x16x8xbf16> to vector<128x8xbf16>
    %c0_6 = arith.constant 0 : index
    %c24 = arith.constant 24 : index
    %18 = vector.load %arg9[%c0_6, %c24] : memref<128x72xbf16, #tpu.memory_space<vmem>>, vector<128x8xbf16>
    tpu.vector_store %arg9[%c0_6, %c24], %17 {strides = array<i32>} : memref<128x72xbf16, #tpu.memory_space<vmem>>, vector<128x8xbf16>,
    %19 = vector.extract_strided_slice %6 {offsets = [1, 1, 0], sizes = [8, 16, 8], strides = [1, 1, 1]} : vector<10x18x8xbf16> to vector<8x16x8xbf16>
    %20 = vector.shape_cast %19 : vector<8x16x8xbf16> to vector<128x8xbf16>
    %c0_7 = arith.constant 0 : index
    %c32 = arith.constant 32 : index
    %21 = vector.load %arg9[%c0_7, %c32] : memref<128x72xbf16, #tpu.memory_space<vmem>>, vector<128x8xbf16>
    tpu.vector_store %arg9[%c0_7, %c32], %20 {strides = array<i32>} : memref<128x72xbf16, #tpu.memory_space<vmem>>, vector<128x8xbf16>,
    %22 = vector.extract_strided_slice %6 {offsets = [1, 2, 0], sizes = [8, 16, 8], strides = [1, 1, 1]} : vector<10x18x8xbf16> to vector<8x16x8xbf16>
    %23 = vector.shape_cast %22 : vector<8x16x8xbf16> to vector<128x8xbf16>
    %c0_8 = arith.constant 0 : index
    %c40 = arith.constant 40 : index
    %24 = vector.load %arg9[%c0_8, %c40] : memref<128x72xbf16, #tpu.memory_space<vmem>>, vector<128x8xbf16>
    tpu.vector_store %arg9[%c0_8, %c40], %23 {strides = array<i32>} : memref<128x72xbf16, #tpu.memory_space<vmem>>, vector<128x8xbf16>,
    %25 = vector.extract_strided_slice %6 {offsets = [2, 0, 0], sizes = [8, 16, 8], strides = [1, 1, 1]} : vector<10x18x8xbf16> to vector<8x16x8xbf16>
    %26 = vector.shape_cast %25 : vector<8x16x8xbf16> to vector<128x8xbf16>
    %c0_9 = arith.constant 0 : index
    %c48 = arith.constant 48 : index
    %27 = vector.load %arg9[%c0_9, %c48] : memref<128x72xbf16, #tpu.memory_space<vmem>>, vector<128x8xbf16>
    tpu.vector_store %arg9[%c0_9, %c48], %26 {strides = array<i32>} : memref<128x72xbf16, #tpu.memory_space<vmem>>, vector<128x8xbf16>,
    %28 = vector.extract_strided_slice %6 {offsets = [2, 1, 0], sizes = [8, 16, 8], strides = [1, 1, 1]} : vector<10x18x8xbf16> to vector<8x16x8xbf16>
    %29 = vector.shape_cast %28 : vector<8x16x8xbf16> to vector<128x8xbf16>
    %c0_10 = arith.constant 0 : index
    %c56 = arith.constant 56 : index
    %30 = vector.load %arg9[%c0_10, %c56] : memref<128x72xbf16, #tpu.memory_space<vmem>>, vector<128x8xbf16>
    tpu.vector_store %arg9[%c0_10, %c56], %29 {strides = array<i32>} : memref<128x72xbf16, #tpu.memory_space<vmem>>, vector<128x8xbf16>,
    %31 = vector.extract_strided_slice %6 {offsets = [2, 2, 0], sizes = [8, 16, 8], strides = [1, 1, 1]} : vector<10x18x8xbf16> to vector<8x16x8xbf16>
    %32 = vector.shape_cast %31 : vector<8x16x8xbf16> to vector<128x8xbf16>
    %c0_11 = arith.constant 0 : index
    %c64 = arith.constant 64 : index
    %33 = vector.load %arg9[%c0_11, %c64] : memref<128x72xbf16, #tpu.memory_space<vmem>>, vector<128x8xbf16>
    tpu.vector_store %arg9[%c0_11, %c64], %32 {strides = array<i32>} : memref<128x72xbf16, #tpu.memory_space<vmem>>, vector<128x8xbf16>,
    %c0_12 = arith.constant 0 : index
    %c0_13 = arith.constant 0 : index
    %34 = vector.load %arg9[%c0_12, %c0_13] : memref<128x72xbf16, #tpu.memory_space<vmem>>, vector<128x72xbf16>
    %c0_14 = arith.constant 0 : index
    %c0_15 = arith.constant 0 : index
    %35 = vector.load %arg5[%c0_14, %c0_15] : memref<72x128xbf16, #tpu.memory_space<vmem>>, vector<72x128xbf16>
    %cst = arith.constant dense<0.000000e+00> : vector<128x128xf32>
    %36 = tpu.matmul %34, %35, %cst {dimension_numbers = #tpu.dot_dimension_numbers<[1], [0], [0], [1], [0, 0, 1, 1], [], []>} : vector<128x72xbf16>, vector<72x128xbf16>, vector<128x128xf32> -> vector<128x128xf32>
    %cst_16 = arith.constant dense<0.000000e+00> : vector<128xf32>
    %37 = vector.multi_reduction <add>, %36, %cst_16 [0] : vector<128x128xf32> to vector<128xf32>
    %38 = vector.shape_cast %37 : vector<128xf32> to vector<1x128xf32>
    %39 = arith.mulf %36, %36 : vector<128x128xf32>
    %cst_17 = arith.constant dense<0.000000e+00> : vector<128xf32>
    %40 = vector.multi_reduction <add>, %39, %cst_17 [0] : vector<128x128xf32> to vector<128xf32>
    %41 = vector.shape_cast %40 : vector<128xf32> to vector<1x128xf32>
    %42 = tpu.concatenate %38, %41 in 0 : vector<1x128xf32>, vector<1x128xf32> -> vector<2x128xf32>
    %43 = vector.shape_cast %42 : vector<2x128xf32> to vector<1x1x2x128xf32>
    %c0_18 = arith.constant 0 : index
    %c0_19 = arith.constant 0 : index
    %c0_20 = arith.constant 0 : index
    %c0_21 = arith.constant 0 : index
    %44 = vector.load %arg7[%c0_18, %c0_19, %c0_20, %c0_21] : memref<1x1x2x128xf32, #tpu.memory_space<vmem>>, vector<1x1x2x128xf32>
    tpu.vector_store %arg7[%c0_18, %c0_19, %c0_20, %c0_21], %43 {strides = array<i32>} : memref<1x1x2x128xf32, #tpu.memory_space<vmem>>, vector<1x1x2x128xf32>,
    %45 = vector.shape_cast %36 : vector<128x128xf32> to vector<1x8x16x128xf32>
    %46 = arith.truncf %45 : vector<1x8x16x128xf32> to vector<1x8x16x128xbf16>
    %c0_22 = arith.constant 0 : index
    %c0_23 = arith.constant 0 : index
    %c0_24 = arith.constant 0 : index
    %c0_25 = arith.constant 0 : index
    %47 = vector.load %arg6[%c0_22, %c0_23, %c0_24, %c0_25] : memref<1x8x16x128xbf16, #tpu.memory_space<vmem>>, vector<1x8x16x128xbf16>
    tpu.vector_store %arg6[%c0_22, %c0_23, %c0_24, %c0_25], %46 {strides = array<i32>} : memref<1x8x16x128xbf16, #tpu.memory_space<vmem>>, vector<1x8x16x128xbf16>,
    return
  }
  func.func @transform_0(%arg0: i32, %arg1: i32) -> (i32, i32, i32, i32) {
    %c0_i32 = arith.constant 0 : i32
    %c0_i32_0 = arith.constant 0 : i32
    %c0_i32_1 = arith.constant 0 : i32
    %c0_i32_2 = arith.constant 0 : i32
    return %arg0, %c0_i32, %c0_i32_0, %c0_i32_1 : i32, i32, i32, i32
  }
  func.func @transform_1(%arg0: i32, %arg1: i32) -> (i32, i32) {
    %c0_i32 = arith.constant 0 : i32
    %c0_i32_0 = arith.constant 0 : i32
    %c0_i32_1 = arith.constant 0 : i32
    return %c0_i32, %c0_i32_0 : i32, i32
  }
  func.func @transform_2(%arg0: i32, %arg1: i32) -> (i32, i32) {
    %c0_i32 = arith.constant 0 : i32
    %c0_i32_0 = arith.constant 0 : i32
    %c0_i32_1 = arith.constant 0 : i32
    return %c0_i32, %c0_i32_0 : i32, i32
  }
  func.func @transform_3(%arg0: i32, %arg1: i32) -> (i32, i32) {
    %c0_i32 = arith.constant 0 : i32
    %c0_i32_0 = arith.constant 0 : i32
    %c0_i32_1 = arith.constant 0 : i32
    return %c0_i32, %c0_i32_0 : i32, i32
  }
  func.func @transform_4(%arg0: i32, %arg1: i32) -> (i32, i32, i32, i32) {
    %c0_i32 = arith.constant 0 : i32
    %c0_i32_0 = arith.constant 0 : i32
    %c0_i32_1 = arith.constant 0 : i32
    return %arg0, %arg1, %c0_i32, %c0_i32_0 : i32, i32, i32, i32
  }
  func.func @transform_5(%arg0: i32, %arg1: i32) -> (i32, i32, i32, i32) {
    %c0_i32 = arith.constant 0 : i32
    %c0_i32_0 = arith.constant 0 : i32
    %c0_i32_1 = arith.constant 0 : i32
    return %arg0, %arg1, %c0_i32, %c0_i32_0 : i32, i32, i32, i32
  }
}

module attributes {stable_mosaic.version = 11 : i64} {
  func.func @_bn_add_relu_kernel(%arg0: i32, %arg1: i32, %arg2: memref<1x8x16x128xbf16, #tpu.memory_space<vmem>>, %arg3: memref<1x8x16x128xbf16, #tpu.memory_space<vmem>>, %arg4: memref<1x128xf32, #tpu.memory_space<vmem>>, %arg5: memref<1x128xf32, #tpu.memory_space<vmem>>, %arg6: memref<1x128xf32, #tpu.memory_space<vmem>>, %arg7: memref<1x128xf32, #tpu.memory_space<vmem>>, %arg8: memref<1x8x16x128xf32, #tpu.memory_space<vmem>>) attributes {dimension_semantics = [#tpu.dimension_semantics<parallel>, #tpu.dimension_semantics<parallel>], iteration_bounds = array<i64: 2, 2>, scalar_prefetch = 0 : i64, scratch_operands = 0 : i64, tpu.core_type = #tpu.core_type<tc>, window_params = [{transform_indices = @transform_0, window_bounds = array<i64: 1, 8, 16, 128>}, {transform_indices = @transform_1, window_bounds = array<i64: 1, 8, 16, 128>}, {pipeline_mode = #tpu.pipeline_mode<synchronous>, transform_indices = @transform_2, window_bounds = array<i64: 1, 128>}, {pipeline_mode = #tpu.pipeline_mode<synchronous>, transform_indices = @transform_3, window_bounds = array<i64: 1, 128>}, {pipeline_mode = #tpu.pipeline_mode<synchronous>, transform_indices = @transform_4, window_bounds = array<i64: 1, 128>}, {pipeline_mode = #tpu.pipeline_mode<synchronous>, transform_indices = @transform_5, window_bounds = array<i64: 1, 128>}, {transform_indices = @transform_6, window_bounds = array<i64: 1, 8, 16, 128>}]} {
    %c0 = arith.constant 0 : index
    %c0_0 = arith.constant 0 : index
    %c0_1 = arith.constant 0 : index
    %c0_2 = arith.constant 0 : index
    %0 = vector.load %arg2[%c0, %c0_0, %c0_1, %c0_2] : memref<1x8x16x128xbf16, #tpu.memory_space<vmem>>, vector<1x8x16x128xbf16>
    %1 = arith.extf %0 : vector<1x8x16x128xbf16> to vector<1x8x16x128xf32>
    %c0_3 = arith.constant 0 : index
    %c0_4 = arith.constant 0 : index
    %c0_5 = arith.constant 0 : index
    %c0_6 = arith.constant 0 : index
    %2 = vector.load %arg3[%c0_3, %c0_4, %c0_5, %c0_6] : memref<1x8x16x128xbf16, #tpu.memory_space<vmem>>, vector<1x8x16x128xbf16>
    %3 = arith.extf %2 : vector<1x8x16x128xbf16> to vector<1x8x16x128xf32>
    %c0_7 = arith.constant 0 : index
    %c0_8 = arith.constant 0 : index
    %4 = vector.load %arg4[%c0_7, %c0_8] : memref<1x128xf32, #tpu.memory_space<vmem>>, vector<1x128xf32>
    %5 = vector.shape_cast %4 : vector<1x128xf32> to vector<1x1x1x128xf32>
    %6 = vector.broadcast %5 : vector<1x1x1x128xf32> to vector<1x8x16x128xf32>
    %7 = arith.mulf %1, %6 : vector<1x8x16x128xf32>
    %c0_9 = arith.constant 0 : index
    %c0_10 = arith.constant 0 : index
    %8 = vector.load %arg5[%c0_9, %c0_10] : memref<1x128xf32, #tpu.memory_space<vmem>>, vector<1x128xf32>
    %9 = vector.shape_cast %8 : vector<1x128xf32> to vector<1x1x1x128xf32>
    %10 = vector.broadcast %9 : vector<1x1x1x128xf32> to vector<1x8x16x128xf32>
    %11 = arith.addf %7, %10 : vector<1x8x16x128xf32>
    %c0_11 = arith.constant 0 : index
    %c0_12 = arith.constant 0 : index
    %12 = vector.load %arg6[%c0_11, %c0_12] : memref<1x128xf32, #tpu.memory_space<vmem>>, vector<1x128xf32>
    %13 = vector.shape_cast %12 : vector<1x128xf32> to vector<1x1x1x128xf32>
    %14 = vector.broadcast %13 : vector<1x1x1x128xf32> to vector<1x8x16x128xf32>
    %15 = arith.mulf %3, %14 : vector<1x8x16x128xf32>
    %c0_13 = arith.constant 0 : index
    %c0_14 = arith.constant 0 : index
    %16 = vector.load %arg7[%c0_13, %c0_14] : memref<1x128xf32, #tpu.memory_space<vmem>>, vector<1x128xf32>
    %17 = vector.shape_cast %16 : vector<1x128xf32> to vector<1x1x1x128xf32>
    %18 = vector.broadcast %17 : vector<1x1x1x128xf32> to vector<1x8x16x128xf32>
    %19 = arith.addf %15, %18 : vector<1x8x16x128xf32>
    %20 = arith.addf %11, %19 : vector<1x8x16x128xf32>
    %cst = arith.constant 0.000000e+00 : f32
    %21 = vector.broadcast %cst : f32 to vector<1x8x16x128xf32>
    %22 = arith.maximumf %20, %21 : vector<1x8x16x128xf32>
    %c0_15 = arith.constant 0 : index
    %c0_16 = arith.constant 0 : index
    %c0_17 = arith.constant 0 : index
    %c0_18 = arith.constant 0 : index
    %23 = vector.load %arg8[%c0_15, %c0_16, %c0_17, %c0_18] : memref<1x8x16x128xf32, #tpu.memory_space<vmem>>, vector<1x8x16x128xf32>
    tpu.vector_store %arg8[%c0_15, %c0_16, %c0_17, %c0_18], %22 {strides = array<i32>} : memref<1x8x16x128xf32, #tpu.memory_space<vmem>>, vector<1x8x16x128xf32>,
    return
  }
  func.func @transform_0(%arg0: i32, %arg1: i32) -> (i32, i32, i32, i32) {
    %c0_i32 = arith.constant 0 : i32
    %c0_i32_0 = arith.constant 0 : i32
    %c0_i32_1 = arith.constant 0 : i32
    return %arg0, %arg1, %c0_i32, %c0_i32_0 : i32, i32, i32, i32
  }
  func.func @transform_1(%arg0: i32, %arg1: i32) -> (i32, i32, i32, i32) {
    %c0_i32 = arith.constant 0 : i32
    %c0_i32_0 = arith.constant 0 : i32
    %c0_i32_1 = arith.constant 0 : i32
    return %arg0, %arg1, %c0_i32, %c0_i32_0 : i32, i32, i32, i32
  }
  func.func @transform_2(%arg0: i32, %arg1: i32) -> (i32, i32) {
    %c0_i32 = arith.constant 0 : i32
    %c0_i32_0 = arith.constant 0 : i32
    %c0_i32_1 = arith.constant 0 : i32
    return %c0_i32, %c0_i32_0 : i32, i32
  }
  func.func @transform_3(%arg0: i32, %arg1: i32) -> (i32, i32) {
    %c0_i32 = arith.constant 0 : i32
    %c0_i32_0 = arith.constant 0 : i32
    %c0_i32_1 = arith.constant 0 : i32
    return %c0_i32, %c0_i32_0 : i32, i32
  }
  func.func @transform_4(%arg0: i32, %arg1: i32) -> (i32, i32) {
    %c0_i32 = arith.constant 0 : i32
    %c0_i32_0 = arith.constant 0 : i32
    %c0_i32_1 = arith.constant 0 : i32
    return %c0_i32, %c0_i32_0 : i32, i32
  }
  func.func @transform_5(%arg0: i32, %arg1: i32) -> (i32, i32) {
    %c0_i32 = arith.constant 0 : i32
    %c0_i32_0 = arith.constant 0 : i32
    %c0_i32_1 = arith.constant 0 : i32
    return %c0_i32, %c0_i32_0 : i32, i32
  }
  func.func @transform_6(%arg0: i32, %arg1: i32) -> (i32, i32, i32, i32) {
    %c0_i32 = arith.constant 0 : i32
    %c0_i32_0 = arith.constant 0 : i32
    %c0_i32_1 = arith.constant 0 : i32
    return %arg0, %arg1, %c0_i32, %c0_i32_0 : i32, i32, i32, i32
  }
}

</mosaic_0001>

<bundles_post_ra>
// kernel: coblock_pallas.5
= control target key start
LH: loop header
LB: loop body
LE: loop exit
PB: predicated region body
PF: predicated region fallthrough
CT: control target
= control target key end

     0   :  { %s875_s21 = smov 0   ;;  %s877_s22 = smov 0   ;;  %s1055_s0 = inlined_call_operand.vmem [shape: bf16[2,16,16,128], index: 0, kind: input, shape index: {}]   ;;  %s1056_s1 = inlined_call_operand.vmem [shape: bf16[2,16,16,128], index: 1, kind: input, shape index: {}]   ;;  %s1057_s2 = inlined_call_operand.vmem [shape: f32[1,128], index: 2, kind: input, shape index: {}]   ;;  %s1058_s3 = inlined_call_operand.vmem [shape: f32[1,128], index: 3, kind: input, shape index: {}]   ;;  %s1059_s4 = inlined_call_operand.vmem [shape: f32[1,128], index: 4, kind: input, shape index: {}]   ;;  %s1060_s5 = inlined_call_operand.vmem [shape: f32[1,128], index: 5, kind: input, shape index: {}]   ;;  %s1061_s6 = inlined_call_operand.vmem [shape: f32[2,16,16,128], index: 6, kind: output, shape index: {}]  }
   0x1   :  { %s879_s23 = smov 0   ;;  %s881_s24 = smov 0  }
   0x2   :  { %s883_s25 = smov 0  }
   0x3 LB: > { %s25_s26 = sadd.s32 1, %s830_s23  ;;  %s28_s27 = sadd.s32 1, %s834_s24  ;;  %s838_s25 = sphi %s883_s25, %s16_s25   ;;  %s834_s24 = sphi %s881_s24, %s1065_s24   ;;  %s830_s23 = sphi %s879_s23, %s1064_s23   ;;  %s826_s22 = sphi %s877_s22, %s1063_s22   ;;  %s822_s21 = sphi %s875_s21, %s1062_s21  }
   0x4   : > { %p26_p0 = scmp.ge.s32.totalorder %s25_s26, 2  ;;  %p663_p1 = scmp.ge.s32.totalorder %s838_s25, 1 }
   0x5   : > { %p252_p2 = scmp.lt.s32.totalorder %s838_s25, 5 }
   0x6   : > { %s1067_s26 = smov (%p26_p0, %s25_s26), 0  ;;  %s1069_s27 = smov (!%p26_p0, %s28_s27), %s834_s24 }
   0x7   : > { %p253_p3 = pnand %p663_p1, %p252_p2  ;;  %p30_p4 = scmp.ge.s32.totalorder %s1069_s27, 2 }
   0x8   : > { %s664_s28 = sshll.u32 (!%p253_p3), %s822_s21, 3  ;;  %p303_p5 = scmp.lt.s32.totalorder (!%p253_p3), %s826_s22, 1  ;;  %v921_v0 = vld [vmem:[%s1057_s2] ss:$0 sm:$0xff] (!%p253_p3) }
   0x9   : > { %s1071_s27 = smov (%p30_p4, %s1069_s27), 0  ;;  %256 = sbr.rel (%p253_p3) target bundleno = 60 (0x3c), region = 44 }
   0xa   : > { %p305_p6 = scmp.lt.s32.totalorder (!%p253_p3), %s664_s28, 15  ;;  %v926_v1 = vld [vmem:[%s1059_s4] ss:$0 sm:$0xff] (!%p253_p3) }
   0xb   : > { %v935_v10 = vld [vmem:[%s1058_s3] ss:$0 sm:$0xff] (!%p253_p3) }
   0xc   : > { %v940_v11 = vld [vmem:[%s1060_s5] ss:$0 sm:$0xff] (!%p253_p3) }
  0x10   : > { %s1073_s22 = smov (!%p303_p5, %s826_s22), 1  ;;  %s1075_s28 = smov (!%p305_p6, %s664_s28), 15 }
  0x11   : > { %s666_s29 = sshll.u32 %s1073_s22, 5  ;;  %s665_s30 = sshll.u32 %s1075_s28, 1 }
  0x12   : > { %s905_s7 = sadd.s32 %s666_s29, %s665_s30 }
  0x13   : > { %s667_s8 = sshll.u32 %s905_s7, 2  ;;  %s675_s28 = sshll.u32 %s905_s7, 3 }
  0x14   : > { %s911_s11 = scalar_lea.vmem %s1055_s0, %s667_s8  ;;  %s916_s14 = scalar_lea.vmem %s1056_s1, %s667_s8 }
  0x15   : > { %v683_v2 = vld [vmem:[%s911_s11] sm:$0xff]   ;;  %v746_v4 = vld [vmem:[%s911_s11 + $0x8] sm:$0xff]   ;;  %v747_v24 = vld [vmem:[%s911_s11 + $0x10] sm:$0xff]   ;;  %s964_s7 = scalar_lea.vmem %s1061_s6, %s675_s28 }
  0x16   : > { %v715_v3 = vld [vmem:[%s916_s14] sm:$0xff]   ;;  %v684_v5 = vunpack.c.l.bf16 %v683_v2  ;;  %v685_v7 = vunpack.c.h.bf16 %v683_v2  ;;  %v753_v9 = vld [vmem:[%s916_s14 + $0x8] sm:$0xff]   ;;  %v688_v12 = vunpack.c.l.bf16 %v746_v4  ;;  %v689_v14 = vunpack.c.h.bf16 %v746_v4  ;;  %v754_v25 = vld [vmem:[%s916_s14 + $0x10] sm:$0xff]  }
  0x17   : > { %v716_v6 = vunpack.c.l.bf16 %v715_v3  ;;  %v717_v8 = vunpack.c.h.bf16 %v715_v3  ;;  %v720_v13 = vunpack.c.l.bf16 %v753_v9  ;;  %v721_v15 = vunpack.c.h.bf16 %v753_v9  ;;  %v748_v42 = vld [vmem:[%s911_s11 + $0x18] sm:$0xff]   ;;  %v749_v52 = vld [vmem:[%s911_s11 + $0x20] sm:$0xff]  }
  0x18   : > { %v406_v16 = vmul.f32 %v684_v5, %v921_v0  ;;  %v407_v18 = vmul.f32 %v685_v7, %v921_v0  ;;  %v408_v20 = vmul.f32 %v688_v12, %v921_v0  ;;  %v409_v22 = vmul.f32 %v689_v14, %v921_v0  ;;  %v755_v43 = vld [vmem:[%s916_s14 + $0x18] sm:$0xff]   ;;  %v756_v57 = vld [vmem:[%s916_s14 + $0x20] sm:$0xff]   ;;  %v750_v14 = vld [vmem:[%s911_s11 + $0x28] sm:$0xff]  }
  0x19   : > { %v452_v17 = vmul.f32 %v716_v6, %v926_v1  ;;  %v453_v19 = vmul.f32 %v717_v8, %v926_v1  ;;  %v454_v21 = vmul.f32 %v720_v13, %v926_v1  ;;  %v455_v23 = vmul.f32 %v721_v15, %v926_v1  ;;  %v757_v15 = vld [vmem:[%s916_s14 + $0x28] sm:$0xff]  }
  0x1a   : > { %v429_v26 = vadd.f32 %v935_v10, %v406_v16  ;;  %v430_v28 = vadd.f32 %v935_v10, %v407_v18  ;;  %v431_v30 = vadd.f32 %v935_v10, %v408_v20  ;;  %v432_v32 = vadd.f32 %v935_v10, %v409_v22 }
  0x1b   : > { %v475_v27 = vadd.f32 %v940_v11, %v452_v17  ;;  %v476_v29 = vadd.f32 %v940_v11, %v453_v19  ;;  %v477_v31 = vadd.f32 %v940_v11, %v454_v21  ;;  %v478_v33 = vadd.f32 %v940_v11, %v455_v23 }
  0x1c   : > { %v692_v36 = vunpack.c.l.bf16 %v747_v24  ;;  %v724_v37 = vunpack.c.l.bf16 %v754_v25  ;;  %v693_v40 = vunpack.c.h.bf16 %v747_v24  ;;  %v725_v41 = vunpack.c.h.bf16 %v754_v25 }
  0x1d   : > { %v491_v34 = vadd.f32 %v475_v27, %v429_v26  ;;  %v492_v35 = vadd.f32 %v476_v29, %v430_v28  ;;  %v493_v38 = vadd.f32 %v477_v31, %v431_v30  ;;  %v494_v39 = vadd.f32 %v478_v33, %v432_v32  ;;  %v751_v32 = vld [vmem:[%s911_s11 + $0x30] sm:$0xff]  }
  0x1e   : > { %v410_v46 = vmul.f32 %v692_v36, %v921_v0  ;;  %v456_v47 = vmul.f32 %v724_v37, %v926_v1  ;;  %v411_v50 = vmul.f32 %v693_v40, %v921_v0  ;;  %v457_v51 = vmul.f32 %v725_v41, %v926_v1  ;;  %v758_v37 = vld [vmem:[%s916_s14 + $0x30] sm:$0xff]  }
  0x1f   : > { %v507_v44 = vmax.f32 %v491_v34, 0.0  ;;  %v508_v45 = vmax.f32 %v492_v35, 0.0  ;;  %v509_v48 = vmax.f32 %v493_v38, 0.0  ;;  %v510_v49 = vmax.f32 %v494_v39, 0.0 }
  0x20   : > { %v433_v53 = vadd.f32 %v935_v10, %v410_v46  ;;  %v479_v54 = vadd.f32 %v940_v11, %v456_v47  ;;  %v696_v55 = vunpack.c.l.bf16 %v748_v42  ;;  %v728_v56 = vunpack.c.l.bf16 %v755_v43  ;;  %v752_v46 = vld [vmem:[%s911_s11 + $0x38] sm:$0xff]  }
  0x21   : > { %523 = vst [vmem:[%s964_s7] sm:$0xff] %v507_v44  ;;  %524 = vst [vmem:[%s964_s7 + $0x8] sm:$0xff] %v508_v45  ;;  %v434_v58 = vadd.f32 %v935_v10, %v411_v50  ;;  %v480_v59 = vadd.f32 %v940_v11, %v457_v51  ;;  %v697_v60 = vunpack.c.h.bf16 %v748_v42  ;;  %v729_v61 = vunpack.c.h.bf16 %v755_v43 }
  0x22   : > { %525 = vst [vmem:[%s964_s7 + $0x10] sm:$0xff] %v509_v48  ;;  %526 = vst [vmem:[%s964_s7 + $0x18] sm:$0xff] %v510_v49  ;;  %v495_v62 = vadd.f32 %v479_v54, %v433_v53  ;;  %v412_v63 = vmul.f32 %v696_v55, %v921_v0  ;;  %v458_v2 = vmul.f32 %v728_v56, %v926_v1  ;;  %v700_v3 = vunpack.c.l.bf16 %v749_v52  ;;  %v759_v55 = vld [vmem:[%s916_s14 + $0x38] sm:$0xff]  }
  0x23   : > { %v496_v4 = vadd.f32 %v480_v59, %v434_v58  ;;  %v413_v5 = vmul.f32 %v697_v60, %v921_v0  ;;  %v459_v6 = vmul.f32 %v729_v61, %v926_v1  ;;  %v732_v7 = vunpack.c.l.bf16 %v756_v57 }
  0x24   : > { %v511_v8 = vmax.f32 %v495_v62, 0.0  ;;  %v435_v9 = vadd.f32 %v935_v10, %v412_v63  ;;  %v481_v12 = vadd.f32 %v940_v11, %v458_v2  ;;  %v414_v13 = vmul.f32 %v700_v3, %v921_v0 }
  0x25   : > { %v512_v16 = vmax.f32 %v496_v4, 0.0  ;;  %v436_v17 = vadd.f32 %v935_v10, %v413_v5  ;;  %v482_v18 = vadd.f32 %v940_v11, %v459_v6  ;;  %v460_v19 = vmul.f32 %v732_v7, %v926_v1 }
  0x26   : > { %527 = vst [vmem:[%s964_s7 + $0x20] sm:$0xff] %v511_v8  ;;  %v497_v20 = vadd.f32 %v481_v12, %v435_v9  ;;  %v437_v21 = vadd.f32 %v935_v10, %v414_v13  ;;  %v701_v22 = vunpack.c.h.bf16 %v749_v52  ;;  %v733_v23 = vunpack.c.h.bf16 %v756_v57 }
  0x27   : > { %528 = vst [vmem:[%s964_s7 + $0x28] sm:$0xff] %v512_v16  ;;  %v498_v24 = vadd.f32 %v482_v18, %v436_v17  ;;  %v483_v25 = vadd.f32 %v940_v11, %v460_v19  ;;  %v704_v26 = vunpack.c.l.bf16 %v750_v14  ;;  %v736_v27 = vunpack.c.l.bf16 %v757_v15 }
  0x28   : > { %v513_v28 = vmax.f32 %v497_v20, 0.0  ;;  %v415_v29 = vmul.f32 %v701_v22, %v921_v0  ;;  %v461_v30 = vmul.f32 %v733_v23, %v926_v1  ;;  %v705_v31 = vunpack.c.h.bf16 %v750_v14 }
  0x29   : > { %v514_v33 = vmax.f32 %v498_v24, 0.0  ;;  %v499_v34 = vadd.f32 %v483_v25, %v437_v21  ;;  %v416_v35 = vmul.f32 %v704_v26, %v921_v0  ;;  %v462_v36 = vmul.f32 %v736_v27, %v926_v1 }
  0x2a   : > { %529 = vst [vmem:[%s964_s7 + $0x30] sm:$0xff] %v513_v28  ;;  %v438_v38 = vadd.f32 %v935_v10, %v415_v29  ;;  %v484_v39 = vadd.f32 %v940_v11, %v461_v30  ;;  %v737_v40 = vunpack.c.h.bf16 %v757_v15  ;;  %v417_v41 = vmul.f32 %v705_v31, %v921_v0 }
  0x2b   : > { %530 = vst [vmem:[%s964_s7 + $0x38] sm:$0xff] %v514_v33  ;;  %v515_v42 = vmax.f32 %v499_v34, 0.0  ;;  %v439_v43 = vadd.f32 %v935_v10, %v416_v35  ;;  %v485_v44 = vadd.f32 %v940_v11, %v462_v36  ;;  %v708_v45 = vunpack.c.l.bf16 %v751_v32 }
  0x2c   : > { %v500_v47 = vadd.f32 %v484_v39, %v438_v38  ;;  %v440_v48 = vadd.f32 %v935_v10, %v417_v41  ;;  %v463_v49 = vmul.f32 %v737_v40, %v926_v1  ;;  %v740_v50 = vunpack.c.l.bf16 %v758_v37 }
  0x2d   : > { %531 = vst [vmem:[%s964_s7 + $0x40] sm:$0xff] %v515_v42  ;;  %v501_v51 = vadd.f32 %v485_v44, %v439_v43  ;;  %v418_v52 = vmul.f32 %v708_v45, %v921_v0  ;;  %v709_v53 = vunpack.c.h.bf16 %v751_v32  ;;  %v741_v54 = vunpack.c.h.bf16 %v758_v37 }
  0x2e   : > { %v516_v56 = vmax.f32 %v500_v47, 0.0  ;;  %v486_v57 = vadd.f32 %v940_v11, %v463_v49  ;;  %v464_v58 = vmul.f32 %v740_v50, %v926_v1  ;;  %v712_v59 = vunpack.c.l.bf16 %v752_v46 }
  0x2f   : > { %v517_v60 = vmax.f32 %v501_v51, 0.0  ;;  %v441_v61 = vadd.f32 %v935_v10, %v418_v52  ;;  %v419_v62 = vmul.f32 %v709_v53, %v921_v0  ;;  %v465_v63 = vmul.f32 %v741_v54, %v926_v1 }
  0x30   : > { %532 = vst [vmem:[%s964_s7 + $0x48] sm:$0xff] %v516_v56  ;;  %v502_v2 = vadd.f32 %v486_v57, %v440_v48  ;;  %v487_v3 = vadd.f32 %v940_v11, %v464_v58  ;;  %v744_v4 = vunpack.c.l.bf16 %v759_v55  ;;  %v420_v5 = vmul.f32 %v712_v59, %v921_v0 }
  0x31   : > { %533 = vst [vmem:[%s964_s7 + $0x50] sm:$0xff] %v517_v60  ;;  %v442_v6 = vadd.f32 %v935_v10, %v419_v62  ;;  %v488_v7 = vadd.f32 %v940_v11, %v465_v63  ;;  %v713_v8 = vunpack.c.h.bf16 %v752_v46  ;;  %v745_v9 = vunpack.c.h.bf16 %v759_v55 }
  0x32   : > { %v518_v12 = vmax.f32 %v502_v2, 0.0  ;;  %v503_v13 = vadd.f32 %v487_v3, %v441_v61  ;;  %v443_v14 = vadd.f32 %v935_v10, %v420_v5  ;;  %v466_v15 = vmul.f32 %v744_v4, %v926_v1 }
  0x33   : > { %v504_v16 = vadd.f32 %v488_v7, %v442_v6  ;;  %v421_v17 = vmul.f32 %v713_v8, %v921_v0  ;;  %v467_v18 = vmul.f32 %v745_v9, %v926_v1 }
  0x34   : > { %534 = vst [vmem:[%s964_s7 + $0x58] sm:$0xff] %v518_v12  ;;  %v519_v19 = vmax.f32 %v503_v13, 0.0  ;;  %v489_v20 = vadd.f32 %v940_v11, %v466_v15 }
  0x35   : > { %v520_v21 = vmax.f32 %v504_v16, 0.0  ;;  %v444_v22 = vadd.f32 %v935_v10, %v421_v17  ;;  %v490_v23 = vadd.f32 %v940_v11, %v467_v18 }
  0x36   : > { %535 = vst [vmem:[%s964_s7 + $0x60] sm:$0xff] %v519_v19  ;;  %v505_v24 = vadd.f32 %v489_v20, %v443_v14 }
  0x37   : > { %536 = vst [vmem:[%s964_s7 + $0x68] sm:$0xff] %v520_v21  ;;  %v506_v25 = vadd.f32 %v490_v23, %v444_v22 }
  0x38   : > { %v521_v26 = vmax.f32 %v505_v24, 0.0 }
  0x39   : > { %v522_v27 = vmax.f32 %v506_v25, 0.0 }
  0x3a   : > { %537 = vst [vmem:[%s964_s7 + $0x70] sm:$0xff] %v521_v26 }
  0x3b   : > { %538 = vst [vmem:[%s964_s7 + $0x78] sm:$0xff] %v522_v27 }
  0x3c PF: > { %s16_s25 = sadd.s32 1, %s838_s25   ;;  %s1062_s21 = smov %s830_s23 }
  0x3d   : > { %p13_p7 = scmp.ge.s32.totalorder %s16_s25, 6   ;;  %s1063_s22 = smov %s834_s24 }
  0x3e   : > { %s1064_s23 = smov %s1067_s26  ;;  %s1065_s24 = smov %s1071_s27 }
  0x3f   :  { %15 = sbr.rel (!%p13_p7) target bundleno = 3 (0x3), region = 77 }

// kernel: coblock_pallas.3
= control target key start
LH: loop header
LB: loop body
LE: loop exit
PB: predicated region body
PF: predicated region fallthrough
CT: control target
= control target key end

     0   :  { %s2943_s21 = smov 0   ;;  %s2945_s22 = smov 0   ;;  %s3815_s0 = inlined_call_operand.vmem [shape: bf16[2,16,16,4], index: 0, kind: input, shape index: {}]   ;;  %s3816_s1 = inlined_call_operand.vmem [shape: bf16[36,128], index: 1, kind: input, shape index: {}]   ;;  %s3817_s2 = inlined_call_operand.vmem [shape: bf16[4,128], index: 2, kind: input, shape index: {}]   ;;  %s3818_s3 = inlined_call_operand.vmem [shape: bf16[2,16,16,128], index: 3, kind: output, shape index: {0}]   ;;  %s3819_s4 = inlined_call_operand.vmem [shape: bf16[2,16,16,128], index: 4, kind: output, shape index: {1}]   ;;  %s3820_s5 = inlined_call_operand.vmem [shape: f32[2,2,2,128], index: 5, kind: output, shape index: {2}]   ;;  %s3821_s6 = inlined_call_operand.vmem [shape: f32[2,2,2,128], index: 6, kind: output, shape index: {3}]  }
   0x1   :  { %s2947_s23 = smov 0   ;;  %s2949_s24 = smov 0  }
   0x2   :  { %s2951_s25 = smov 0  }
   0x3 LB: > { %s26_s26 = sadd.s32 1, %s2889_s23  ;;  %s29_s27 = sadd.s32 1, %s2893_s24  ;;  %s2897_s25 = sphi %s2951_s25, %s17_s25   ;;  %s2893_s24 = sphi %s2949_s24, %s3841_s24   ;;  %s2889_s23 = sphi %s2947_s23, %s3840_s23   ;;  %s2885_s22 = sphi %s2945_s22, %s3839_s22   ;;  %s2881_s21 = sphi %s2943_s21, %s3838_s21  }
   0x4   : > { %p27_p0 = scmp.ge.s32.totalorder %s26_s26, 2  ;;  %p2496_p1 = scmp.ge.s32.totalorder %s2897_s25, 1 }
   0x5   : > { %p239_p2 = scmp.lt.s32.totalorder %s2897_s25, 5 }
   0x6   : > { %s3843_s26 = smov (%p27_p0, %s26_s26), 0  ;;  %s3845_s27 = smov (!%p27_p0, %s29_s27), %s2893_s24 }
   0x7   : > { %3822 = sst [smem:[#allocation4_spill]] %s3843_s26  ;;  %p240_p3 = pnand %p2496_p1, %p239_p2 }
   0x8   : > { %p31_p4 = scmp.ge.s32.totalorder %s3845_s27, 2  ;;  %p300_p5 = scmp.lt.s32.totalorder (!%p240_p3), %s2885_s22, 1 }
   0x9   : > { %243 = sbr.rel (%p240_p3) target bundleno = 622 (0x26e), region = 32  ;;  %s2499_s28 = sshll.u32 (!%p240_p3), %s2881_s21, 3 }
   0xa   : > { %s3847_s27 = smov (%p31_p4, %s3845_s27), 0  ;;  %p308_p6 = scmp.lt.s32.totalorder (!%p240_p3), %s2499_s28, 15 }
   0xb   : > { %3823 = sst [smem:[#allocation5_spill]] %s3847_s27  ;;  %p329_p7 = scmp.lt.s32.totalorder (!%p240_p3), %s2881_s21, 1 }
   0xc   : > { %p2511_p8 = scmp.ne.s32.totalorder (!%p240_p3), %s2881_s21, 0 }
  0x10   : > { %s3849_s22 = smov (!%p300_p5, %s2885_s22), 1  ;;  %s3851_s28 = smov (!%p308_p6, %s2499_s28), 15 }
  0x11   : > { %s2608_s29 = sshll.u32 %s3849_s22, 7  ;;  %s2501_s30 = sshll.u32 %s3849_s22, 5  ;;  %vm348_vm0 = vcmask (!%p2511_p8), 27648   ;;  %vm351_vm1 = vcmask (!%p2511_p8), 24576   ;;  %vm358_vm2 = vsmask.f32 (!%p2511_p8), 256 }
  0x12   : > { %s2980_s9 = scalar_lea.vmem %s3815_s0, %s2608_s29  ;;  %s2500_s10 = sshll.u32 %s3851_s28, 1  ;;  %v2899_v0 = vmov (!%p2511_p8), 0   ;;  %vm3011_vm3 = vmand (!%p2511_p8), %vm351_vm1, %vm358_vm2  ;;  %vm414_vm4 = vsmask.f32 (!%p2511_p8), 7938  ;;  %v363_v2 = vld [vmem:[#allocation2 + $0xc] sm:$0x1] (!%p2511_p8) }
  0x13   : > { %s312_s11 = sadd.s32 %s2501_s30, %s2500_s10  ;;  %s2507_s13 = sshll.u32 %s3849_s22, 1  ;;  %349 = vst.msk [vmem:[#allocation2] sm:$0xf] (!%p2511_p8), %vm348_vm0, %v2899_v0  ;;  %350 = vst.msk [vmem:[#allocation2 + $0x4] sm:$0xf] (!%p2511_p8), %vm348_vm0, %v2899_v0  ;;  %v364_v4 = vsel (!%p2511_p8), %vm3011_vm3, 0, %v363_v2 }
  0x14   : > { %s2502_s12 = sshll.u32 %s312_s11, 2  ;;  %347 = sbr.rel (%p2511_p8) target bundleno = 118 (0x76), region = 36  ;;  %354 = vst.msk [vmem:[#allocation2 + $0xcc] sm:$0xf] (!%p2511_p8), %vm348_vm0, %v2899_v0  ;;  %355 = vst.msk [vmem:[#allocation2 + $0xd0] sm:$0xf] (!%p2511_p8), %vm348_vm0, %v2899_v0 }
  0x15   : > { %s2985_s16 = scalar_lea.vmem %s3818_s3, %s2502_s12  ;;  %s2990_s19 = scalar_lea.vmem %s3819_s4, %s2502_s12  ;;  %352 = vst.msk [vmem:[#allocation2 + $0x8] sm:$0x1] (!%p2511_p8), %vm351_vm1, %v2899_v0  ;;  %356 = vst.msk [vmem:[#allocation2 + $0xd4] sm:$0x1] (!%p2511_p8), %vm351_vm1, %v2899_v0  ;;  %v366_v3 = vld [vmem:[#allocation2 + $0x18] sm:$0x1] (!%p2511_p8) }
  0x16   : > { %s330_s20 = scalar_select %p329_p7, %s2881_s21, 1 }
  0x17   : > { %v367_v5 = vsel (!%p2511_p8), %vm3011_vm3, 0, %v366_v3  ;;  %v369_v6 = vld [vmem:[#allocation2 + $0x24] sm:$0x1] (!%p2511_p8)  ;;  %v372_v7 = vld [vmem:[#allocation2 + $0x30] sm:$0x1] (!%p2511_p8)  ;;  %vm3038_vm5 = vmand (!%p2511_p8), %vm351_vm1, %vm414_vm4 }
  0x18   : > { %s332_s27 = sadd.s32 %s2507_s13, %s330_s20  ;;  %365 = vst [vmem:[#allocation2 + $0xc] sm:$0x1] (!%p2511_p8), %v364_v4  ;;  %368 = vst [vmem:[#allocation2 + $0x18] sm:$0x1] (!%p2511_p8), %v367_v5  ;;  %v370_v8 = vsel (!%p2511_p8), %vm3011_vm3, 0, %v369_v6  ;;  %v373_v9 = vsel (!%p2511_p8), %vm3011_vm3, 0, %v372_v7 }
  0x19   : > { %s2508_s26 = sshll.u32 %s332_s27, 1  ;;  %v375_v10 = vld [vmem:[#allocation2 + $0x3c] sm:$0x1] (!%p2511_p8)  ;;  %v378_v11 = vld [vmem:[#allocation2 + $0x48] sm:$0x1] (!%p2511_p8)  ;;  %vm3099_vm7 = vmand (!%p2511_p8), %vm348_vm0, %vm414_vm4 }
  0x1a   : > { %s2996_s28 = scalar_lea.vmem %s3820_s5, %s2508_s26  ;;  %s3001_s8 = scalar_lea.vmem %s3821_s6, %s2508_s26  ;;  %371 = vst [vmem:[#allocation2 + $0x24] sm:$0x1] (!%p2511_p8), %v370_v8  ;;  %374 = vst [vmem:[#allocation2 + $0x30] sm:$0x1] (!%p2511_p8), %v373_v9  ;;  %v376_v12 = vsel (!%p2511_p8), %vm3011_vm3, 0, %v375_v10  ;;  %v379_v13 = vsel (!%p2511_p8), %vm3011_vm3, 0, %v378_v11 }
  0x1b   : > { %v381_v14 = vld [vmem:[#allocation2 + $0x54] sm:$0x1]  ;;  %v384_v15 = vld [vmem:[#allocation2 + $0x60] sm:$0x1]  ;;  %377 = vst [vmem:[#allocation2 + $0x3c] sm:$0x1] %v376_v12 }
  0x1c   : > { %380 = vst [vmem:[#allocation2 + $0x48] sm:$0x1] %v379_v13  ;;  %v382_v16 = vsel %vm3011_vm3, 0, %v381_v14  ;;  %v385_v17 = vsel %vm3011_vm3, 0, %v384_v15  ;;  %v387_v18 = vld [vmem:[#allocation2 + $0x6c] sm:$0x1] }
  0x1d   : > { %v390_v19 = vld [vmem:[#allocation2 + $0x78] sm:$0x1]  ;;  %383 = vst [vmem:[#allocation2 + $0x54] sm:$0x1] %v382_v16  ;;  %386 = vst [vmem:[#allocation2 + $0x60] sm:$0x1] %v385_v17 }
  0x1e   : > { %v388_v20 = vsel %vm3011_vm3, 0, %v387_v18  ;;  %v391_v21 = vsel %vm3011_vm3, 0, %v390_v19  ;;  %v393_v22 = vld [vmem:[#allocation2 + $0x84] sm:$0x1]  ;;  %v396_v23 = vld [vmem:[#allocation2 + $0x90] sm:$0x1] }
  0x1f   : > { %389 = vst [vmem:[#allocation2 + $0x6c] sm:$0x1] %v388_v20  ;;  %392 = vst [vmem:[#allocation2 + $0x78] sm:$0x1] %v391_v21  ;;  %v394_v25 = vsel %vm3011_vm3, 0, %v393_v22  ;;  %v397_v26 = vsel %vm3011_vm3, 0, %v396_v23 }
  0x20   : > { %v399_v27 = vld [vmem:[#allocation2 + $0x9c] sm:$0x1]  ;;  %v402_v28 = vld [vmem:[#allocation2 + $0xa8] sm:$0x1]  ;;  %395 = vst [vmem:[#allocation2 + $0x84] sm:$0x1] %v394_v25 }
  0x21   : > { %398 = vst [vmem:[#allocation2 + $0x90] sm:$0x1] %v397_v26  ;;  %v400_v29 = vsel %vm3011_vm3, 0, %v399_v27  ;;  %v403_v30 = vsel %vm3011_vm3, 0, %v402_v28  ;;  %v405_v31 = vld [vmem:[#allocation2 + $0xb4] sm:$0x1] }
  0x22   : > { %v408_v32 = vld [vmem:[#allocation2 + $0xc0] sm:$0x1]  ;;  %401 = vst [vmem:[#allocation2 + $0x9c] sm:$0x1] %v400_v29  ;;  %404 = vst [vmem:[#allocation2 + $0xa8] sm:$0x1] %v403_v30 }
  0x23   : > { %v406_v33 = vsel %vm3011_vm3, 0, %v405_v31  ;;  %v409_v34 = vsel %vm3011_vm3, 0, %v408_v32  ;;  %v419_v35 = vld [vmem:[#allocation2 + $0x14] sm:$0x1]  ;;  %v422_v36 = vld [vmem:[#allocation2 + $0x20] sm:$0x1] }
  0x24   : > { %407 = vst [vmem:[#allocation2 + $0xb4] sm:$0x1] %v406_v33  ;;  %410 = vst [vmem:[#allocation2 + $0xc0] sm:$0x1] %v409_v34  ;;  %v420_v37 = vsel %vm3038_vm5, 0, %v419_v35  ;;  %v423_v38 = vsel %vm3038_vm5, 0, %v422_v36 }
  0x25   : > { %v425_v39 = vld [vmem:[#allocation2 + $0x2c] sm:$0x1]  ;;  %v428_v40 = vld [vmem:[#allocation2 + $0x38] sm:$0x1]  ;;  %421 = vst [vmem:[#allocation2 + $0x14] sm:$0x1] %v420_v37 }
  0x26   : > { %424 = vst [vmem:[#allocation2 + $0x20] sm:$0x1] %v423_v38  ;;  %v426_v41 = vsel %vm3038_vm5, 0, %v425_v39  ;;  %v429_v42 = vsel %vm3038_vm5, 0, %v428_v40  ;;  %v431_v43 = vld [vmem:[#allocation2 + $0x44] sm:$0x1] }
  0x27   : > { %v434_v44 = vld [vmem:[#allocation2 + $0x50] sm:$0x1]  ;;  %427 = vst [vmem:[#allocation2 + $0x2c] sm:$0x1] %v426_v41  ;;  %430 = vst [vmem:[#allocation2 + $0x38] sm:$0x1] %v429_v42 }
  0x28   : > { %v432_v45 = vsel %vm3038_vm5, 0, %v431_v43  ;;  %v435_v46 = vsel %vm3038_vm5, 0, %v434_v44  ;;  %v437_v47 = vld [vmem:[#allocation2 + $0x5c] sm:$0x1]  ;;  %v440_v48 = vld [vmem:[#allocation2 + $0x68] sm:$0x1] }
  0x29   : > { %433 = vst [vmem:[#allocation2 + $0x44] sm:$0x1] %v432_v45  ;;  %436 = vst [vmem:[#allocation2 + $0x50] sm:$0x1] %v435_v46  ;;  %v438_v49 = vsel %vm3038_vm5, 0, %v437_v47  ;;  %v441_v50 = vsel %vm3038_vm5, 0, %v440_v48 }
  0x2a   : > { %v443_v51 = vld [vmem:[#allocation2 + $0x74] sm:$0x1]  ;;  %v446_v52 = vld [vmem:[#allocation2 + $0x80] sm:$0x1]  ;;  %439 = vst [vmem:[#allocation2 + $0x5c] sm:$0x1] %v438_v49 }
  0x2b   : > { %442 = vst [vmem:[#allocation2 + $0x68] sm:$0x1] %v441_v50  ;;  %v444_v53 = vsel %vm3038_vm5, 0, %v443_v51  ;;  %v447_v54 = vsel %vm3038_vm5, 0, %v446_v52  ;;  %v449_v55 = vld [vmem:[#allocation2 + $0x8c] sm:$0x1] }
  0x2c   : > { %v452_v56 = vld [vmem:[#allocation2 + $0x98] sm:$0x1]  ;;  %445 = vst [vmem:[#allocation2 + $0x74] sm:$0x1] %v444_v53  ;;  %448 = vst [vmem:[#allocation2 + $0x80] sm:$0x1] %v447_v54 }
  0x2d   : > { %v450_v57 = vsel %vm3038_vm5, 0, %v449_v55  ;;  %v453_v58 = vsel %vm3038_vm5, 0, %v452_v56  ;;  %v455_v59 = vld [vmem:[#allocation2 + $0xa4] sm:$0x1]  ;;  %v458_v60 = vld [vmem:[#allocation2 + $0xb0] sm:$0x1] }
  0x2e   : > { %451 = vst [vmem:[#allocation2 + $0x8c] sm:$0x1] %v450_v57  ;;  %454 = vst [vmem:[#allocation2 + $0x98] sm:$0x1] %v453_v58  ;;  %v456_v61 = vsel %vm3038_vm5, 0, %v455_v59  ;;  %v459_v62 = vsel %vm3038_vm5, 0, %v458_v60 }
  0x2f   : > { %v461_v63 = vld [vmem:[#allocation2 + $0xbc] sm:$0x1]  ;;  %v464_v0 = vld [vmem:[#allocation2 + $0xc8] sm:$0x1]  ;;  %457 = vst [vmem:[#allocation2 + $0xa4] sm:$0x1] %v456_v61 }
  0x30   : > { %460 = vst [vmem:[#allocation2 + $0xb0] sm:$0x1] %v459_v62  ;;  %v462_v2 = vsel %vm3038_vm5, 0, %v461_v63  ;;  %v465_v3 = vsel %vm3038_vm5, 0, %v464_v0  ;;  %v360_v4 = vld [vmem:[#allocation2] sm:$0x1] }
  0x31   : > { %v411_v5 = vld [vmem:[#allocation2 + $0xcc] sm:$0x1]  ;;  %463 = vst [vmem:[#allocation2 + $0xbc] sm:$0x1] %v462_v2  ;;  %466 = vst [vmem:[#allocation2 + $0xc8] sm:$0x1] %v465_v3 }
  0x32   : > { %v361_v6 = vsel %vm3011_vm3, 0, %v360_v4  ;;  %v412_v7 = vsel %vm3011_vm3, 0, %v411_v5  ;;  %v416_v8 = vld [vmem:[#allocation2 + $0x8] sm:$0x1]  ;;  %v467_v9 = vld [vmem:[#allocation2 + $0xd4] sm:$0x1] }
  0x33   : > { %362 = vst [vmem:[#allocation2] sm:$0x1] %v361_v6  ;;  %413 = vst [vmem:[#allocation2 + $0xcc] sm:$0x1] %v412_v7  ;;  %v417_v10 = vsel %vm3038_vm5, 0, %v416_v8  ;;  %v468_v11 = vsel %vm3038_vm5, 0, %v467_v9 }
  0x34   : > { %v470_v12 = vld [vmem:[%s2980_s9] sm:$0xf]  ;;  %418 = vst [vmem:[#allocation2 + $0x8] sm:$0x1] %v417_v10  ;;  %469 = vst [vmem:[#allocation2 + $0xd4] sm:$0x1] %v468_v11 }
  0x35   : > { %v505_v13 = vshrl.u32 %v470_v12, 16  ;;  %v508_v14 = vshll.u32 %v470_v12, 16  ;;  %v471_v15 = vld [vmem:[%s2980_s9 + $0x4] sm:$0xf]  ;;  %vm502_vm6 = vsmask.f32 4368 }
  0x36   : > { %v513_v16 = vshrl.u32 %v471_v15, 16  ;;  %v516_v17 = vshll.u32 %v471_v15, 16  ;;  %v472_v18 = vld [vmem:[%s2980_s9 + $0x8] sm:$0xf]  ;;  %v827_v20 = vld [vmem:[#allocation2 + $0xc] sm:$0xf]  ;;  %vm3105_vm8 = vmor %vm358_vm2, %vm502_vm6 }
  0x37   : > { %v507_v19 = vrot.slane %v505_v13, 7  ;;  %v522_v21 = vshrl.u32 %v472_v18, 16  ;;  %v525_v22 = vshll.u32 %v472_v18, 16  ;;  %v831_v25 = vld [vmem:[#allocation2 + $0x14] sm:$0x1] }
  0x38   : > { %v515_v24 = vrot.slane %v513_v16, 7  ;;  %v473_v26 = vld [vmem:[%s2980_s9 + $0xc] sm:$0xf]  ;;  %v474_v32 = vld [vmem:[%s2980_s9 + $0x10] sm:$0xf] }
  0x39   : > { %v510_v27 = vor.u32 %v508_v14, %v507_v19  ;;  %v511_v29 = vrot.slane %v507_v19, 4  ;;  %v524_v30 = vrot.slane %v522_v21, 7  ;;  %v530_v31 = vshrl.u32 %v473_v26, 16  ;;  %v834_v35 = vld [vmem:[#allocation2 + $0x18] sm:$0xf] }
  0x3a   : > { %v518_v33 = vor.u32 %v516_v17, %v515_v24  ;;  %v520_v34 = vrot.slane %v515_v24, 4  ;;  %v533_v36 = vshll.u32 %v473_v26, 16  ;;  %v539_v37 = vshrl.u32 %v474_v32, 16  ;;  %v475_v42 = vld [vmem:[%s2980_s9 + $0x14] sm:$0xf] }
  0x3b   : > { %v828_v38 = vsel %vm3099_vm7, %v510_v27, %v827_v20  ;;  %v527_v39 = vor.u32 %v525_v22, %v524_v30  ;;  %v528_v40 = vrot.slane %v524_v30, 4  ;;  %v532_v41 = vrot.slane %v530_v31, 7  ;;  %v838_v45 = vld [vmem:[#allocation2 + $0x20] sm:$0x1]  ;;  %v476_v48 = vld [vmem:[%s2980_s9 + $0x18] sm:$0xf] }
  0x3c   : > { %829 = vst [vmem:[#allocation2 + $0xc] sm:$0xf] %v828_v38  ;;  %v519_v43 = vsel %vm3105_vm8, %v511_v29, %v518_v33  ;;  %v832_v44 = vsel %vm3011_vm3, %v520_v34, %v831_v25  ;;  %v541_v46 = vrot.slane %v539_v37, 7  ;;  %v542_v47 = vshll.u32 %v474_v32, 16  ;;  %v841_v52 = vld [vmem:[#allocation2 + $0x24] sm:$0xf] }
  0x3d   : > { %830 = vst.msk [vmem:[#allocation2 + $0x10] sm:$0xf] %vm348_vm0, %v519_v43  ;;  %833 = vst [vmem:[#allocation2 + $0x14] sm:$0x1] %v832_v44  ;;  %v835_v49 = vsel %vm3099_vm7, %v527_v39, %v834_v35  ;;  %v535_v50 = vor.u32 %v533_v36, %v532_v41  ;;  %v537_v51 = vrot.slane %v532_v41, 4  ;;  %v547_v53 = vshrl.u32 %v475_v42, 16 }
  0x3e   : > { %v477_v54 = vld [vmem:[%s2980_s9 + $0x1c] sm:$0xf]  ;;  %836 = vst [vmem:[#allocation2 + $0x18] sm:$0xf] %v835_v49  ;;  %v544_v55 = vor.u32 %v542_v47, %v541_v46  ;;  %v545_v56 = vrot.slane %v541_v46, 4  ;;  %v550_v57 = vshll.u32 %v475_v42, 16 }
  0x3f   : > { %v556_v58 = vshrl.u32 %v476_v48, 16  ;;  %v478_v59 = vld [vmem:[%s2980_s9 + $0x20] sm:$0xf]  ;;  %v536_v60 = vsel %vm3105_vm8, %v528_v40, %v535_v50  ;;  %v839_v61 = vsel %vm3011_vm3, %v537_v51, %v838_v45  ;;  %v549_v62 = vrot.slane %v547_v53, 7  ;;  %v479_v0 = vld [vmem:[%s2980_s9 + $0x24] sm:$0xf] }
  0x40   : > { %v559_v63 = vshll.u32 %v476_v48, 16  ;;  %837 = vst.msk [vmem:[#allocation2 + $0x1c] sm:$0xf] %vm348_vm0, %v536_v60  ;;  %840 = vst [vmem:[#allocation2 + $0x20] sm:$0x1] %v839_v61  ;;  %v842_v2 = vsel %vm3099_vm7, %v544_v55, %v841_v52  ;;  %v564_v5 = vshrl.u32 %v477_v54, 16 }
  0x41   : > { %v845_v3 = vld [vmem:[#allocation2 + $0x2c] sm:$0x1]  ;;  %v558_v4 = vrot.slane %v556_v58, 7  ;;  %v567_v6 = vshll.u32 %v477_v54, 16  ;;  %843 = vst [vmem:[#allocation2 + $0x24] sm:$0xf] %v842_v2  ;;  %v552_v7 = vor.u32 %v550_v57, %v549_v62 }
  0x42   : > { %v554_v8 = vrot.slane %v549_v62, 4  ;;  %v848_v9 = vld [vmem:[#allocation2 + $0x30] sm:$0xf]  ;;  %v573_v10 = vshrl.u32 %v478_v59, 16  ;;  %v576_v11 = vshll.u32 %v478_v59, 16  ;;  %v566_v14 = vrot.slane %v564_v5, 7 }
  0x43   : > { %v561_v12 = vor.u32 %v559_v63, %v558_v4  ;;  %v562_v13 = vrot.slane %v558_v4, 4  ;;  %v581_v15 = vshrl.u32 %v479_v0, 16  ;;  %v480_v16 = vld [vmem:[%s2980_s9 + $0x28] sm:$0xf]  ;;  %v553_v17 = vsel %vm3105_vm8, %v545_v56, %v552_v7  ;;  %v852_v19 = vld [vmem:[#allocation2 + $0x38] sm:$0x1] }
  0x44   : > { %v846_v18 = vsel %vm3011_vm3, %v554_v8, %v845_v3  ;;  %v575_v20 = vrot.slane %v573_v10, 7  ;;  %v855_v21 = vld [vmem:[#allocation2 + $0x3c] sm:$0xf]  ;;  %v584_v22 = vshll.u32 %v479_v0, 16  ;;  %844 = vst.msk [vmem:[#allocation2 + $0x28] sm:$0xf] %vm348_vm0, %v553_v17  ;;  %v569_v25 = vor.u32 %v567_v6, %v566_v14 }
  0x45   : > { %847 = vst [vmem:[#allocation2 + $0x2c] sm:$0x1] %v846_v18  ;;  %v849_v24 = vsel %vm3099_vm7, %v561_v12, %v848_v9  ;;  %v571_v26 = vrot.slane %v566_v14, 4  ;;  %v583_v27 = vrot.slane %v581_v15, 7  ;;  %v859_v29 = vld [vmem:[#allocation2 + $0x44] sm:$0x1] }
  0x46   : > { %v481_v30 = vld [vmem:[%s2980_s9 + $0x2c] sm:$0xf]  ;;  %850 = vst [vmem:[#allocation2 + $0x30] sm:$0xf] %v849_v24  ;;  %v578_v31 = vor.u32 %v576_v11, %v575_v20  ;;  %v579_v32 = vrot.slane %v575_v20, 4  ;;  %v590_v33 = vshrl.u32 %v480_v16, 16  ;;  %v570_v36 = vsel %vm3105_vm8, %v562_v13, %v569_v25 }
  0x47   : > { %v593_v34 = vshll.u32 %v480_v16, 16  ;;  %v482_v35 = vld [vmem:[%s2980_s9 + $0x30] sm:$0xf]  ;;  %v853_v37 = vsel %vm3011_vm3, %v571_v26, %v852_v19  ;;  %v586_v38 = vor.u32 %v584_v22, %v583_v27  ;;  %v588_v39 = vrot.slane %v583_v27, 4  ;;  %v483_v40 = vld [vmem:[%s2980_s9 + $0x34] sm:$0xf] }
  0x48   : > { %851 = vst.msk [vmem:[#allocation2 + $0x34] sm:$0xf] %vm348_vm0, %v570_v36  ;;  %854 = vst [vmem:[#allocation2 + $0x38] sm:$0x1] %v853_v37  ;;  %v856_v41 = vsel %vm3099_vm7, %v578_v31, %v855_v21  ;;  %v592_v42 = vrot.slane %v590_v33, 7  ;;  %v598_v43 = vshrl.u32 %v481_v30, 16 }
  0x49   : > { %v601_v44 = vshll.u32 %v481_v30, 16  ;;  %v484_v45 = vld [vmem:[%s2980_s9 + $0x38] sm:$0xf]  ;;  %857 = vst [vmem:[#allocation2 + $0x3c] sm:$0xf] %v856_v41  ;;  %v587_v46 = vsel %vm3105_vm8, %v579_v32, %v586_v38  ;;  %v860_v47 = vsel %vm3011_vm3, %v588_v39, %v859_v29  ;;  %v607_v49 = vshrl.u32 %v482_v35, 16 }
  0x4a   : > { %v862_v48 = vld [vmem:[#allocation2 + $0x48] sm:$0xf]  ;;  %v610_v50 = vshll.u32 %v482_v35, 16  ;;  %858 = vst.msk [vmem:[#allocation2 + $0x40] sm:$0xf] %vm348_vm0, %v587_v46  ;;  %v595_v51 = vor.u32 %v593_v34, %v592_v42  ;;  %v596_v52 = vrot.slane %v592_v42, 4 }
  0x4b   : > { %861 = vst [vmem:[#allocation2 + $0x44] sm:$0x1] %v860_v47  ;;  %v600_v53 = vrot.slane %v598_v43, 7  ;;  %v615_v54 = vshrl.u32 %v483_v40, 16  ;;  %v485_v55 = vld [vmem:[%s2980_s9 + $0x3c] sm:$0xf] }
  0x4c   : > { %v866_v56 = vld [vmem:[#allocation2 + $0x50] sm:$0x1]  ;;  %v609_v57 = vrot.slane %v607_v49, 7  ;;  %v618_v58 = vshll.u32 %v483_v40, 16  ;;  %v624_v59 = vshrl.u32 %v484_v45, 16  ;;  %v627_v60 = vshll.u32 %v484_v45, 16 }
  0x4d   : > { %v863_v61 = vsel %vm3099_vm7, %v595_v51, %v862_v48  ;;  %v603_v62 = vor.u32 %v601_v44, %v600_v53  ;;  %v605_v63 = vrot.slane %v600_v53, 4  ;;  %v869_v0 = vld [vmem:[#allocation2 + $0x54] sm:$0xf]  ;;  %v617_v2 = vrot.slane %v615_v54, 7  ;;  %v873_v3 = vld [vmem:[#allocation2 + $0x5c] sm:$0x1] }
  0x4e   : > { %864 = vst [vmem:[#allocation2 + $0x48] sm:$0xf] %v863_v61  ;;  %v612_v4 = vor.u32 %v610_v50, %v609_v57  ;;  %v613_v5 = vrot.slane %v609_v57, 4  ;;  %v626_v6 = vrot.slane %v624_v59, 7  ;;  %v632_v7 = vshrl.u32 %v485_v55, 16 }
  0x4f   : > { %v486_v8 = vld [vmem:[%s2980_s9 + $0x40] sm:$0xf]  ;;  %v604_v9 = vsel %vm3105_vm8, %v596_v52, %v603_v62  ;;  %v867_v10 = vsel %vm3011_vm3, %v605_v63, %v866_v56  ;;  %v620_v11 = vor.u32 %v618_v58, %v617_v2  ;;  %v622_v12 = vrot.slane %v617_v2, 4  ;;  %v487_v14 = vld [vmem:[%s2980_s9 + $0x44] sm:$0xf] }
  0x50   : > { %v876_v13 = vld [vmem:[#allocation2 + $0x60] sm:$0xf]  ;;  %865 = vst.msk [vmem:[#allocation2 + $0x4c] sm:$0xf] %vm348_vm0, %v604_v9  ;;  %868 = vst [vmem:[#allocation2 + $0x50] sm:$0x1] %v867_v10  ;;  %v870_v15 = vsel %vm3099_vm7, %v612_v4, %v869_v0  ;;  %v629_v16 = vor.u32 %v627_v60, %v626_v6 }
  0x51   : > { %v630_v17 = vrot.slane %v626_v6, 4  ;;  %v634_v18 = vrot.slane %v632_v7, 7  ;;  %v488_v19 = vld [vmem:[%s2980_s9 + $0x48] sm:$0xf]  ;;  %871 = vst [vmem:[#allocation2 + $0x54] sm:$0xf] %v870_v15  ;;  %v621_v20 = vsel %vm3105_vm8, %v613_v5, %v620_v11  ;;  %v874_v21 = vsel %vm3011_vm3, %v622_v12, %v873_v3 }
  0x52   : > { %v635_v22 = vshll.u32 %v485_v55, 16  ;;  %v880_v24 = vld [vmem:[#allocation2 + $0x68] sm:$0x1]  ;;  %v641_v25 = vshrl.u32 %v486_v8, 16  ;;  %v489_v26 = vld [vmem:[%s2980_s9 + $0x4c] sm:$0xf]  ;;  %v877_v27 = vsel %vm3099_vm7, %v629_v16, %v876_v13 }
  0x53   : > { %872 = vst.msk [vmem:[#allocation2 + $0x58] sm:$0xf] %vm348_vm0, %v621_v20  ;;  %875 = vst [vmem:[#allocation2 + $0x5c] sm:$0x1] %v874_v21  ;;  %v639_v29 = vrot.slane %v634_v18, 4  ;;  %v644_v30 = vshll.u32 %v486_v8, 16 }
  0x54   : > { %v649_v31 = vshrl.u32 %v487_v14, 16  ;;  %878 = vst [vmem:[#allocation2 + $0x60] sm:$0xf] %v877_v27  ;;  %v637_v32 = vor.u32 %v635_v22, %v634_v18  ;;  %v643_v33 = vrot.slane %v641_v25, 7  ;;  %v883_v34 = vld [vmem:[#allocation2 + $0x6c] sm:$0xf] }
  0x55   : > { %v652_v35 = vshll.u32 %v487_v14, 16  ;;  %v658_v36 = vshrl.u32 %v488_v19, 16  ;;  %v881_v37 = vsel %vm3011_vm3, %v639_v29, %v880_v24  ;;  %v661_v39 = vshll.u32 %v488_v19, 16  ;;  %v490_v41 = vld [vmem:[%s2980_s9 + $0x50] sm:$0xf] }
  0x56   : > { %v651_v38 = vrot.slane %v649_v31, 7  ;;  %v666_v40 = vshrl.u32 %v489_v26, 16  ;;  %v638_v42 = vsel %vm3105_vm8, %v630_v17, %v637_v32  ;;  %882 = vst [vmem:[#allocation2 + $0x68] sm:$0x1] %v881_v37  ;;  %v646_v43 = vor.u32 %v644_v30, %v643_v33  ;;  %v887_v45 = vld [vmem:[#allocation2 + $0x74] sm:$0x1] }
  0x57   : > { %v647_v44 = vrot.slane %v643_v33, 4  ;;  %v660_v46 = vrot.slane %v658_v36, 7  ;;  %v890_v47 = vld [vmem:[#allocation2 + $0x78] sm:$0xf]  ;;  %879 = vst.msk [vmem:[#allocation2 + $0x64] sm:$0xf] %vm348_vm0, %v638_v42 }
  0x58   : > { %v654_v48 = vor.u32 %v652_v35, %v651_v38  ;;  %v656_v49 = vrot.slane %v651_v38, 4  ;;  %v668_v50 = vrot.slane %v666_v40, 7  ;;  %v669_v51 = vshll.u32 %v489_v26, 16  ;;  %v491_v52 = vld [vmem:[%s2980_s9 + $0x54] sm:$0xf] }
  0x59   : > { %v884_v53 = vsel %vm3099_vm7, %v646_v43, %v883_v34  ;;  %v663_v54 = vor.u32 %v661_v39, %v660_v46  ;;  %v664_v55 = vrot.slane %v660_v46, 4  ;;  %v894_v56 = vld [vmem:[#allocation2 + $0x80] sm:$0x1]  ;;  %v675_v57 = vshrl.u32 %v490_v41, 16  ;;  %v492_v58 = vld [vmem:[%s2980_s9 + $0x58] sm:$0xf] }
  0x5a   : > { %885 = vst [vmem:[#allocation2 + $0x6c] sm:$0xf] %v884_v53  ;;  %v655_v59 = vsel %vm3105_vm8, %v647_v44, %v654_v48  ;;  %v888_v60 = vsel %vm3011_vm3, %v656_v49, %v887_v45  ;;  %v671_v61 = vor.u32 %v669_v51, %v668_v50  ;;  %v673_v62 = vrot.slane %v668_v50, 4  ;;  %v493_v63 = vld [vmem:[%s2980_s9 + $0x5c] sm:$0xf] }
  0x5b   : > { %886 = vst.msk [vmem:[#allocation2 + $0x70] sm:$0xf] %vm348_vm0, %v655_v59  ;;  %889 = vst [vmem:[#allocation2 + $0x74] sm:$0x1] %v888_v60  ;;  %v891_v0 = vsel %vm3099_vm7, %v663_v54, %v890_v47  ;;  %v677_v2 = vrot.slane %v675_v57, 7  ;;  %v678_v3 = vshll.u32 %v490_v41, 16 }
  0x5c   : > { %v683_v4 = vshrl.u32 %v491_v52, 16  ;;  %v494_v5 = vld [vmem:[%s2980_s9 + $0x60] sm:$0xf]  ;;  %892 = vst [vmem:[#allocation2 + $0x78] sm:$0xf] %v891_v0  ;;  %v672_v6 = vsel %vm3105_vm8, %v664_v55, %v671_v61  ;;  %v895_v7 = vsel %vm3011_vm3, %v673_v62, %v894_v56  ;;  %v686_v9 = vshll.u32 %v491_v52, 16 }
  0x5d   : > { %v897_v8 = vld [vmem:[#allocation2 + $0x84] sm:$0xf]  ;;  %v692_v10 = vshrl.u32 %v492_v58, 16  ;;  %893 = vst.msk [vmem:[#allocation2 + $0x7c] sm:$0xf] %vm348_vm0, %v672_v6  ;;  %v680_v11 = vor.u32 %v678_v3, %v677_v2  ;;  %v681_v12 = vrot.slane %v677_v2, 4 }
  0x5e   : > { %896 = vst [vmem:[#allocation2 + $0x80] sm:$0x1] %v895_v7  ;;  %v685_v13 = vrot.slane %v683_v4, 7  ;;  %v901_v14 = vld [vmem:[#allocation2 + $0x8c] sm:$0x1]  ;;  %v695_v15 = vshll.u32 %v492_v58, 16 }
  0x5f   : > { %v694_v16 = vrot.slane %v692_v10, 7  ;;  %v700_v17 = vshrl.u32 %v493_v63, 16  ;;  %v703_v18 = vshll.u32 %v493_v63, 16  ;;  %v709_v19 = vshrl.u32 %v494_v5, 16  ;;  %v495_v20 = vld [vmem:[%s2980_s9 + $0x64] sm:$0xf] }
  0x60   : > { %v898_v21 = vsel %vm3099_vm7, %v680_v11, %v897_v8  ;;  %v688_v22 = vor.u32 %v686_v9, %v685_v13  ;;  %v690_v24 = vrot.slane %v685_v13, 4  ;;  %v904_v25 = vld [vmem:[#allocation2 + $0x90] sm:$0xf]  ;;  %v908_v26 = vld [vmem:[#allocation2 + $0x98] sm:$0x1]  ;;  %v712_v27 = vshll.u32 %v494_v5, 16 }
  0x61   : > { %899 = vst [vmem:[#allocation2 + $0x84] sm:$0xf] %v898_v21  ;;  %v697_v29 = vor.u32 %v695_v15, %v694_v16  ;;  %v698_v30 = vrot.slane %v694_v16, 4  ;;  %v702_v31 = vrot.slane %v700_v17, 7  ;;  %v711_v32 = vrot.slane %v709_v19, 7 }
  0x62   : > { %v496_v33 = vld [vmem:[%s2980_s9 + $0x68] sm:$0xf]  ;;  %v689_v34 = vsel %vm3105_vm8, %v681_v12, %v688_v22  ;;  %v902_v35 = vsel %vm3011_vm3, %v690_v24, %v901_v14  ;;  %v911_v36 = vld [vmem:[#allocation2 + $0x9c] sm:$0xf]  ;;  %v717_v37 = vshrl.u32 %v495_v20, 16  ;;  %v720_v38 = vshll.u32 %v495_v20, 16 }
  0x63   : > { %v497_v39 = vld [vmem:[%s2980_s9 + $0x6c] sm:$0xf]  ;;  %900 = vst.msk [vmem:[#allocation2 + $0x88] sm:$0xf] %vm348_vm0, %v689_v34  ;;  %903 = vst [vmem:[#allocation2 + $0x8c] sm:$0x1] %v902_v35  ;;  %v905_v40 = vsel %vm3099_vm7, %v697_v29, %v904_v25  ;;  %v705_v41 = vor.u32 %v703_v18, %v702_v31  ;;  %v714_v43 = vor.u32 %v712_v27, %v711_v32 }
  0x64   : > { %v707_v42 = vrot.slane %v702_v31, 4  ;;  %v498_v44 = vld [vmem:[%s2980_s9 + $0x70] sm:$0xf]  ;;  %906 = vst [vmem:[#allocation2 + $0x90] sm:$0xf] %v905_v40  ;;  %v715_v45 = vrot.slane %v711_v32, 4 }
  0x65   : > { %v719_v46 = vrot.slane %v717_v37, 7  ;;  %v726_v47 = vshrl.u32 %v496_v33, 16  ;;  %v729_v48 = vshll.u32 %v496_v33, 16  ;;  %v499_v49 = vld [vmem:[%s2980_s9 + $0x74] sm:$0xf]  ;;  %v706_v50 = vsel %vm3105_vm8, %v698_v30, %v705_v41 }
  0x66   : > { %v909_v51 = vsel %vm3011_vm3, %v707_v42, %v908_v26  ;;  %v912_v52 = vsel %vm3099_vm7, %v714_v43, %v911_v36  ;;  %v915_v53 = vld [vmem:[#allocation2 + $0xa4] sm:$0x1]  ;;  %v734_v54 = vshrl.u32 %v497_v39, 16  ;;  %907 = vst.msk [vmem:[#allocation2 + $0x94] sm:$0xf] %vm348_vm0, %v706_v50  ;;  %v737_v59 = vshll.u32 %v497_v39, 16 }
  0x67   : > { %910 = vst [vmem:[#allocation2 + $0x98] sm:$0x1] %v909_v51  ;;  %913 = vst [vmem:[#allocation2 + $0x9c] sm:$0xf] %v912_v52  ;;  %v722_v55 = vor.u32 %v720_v38, %v719_v46  ;;  %v724_v56 = vrot.slane %v719_v46, 4  ;;  %v728_v57 = vrot.slane %v726_v47, 7 }
  0x68   : > { %v918_v58 = vld [vmem:[#allocation2 + $0xa8] sm:$0xf]  ;;  %v736_v60 = vrot.slane %v734_v54, 7  ;;  %v743_v61 = vshrl.u32 %v498_v44, 16  ;;  %v746_v62 = vshll.u32 %v498_v44, 16  ;;  %v751_v63 = vshrl.u32 %v499_v49, 16 }
  0x69   : > { %v500_v0 = vld [vmem:[%s2980_s9 + $0x78] sm:$0xf]  ;;  %v723_v2 = vsel %vm3105_vm8, %v715_v45, %v722_v55  ;;  %v916_v3 = vsel %vm3011_vm3, %v724_v56, %v915_v53  ;;  %v731_v4 = vor.u32 %v729_v48, %v728_v57  ;;  %v732_v5 = vrot.slane %v728_v57, 4  ;;  %v922_v6 = vld [vmem:[#allocation2 + $0xb0] sm:$0x1] }
  0x6a   : > { %914 = vst.msk [vmem:[#allocation2 + $0xa0] sm:$0xf] %vm348_vm0, %v723_v2  ;;  %917 = vst [vmem:[#allocation2 + $0xa4] sm:$0x1] %v916_v3  ;;  %v739_v7 = vor.u32 %v737_v59, %v736_v60  ;;  %v741_v8 = vrot.slane %v736_v60, 4  ;;  %v745_v9 = vrot.slane %v743_v61, 7 }
  0x6b   : > { %v753_v10 = vrot.slane %v751_v63, 7  ;;  %v501_v11 = vld [vmem:[%s2980_s9 + $0x7c] sm:$0xf]  ;;  %v919_v12 = vsel %vm3099_vm7, %v731_v4, %v918_v58  ;;  %v925_v13 = vld [vmem:[#allocation2 + $0xb4] sm:$0xf]  ;;  %v754_v14 = vshll.u32 %v499_v49, 16 }
  0x6c   : > { %v760_v15 = vshrl.u32 %v500_v0, 16  ;;  %v763_v16 = vshll.u32 %v500_v0, 16  ;;  %920 = vst [vmem:[#allocation2 + $0xa8] sm:$0xf] %v919_v12  ;;  %v740_v17 = vsel %vm3105_vm8, %v732_v5, %v739_v7  ;;  %v923_v18 = vsel %vm3011_vm3, %v741_v8, %v922_v6  ;;  %v929_v21 = vld [vmem:[#allocation2 + $0xbc] sm:$0x1] }
  0x6d   : > { %v748_v19 = vor.u32 %v746_v62, %v745_v9  ;;  %v749_v20 = vrot.slane %v745_v9, 4  ;;  %921 = vst.msk [vmem:[#allocation2 + $0xac] sm:$0xf] %vm348_vm0, %v740_v17  ;;  %924 = vst [vmem:[#allocation2 + $0xb0] sm:$0x1] %v923_v18  ;;  %v756_v22 = vor.u32 %v754_v14, %v753_v10  ;;  %v758_v24 = vrot.slane %v753_v10, 4 }
  0x6e   : > { %v762_v25 = vrot.slane %v760_v15, 7  ;;  %v768_v26 = vshrl.u32 %v501_v11, 16  ;;  %v932_v29 = vld [vmem:[#allocation2 + $0xc0] sm:$0xf]  ;;  %v771_v30 = vshll.u32 %v501_v11, 16 }
  0x6f   : > { %v926_v27 = vsel %vm3099_vm7, %v748_v19, %v925_v13  ;;  %v757_v31 = vsel %vm3105_vm8, %v749_v20, %v756_v22  ;;  %v930_v32 = vsel %vm3011_vm3, %v758_v24, %v929_v21  ;;  %v936_v37 = vld [vmem:[#allocation2 + $0xc8] sm:$0x1] }
  0x70   : > { %927 = vst [vmem:[#allocation2 + $0xb4] sm:$0xf] %v926_v27  ;;  %v765_v33 = vor.u32 %v763_v16, %v762_v25  ;;  %928 = vst.msk [vmem:[#allocation2 + $0xb8] sm:$0xf] %vm348_vm0, %v757_v31  ;;  %v766_v34 = vrot.slane %v762_v25, 4  ;;  %v770_v35 = vrot.slane %v768_v26, 7 }
  0x71   : > { %931 = vst [vmem:[#allocation2 + $0xbc] sm:$0x1] %v930_v32 }
  0x72   : > { %v933_v36 = vsel %vm3099_vm7, %v765_v33, %v932_v29  ;;  %v773_v38 = vor.u32 %v771_v30, %v770_v35  ;;  %v775_v39 = vrot.slane %v770_v35, 4 }
  0x73   : > { %934 = vst [vmem:[#allocation2 + $0xc0] sm:$0xf] %v933_v36 }
  0x74   : > { %v774_v40 = vsel %vm3105_vm8, %v766_v34, %v773_v38  ;;  %v937_v41 = vsel %vm3011_vm3, %v775_v39, %v936_v37 }
  0x75   : > { %935 = vst.msk [vmem:[#allocation2 + $0xc4] sm:$0xf] %vm348_vm0, %v774_v40  ;;  %938 = vst [vmem:[#allocation2 + $0xc8] sm:$0x1] %v937_v41 }
  0x76 PF: > { %s2609_s26 = smul.u32 96, %s2881_s21  ;;  %vm1021_vm9 = vcmask 31744   ;;  %vm1290_vm10 = vcmask 1042432   ;;  %vm1030_vm11 = vsmask.f32 3328  ;;  %vm1291_vm13 = vcmask 1046532  }
  0x77   : > { %vm1031_vm12 = vsmask.f32 7440  ;;  %s2900_s21 = smov 12   ;;  %vm3299_vm14 = vmor %vm1290_vm10, %vm1291_vm13  ;;  %s2901_s9 = smov 8   ;;  %vm1743_vm0 = vcmask 1041408   ;;  %vm1273_vm1 = vcmask 64544  }
  0x78   : > { %s3250_s27 = scalar_lea.vmem [#allocation2], %s2609_s26  ;;  %vm3310_vm15 = vmor %vm1030_vm11, %vm1031_vm12  ;;  %s2902_s10 = smov 4   ;;  %v1844_v6 = vld [vmem:[%s3817_s2] sm:$0x3]  ;;  %vm1397_vm2 = vcmask 97344   ;;  %vm1435_vm3 = vcmask 130144  }
  0x79   : > { %s2903_s11 = smov 16   ;;  %s2904_s12 = smov 20   ;;  %2797 = vmatprep.subr.msk.bf16.mxu1 %vm1743_vm0, %v1844_v6  ;;  %v1870_v21 = vsel %vm1743_vm0, %v1844_v6, 0  ;;  %vm1495_vm4 = vcmask 162944   ;;  %vm1539_vm5 = vcmask 195744   ;;  %vm1577_vm6 = vcmask 228544  }
  0x7a   : > { %s2905_s15 = smov 24   ;;  %s2906_s20 = smov 28   ;;  %2779 = vmatpush3.bf16.msra.mxu1 %v1870_v21  ;;  %vm1637_vm7 = vcmask 261344   ;;  %vm1681_vm8 = vcmask 294144   ;;  %vm2027_vm10 = vcmask 1040384  }
  0x7b   : > { %s2907_s7 = smov 32  }
  0x7c   : > { %v3253_v1 = vld [vmem:[%s3250_s27 + $0xc] sm:$0xf]  ;;  %v3256_v23 = vld [vmem:[%s3250_s27 + $0x10] sm:$0xf]  ;;  %v3259_v28 = vld [vmem:[%s3250_s27 + $0x18] sm:$0xf] }
  0x7d   : > { %v2516_v42 = vcombine.low %v3253_v1, %v3256_v23  ;;  %v1058_v43 = vshrl.u32 %v3253_v1, 16  ;;  %v1061_v44 = vshll.u32 %v3253_v1, 16  ;;  %v1067_v45 = vshll.u32 %v3256_v23, 16  ;;  %v3267_v46 = vld [vmem:[%s3250_s27 + $0x1c] sm:$0xf] }
  0x7e   : > { %v1071_v47 = vshrl.u32 %v3256_v23, 16  ;;  %v3272_v48 = vcombine.low %v3259_v28, %v3267_v46  ;;  %v1082_v49 = vshrl.u32 %v3259_v28, 16  ;;  %v1085_v50 = vshll.u32 %v3259_v28, 16  ;;  %v3277_v51 = vld [vmem:[%s3250_s27] sm:$0xf] }
  0x7f   : > { %v1060_v52 = vrot.slane %v1058_v43, 4  ;;  %v1063_v53 = vrot.slane %v1061_v44, 5  ;;  %1411 = vrot.lane.b32.xlu0 %v2516_v42, %s2900_s21  ;;  %1023 = vst.msk [vmem:[#allocation3 + $0x8] sm:$0xff] %vm1021_vm9, %v2516_v42  ;;  %v1091_v54 = vshll.u32 %v3267_v46, 16  ;;  %v1095_v55 = vshrl.u32 %v3267_v46, 16 }
  0x80   : > { %v3284_v56 = vld [vmem:[%s3250_s27 + $0x4] sm:$0xf]  ;;  %v1073_v57 = vrot.slane %v1071_v47, 4  ;;  %v1084_v58 = vrot.slane %v1082_v49, 4  ;;  %v1087_v59 = vrot.slane %v1085_v50, 5  ;;  %1413 = vrot.lane.b32.xlu1 %v3272_v48, %s2900_s21  ;;  %1024 = vst.msk [vmem:[#allocation3 + $0x10] sm:$0xff] %vm1021_vm9, %v3272_v48 }
  0x81   : > { %v945_v60 = vld [vmem:[%s3250_s27 + $0x8] sm:$0x1]  ;;  %v1034_v61 = vshrl.u32 %v3277_v51, 16  ;;  %v3292_v62 = vrot.slane %v1091_v54, 5  ;;  %v1097_v63 = vrot.slane %v1095_v55, 4  ;;  %v1037_v0 = vshll.u32 %v3277_v51, 16 }
  0x82   : > { %v1043_v2 = vshll.u32 %v3284_v56, 16  ;;  %v1047_v4 = vshrl.u32 %v3284_v56, 16  ;;  %v1053_v5 = vshll.u32 %v945_v60, 16  ;;  %v2531_v7 = vrot.slane %v3277_v51, 9  ;;  %v948_v8 = vld [vmem:[%s3250_s27 + $0x14] sm:$0x1] }
  0x83   : > { %v1036_v3 = vrot.slane %v1034_v61, 4  ;;  %v1039_v9 = vrot.slane %v1037_v0, 5  ;;  %v1295_v11 = vrot.slane %v3284_v56, 5  ;;  %v1298_v12 = vrot.slane %v945_v60, 5  ;;  %v951_v36 = vld [vmem:[%s3250_s27 + $0x20] sm:$0x1] }
  0x84   : > { %v1045_v10 = vrot.slane %v1043_v2, 5  ;;  %v1049_v13 = vrot.slane %v1047_v4, 4  ;;  %v1055_v14 = vrot.slane %v1053_v5, 5  ;;  %v1064_v15 = vor.u32 %v1063_v53, %v1060_v52  ;;  %v3334_v49 = vld [vmem:[%s3250_s27 + $0x24] sm:$0xf] }
  0x85   : > { %v1069_v16 = vrot.slane %v1067_v45, 5  ;;  %v1040_v17 = vor.u32 %v1039_v9, %v1036_v3  ;;  %v1296_v18 = vsel %vm3299_vm14, %v2531_v7, %v1295_v11  ;;  %v1297_v19 = vrot.slane %v1295_v11, 4  ;;  %v3337_v50 = vld [vmem:[%s3250_s27 + $0x28] sm:$0xf]  ;;  %v3358_v0 = vld [vmem:[%s3250_s27 + $0x2c] sm:$0x1] }
  0x86   : > { %v1077_v20 = vshll.u32 %v948_v8, 16  ;;  %v1050_v22 = vor.u32 %v1049_v13, %v1045_v10  ;;  %v1065_v24 = vrot.slane %v1064_v15, 4  ;;  %v2532_v26 = vrot.slane %v3253_v1, 9 }
  0x87   : > { %v1074_v25 = vor.u32 %v1073_v57, %v1069_v16  ;;  %v1041_v27 = vrot.slane %v1040_v17, 4  ;;  %v1299_v29 = vsel %vm3299_vm14, %v1297_v19, %v1298_v12  ;;  %v1302_v31 = vrot.slane %v3256_v23, 5 }
  0x88   : > { %v1079_v30 = vrot.slane %v1077_v20, 5  ;;  %v1051_v32 = vrot.slane %v1050_v22, 4  ;;  %v2539_v33 = vcombine.low %v1296_v18, %v1299_v29  ;;  %v1070_v34 = vsel %vm3310_vm15, %v1065_v24, %v1069_v16  ;;  %v3381_v16 = vld [vmem:[%s3250_s27 + $0x34] sm:$0xf]  ;;  %v3389_v22 = vld [vmem:[%s3250_s27 + $0x38] sm:$0x1] }
  0x89   : > { %v1075_v35 = vrot.slane %v1074_v25, 4  ;;  %v1046_v37 = vsel %vm3310_vm15, %v1041_v27, %v1045_v10  ;;  %v1303_v38 = vsel %vm3299_vm14, %v2532_v26, %v1302_v31  ;;  %v1304_v39 = vrot.slane %v1302_v31, 4  ;;  %v3370_v10 = vld [vmem:[%s3250_s27 + $0x30] sm:$0xf] }
  0x8a   : > { %v1305_v40 = vrot.slane %v948_v8, 5  ;;  %v1056_v41 = vsel %vm3310_vm15, %v1051_v32, %v1055_v14  ;;  %1373 = vrot.lane.b32.xlu1 %v2539_v33, %s2901_s9  ;;  %v1088_v23 = vor.u32 %v1087_v59, %v1084_v58  ;;  %v1098_v42 = vor.u32 %v1097_v63, %v3292_v62 }
  0x8b   : > { %v1080_v1 = vsel %vm3310_vm15, %v1075_v35, %v1079_v30  ;;  %v2523_v43 = vcombine.low %v1046_v37, %v1056_v41  ;;  %v1101_v47 = vshll.u32 %v951_v36, 16  ;;  %v2533_v55 = vrot.slane %v3259_v28, 9  ;;  %v3411_v41 = vld [vmem:[%s3250_s27 + $0x3c] sm:$0xf] }
  0x8c   : > { %v2524_v44 = vcombine.low %v1070_v34, %v1080_v1  ;;  %v1306_v45 = vsel %vm3299_vm14, %v1304_v39, %v1305_v40  ;;  %v1089_v53 = vrot.slane %v1088_v23, 4  ;;  %v1099_v54 = vrot.slane %v1098_v42, 4 }
  0x8d   : > { %v3339_v52 = vcombine.low %v1303_v38, %v1306_v45  ;;  %1249 = vrot.lane.b32.xlu0 %v2523_v43, %s2902_s10  ;;  %v1103_v57 = vrot.slane %v1101_v47, 5  ;;  %v1309_v58 = vrot.slane %v3267_v46, 5  ;;  %v1312_v59 = vrot.slane %v951_v36, 5  ;;  %v2856_v36 = vld [vmem:[%s3816_s1] sm:$0xff]  }
  0x8e   : > { %v3346_v60 = vcombine.low %v3334_v49, %v3337_v50  ;;  %2780 = vmatprep.mubr.msk.bf16.mxu1 %vm1021_vm9, %v2524_v44  ;;  %v1094_v28 = vsel %vm3310_vm15, %v1089_v53, %v3292_v62  ;;  %v1106_v61 = vshrl.u32 %v3334_v49, 16  ;;  %v1109_v63 = vshll.u32 %v3334_v49, 16  ;;  %2756 = vmatprep.subr.bf16.mxu0 %v2856_v36 }
  0x8f   : > { %1375 = vrot.lane.b32.xlu1 %v3339_v52, %s2901_s9  ;;  %v1115_v46 = vshll.u32 %v3337_v50, 16  ;;  %v1104_v2 = vsel %vm3310_vm15, %v1099_v54, %v1103_v57  ;;  %v1310_v3 = vsel %vm3299_vm14, %v2533_v55, %v1309_v58  ;;  %v1311_v4 = vrot.slane %v1309_v58, 4  ;;  %2757 = vmatpush3.bf16.msra.mxu0 %v2856_v36  ;;  %v2857_v57 = vld [vmem:[%s3816_s1 + $0x8] sm:$0xff]  }
  0x90   : > { %v1119_v5 = vshrl.u32 %v3337_v50, 16  ;;  %1025 = vst.msk [vmem:[#allocation3 + $0x18] sm:$0xff] %vm1021_vm9, %v3346_v60  ;;  %v3367_v62 = vcombine.low %v1094_v28, %v1104_v2  ;;  %v1108_v7 = vrot.slane %v1106_v61, 4  ;;  %v1111_v8 = vrot.slane %v1109_v63, 5  ;;  %2758 = vmatprep.subr.bf16.mxu0 %v2857_v57  ;;  %v961_v2 = vld [vmem:[%s3250_s27 + $0x48] sm:$0xf] }
  0x91   : > { %v1117_v9 = vrot.slane %v1115_v46, 5  ;;  %1251 = vrot.lane.b32.xlu0 %v2524_v44, %s2902_s10  ;;  %v1313_v11 = vsel %vm3299_vm14, %v1311_v4, %v1312_v59  ;;  %v1125_v13 = vshll.u32 %v3358_v0, 16  ;;  %v3385_v19 = vcombine.low %v3370_v10, %v3381_v16 }
  0x92   : > { %v1121_v12 = vrot.slane %v1119_v5, 4  ;;  %v3378_v14 = vcombine.low %v1310_v3, %v1313_v11  ;;  %v1112_v15 = vor.u32 %v1111_v8, %v1108_v7  ;;  %v1130_v20 = vshrl.u32 %v3370_v10, 16  ;;  %v962_v7 = vld [vmem:[%s3250_s27 + $0x4c] sm:$0xf]  ;;  %2781 = vmatmul.mubr.msk.bf16.vlgmr.msra.gmra.mrb[0].mxu1 %vm1021_vm9, %v3367_v62 }
  0x93   : > { %1473 = vrot.lane.b32.xlu1 %v3367_v62, %s2903_s11  ;;  %v1127_v18 = vrot.slane %v1125_v13, 5  ;;  %v1316_v25 = vrot.slane %v3337_v50, 5  ;;  %v1133_v26 = vshll.u32 %v3370_v10, 16  ;;  %v1139_v30 = vshll.u32 %v3381_v16, 16  ;;  %1026 = vst.msk [vmem:[#allocation3 + $0x20] sm:$0xff] %vm1021_vm9, %v3385_v19  ;;  %2759 = vmatpush3.bf16.msra.mxu0 %v2857_v57 }
  0x94   : > { %v1122_v17 = vor.u32 %v1121_v12, %v1117_v9  ;;  %v1113_v24 = vrot.slane %v1112_v15, 4  ;;  %v1132_v29 = vrot.slane %v1130_v20, 4  ;;  %v1143_v31 = vshrl.u32 %v3381_v16, 16 }
  0x95   : > { %1471 = vrot.lane.b32.xlu0 %v2524_v44, %s2903_s11  ;;  %v2534_v33 = vrot.slane %v3334_v49, 9  ;;  %v1135_v34 = vrot.slane %v1133_v26, 5  ;;  %v1149_v35 = vshll.u32 %v3389_v22, 16  ;;  %v1319_v38 = vrot.slane %v3358_v0, 5  ;;  %v3416_v44 = vld [vmem:[%s3250_s27 + $0x40] sm:$0xf] }
  0x96   : > { %v1123_v27 = vrot.slane %v1122_v17, 4  ;;  %v1118_v32 = vsel %vm3310_vm15, %v1113_v24, %v1117_v9  ;;  %v1141_v39 = vrot.slane %v1139_v30, 5  ;;  %v1145_v40 = vrot.slane %v1143_v31, 4  ;;  %v3445_v0 = vld [vmem:[%s3250_s27 + $0x44] sm:$0x1] }
  0x97   : > { %1517 = vrot.lane.b32.xlu1 %v3378_v14, %s2904_s12  ;;  %v1318_v23 = vrot.slane %v1316_v25, 4  ;;  %v1136_v42 = vor.u32 %v1135_v34, %v1132_v29  ;;  %v1151_v43 = vrot.slane %v1149_v35, 5  ;;  %v2535_v47 = vrot.slane %v3370_v10, 9  ;;  %v963_v17 = vld [vmem:[%s3250_s27 + $0x50] sm:$0x1] }
  0x98   : > { %v1128_v37 = vsel %vm3310_vm15, %v1123_v27, %v1127_v18  ;;  %v1146_v45 = vor.u32 %v1145_v40, %v1141_v39  ;;  %v1323_v49 = vrot.slane %v3381_v16, 5  ;;  %v3424_v50 = vcombine.low %v3411_v41, %v3416_v44 }
  0x99   : > { %v3413_v1 = vcombine.low %v1118_v32, %v1128_v37  ;;  %1515 = vrot.lane.b32.xlu0 %v3339_v52, %s2904_s12  ;;  %v1137_v53 = vrot.slane %v1136_v42, 4  ;;  %v1326_v54 = vrot.slane %v3389_v22, 5  ;;  %v1154_v52 = vshrl.u32 %v3411_v41, 16  ;;  %v964_v32 = vld [vmem:[%s3250_s27 + $0x54] sm:$0xf] }
  0x9a   : > { %v1157_v55 = vshll.u32 %v3411_v41, 16  ;;  %v1147_v58 = vrot.slane %v1146_v45, 4  ;;  %v1325_v59 = vrot.slane %v1323_v49, 4  ;;  %v1163_v28 = vshll.u32 %v3416_v44, 16  ;;  %1027 = vst.msk [vmem:[#allocation3 + $0x28] sm:$0xff] %vm1021_vm9, %v3424_v50 }
  0x9b   : > { %1555 = vrot.lane.b32.xlu1 %v3346_v60, %s2905_s15  ;;  %v1167_v61 = vshrl.u32 %v3416_v44, 16  ;;  %v1317_v63 = vsel %vm3299_vm14, %v2534_v33, %v1316_v25  ;;  %v1320_v46 = vsel %vm3299_vm14, %v1318_v23, %v1319_v38  ;;  %v1142_v3 = vsel %vm3310_vm15, %v1137_v53, %v1141_v39  ;;  %v965_v37 = vld [vmem:[%s3250_s27 + $0x58] sm:$0xf]  ;;  %2784 = vmatprep.mubr.msk.bf16.mxu1 %vm1021_vm9, %v3413_v1 }
  0x9c   : > { %v3454_v4 = vrot.slane %v1154_v52, 4  ;;  %v1159_v5 = vrot.slane %v1157_v55, 5  ;;  %v1152_v8 = vsel %vm3310_vm15, %v1147_v58, %v1151_v43  ;;  %v1327_v9 = vsel %vm3299_vm14, %v1325_v59, %v1326_v54 }
  0x9d   : > { %1553 = vrot.lane.b32.xlu0 %v3272_v48, %s2905_s15  ;;  %v1324_v48 = vsel %vm3299_vm14, %v2535_v47, %v1323_v49  ;;  %v3461_v10 = vrot.slane %v1163_v28, 5  ;;  %v3463_v11 = vrot.slane %v1167_v61, 4  ;;  %v1173_v12 = vshll.u32 %v3445_v0, 16  ;;  %v966_v49 = vld [vmem:[%s3250_s27 + $0x5c] sm:$0x1] }
  0x9e   : > { %v3466_v13 = vcombine.low %v961_v2, %v962_v7  ;;  %v1178_v15 = vshrl.u32 %v961_v2, 16  ;;  %v1181_v16 = vshll.u32 %v961_v2, 16  ;;  %v3471_v18 = vcombine.low %v1317_v63, %v1320_v46 }
  0x9f   : > { %1615 = vrot.lane.b32.xlu1 %v3413_v1, %s2906_s20  ;;  %v1187_v20 = vshll.u32 %v962_v7, 16  ;;  %v3475_v22 = vcombine.low %v1142_v3, %v1152_v8  ;;  %v1191_v26 = vshrl.u32 %v962_v7, 16  ;;  %v3479_v27 = vcombine.low %v1324_v48, %v1327_v9  ;;  %v3506_v3 = vld [vmem:[%s3250_s27 + $0x60] sm:$0xf] }
  0xa0   : > { %v1180_v24 = vrot.slane %v1178_v15, 4  ;;  %v1183_v25 = vrot.slane %v1181_v16, 5  ;;  %1028 = vst.msk [vmem:[#allocation3 + $0x30] sm:$0xff] %vm1021_vm9, %v3466_v13  ;;  %v1160_v29 = vor.u32 %v1159_v5, %v3454_v4  ;;  %v1197_v31 = vshll.u32 %v963_v17, 16  ;;  %v3519_v16 = vld [vmem:[%s3250_s27 + $0x64] sm:$0xf] }
  0xa1   : > { %1613 = vrot.lane.b32.xlu0 %v3367_v62, %s2906_s20  ;;  %v1189_v30 = vrot.slane %v1187_v20, 5  ;;  %v1170_v33 = vor.u32 %v3463_v11, %v3461_v10  ;;  %v3485_v34 = vrot.slane %v1173_v12, 5  ;;  %v1193_v35 = vrot.slane %v1191_v26, 4  ;;  %v969_v26 = vld [vmem:[%s3250_s27 + $0x68] sm:$0x1]  ;;  %2785 = vmatmul.mubr.msk.bf16.gmra.mrb[4].mxu1 %vm1021_vm9, %v3475_v22 }
  0xa2   : > { %v1184_v36 = vor.u32 %v1183_v25, %v1180_v24  ;;  %v1199_v38 = vrot.slane %v1197_v31, 5  ;;  %v2537_v39 = vrot.slane %v961_v2, 9  ;;  %v1337_v40 = vrot.slane %v962_v7, 5 }
  0xa3   : > { %1253 = vrot.lane.b32.xlu1 %v3367_v62, %s2902_s10  ;;  %v1340_v23 = vrot.slane %v963_v17, 5  ;;  %v1194_v43 = vor.u32 %v1193_v35, %v1189_v30  ;;  %v3492_v45 = vcombine.low %v964_v32, %v965_v37  ;;  %v1202_v47 = vshrl.u32 %v964_v32, 16 }
  0xa4   : > { %v1185_v42 = vrot.slane %v1184_v36, 4  ;;  %v1338_v53 = vsel %vm3299_vm14, %v2537_v39, %v1337_v40  ;;  %v1339_v54 = vrot.slane %v1337_v40, 4  ;;  %v1205_v52 = vshll.u32 %v964_v32, 16 }
  0xa5   : > { %1657 = vrot.lane.b32.xlu0 %v3378_v14, %s2907_s7  ;;  %v1211_v55 = vshll.u32 %v965_v37, 16  ;;  %v1195_v58 = vrot.slane %v1194_v43, 4  ;;  %v1204_v59 = vrot.slane %v1202_v47, 4  ;;  %v1215_v28 = vshrl.u32 %v965_v37, 16  ;;  %1029 = vst.msk [vmem:[#allocation3 + $0x38] sm:$0xff] %vm1021_vm9, %v3492_v45 }
  0xa6   : > { %v1190_v57 = vsel %vm3310_vm15, %v1185_v42, %v1189_v30  ;;  %v1341_v61 = vsel %vm3299_vm14, %v1339_v54, %v1340_v23  ;;  %v1207_v63 = vrot.slane %v1205_v52, 5  ;;  %v1221_v2 = vshll.u32 %v966_v49, 16  ;;  %v3544_v54 = vld [vmem:[%s3250_s27 + $0x70] sm:$0xf] }
  0xa7   : > { %1255 = vrot.lane.b32.xlu1 %v3413_v1, %s2902_s10  ;;  %v1213_v46 = vrot.slane %v1211_v55, 5  ;;  %v1200_v48 = vsel %vm3310_vm15, %v1195_v58, %v1199_v38  ;;  %v3512_v4 = vcombine.low %v1338_v53, %v1341_v61  ;;  %v1217_v5 = vrot.slane %v1215_v28, 4  ;;  %v3541_v53 = vld [vmem:[%s3250_s27 + $0x6c] sm:$0xf] }
  0xa8   : > { %v2538_v7 = vrot.slane %v964_v32, 9  ;;  %v3514_v8 = vrot.slane %v1160_v29, 4  ;;  %v3516_v9 = vcombine.low %v1190_v57, %v1200_v48  ;;  %v1208_v12 = vor.u32 %v1207_v63, %v1204_v59 }
  0xa9   : > { %1659 = vrot.lane.b32.xlu0 %v3471_v18, %s2907_s7  ;;  %v1344_v15 = vrot.slane %v965_v37, 5  ;;  %v1218_v17 = vor.u32 %v1217_v5, %v1213_v46  ;;  %v1223_v20 = vrot.slane %v1221_v2, 5  ;;  %v1347_v24 = vrot.slane %v966_v49, 5 }
  0xaa   : > { %v1445_v25 = vshrl.u32 %v3506_v3, 16  ;;  %v1209_v30 = vrot.slane %v1208_v12, 4  ;;  %v1448_v32 = vshll.u32 %v3506_v3, 16  ;;  %v1458_v36 = vshrl.u32 %v3519_v16, 16  ;;  %v972_v12 = vld [vmem:[%s3250_s27 + $0x74] sm:$0x1] }
  0xab   : > { %1379 = vrot.lane.b32.xlu1 %v3471_v18, %s2901_s9  ;;  %v1345_v29 = vsel %vm3299_vm14, %v2538_v7, %v1344_v15  ;;  %v1346_v31 = vrot.slane %v1344_v15, 4  ;;  %v1219_v35 = vrot.slane %v1218_v17, 4  ;;  %v1454_v38 = vshll.u32 %v3519_v16, 16 }
  0xac   : > { %v1447_v37 = vrot.slane %v1445_v25, 4  ;;  %v1450_v40 = vrot.slane %v1448_v32, 5  ;;  %v1464_v23 = vshll.u32 %v969_v26, 16  ;;  %v1460_v49 = vrot.slane %v1458_v36, 4 }
  0xad   : > { %1377 = vrot.lane.b32.xlu0 %v3378_v14, %s2901_s9  ;;  %v1214_v14 = vsel %vm3310_vm15, %v1209_v30, %v1213_v46  ;;  %v1348_v39 = vsel %vm3299_vm14, %v1346_v31, %v1347_v24  ;;  %v1224_v42 = vsel %vm3310_vm15, %v1219_v35, %v1223_v20  ;;  %v1456_v47 = vrot.slane %v1454_v38, 5 }
  0xae   : > { %v3538_v43 = vcombine.low %v1345_v29, %v1348_v39  ;;  %v1171_v52 = vrot.slane %v1170_v33, 4  ;;  %v3551_v55 = vcombine.low %v1214_v14, %v1224_v42  ;;  %v1451_v57 = vor.u32 %v1450_v40, %v1447_v37  ;;  %v2858_v39 = vld [vmem:[%s3816_s1 + $0x10] ss:$0 sps:$4 sm:$0x33]  }
  0xaf   : > { %1417 = vrot.lane.b32.xlu1 %v3385_v19, %s2900_s21  ;;  %v2549_v58 = vrot.slane %v3506_v3, 9  ;;  %v1461_v59 = vor.u32 %v1460_v49, %v1456_v47  ;;  %v1466_v28 = vrot.slane %v1464_v23, 5  ;;  %v1507_v61 = vrot.slane %v3519_v16, 5  ;;  %2796 = vmatprep.subr.msk.bf16.mxu0 %vm1743_vm0, %v2858_v39 }
  0xb0   : > { %v1510_v63 = vrot.slane %v969_v26, 5  ;;  %v1452_v46 = vrot.slane %v1451_v57, 4  ;;  %v1590_v11 = vshll.u32 %v3541_v53, 16  ;;  %v1600_v33 = vshrl.u32 %v3544_v54, 16 }
  0xb1   : > { %1415 = vrot.lane.b32.xlu0 %v3346_v60, %s2900_s21  ;;  %v1587_v60 = vshrl.u32 %v3541_v53, 16  ;;  %v1166_v2 = vsel %vm3310_vm15, %v3514_v8, %v3461_v10  ;;  %v1462_v48 = vrot.slane %v1461_v59, 4  ;;  %v1508_v5 = vsel %vm3299_vm14, %v2549_v58, %v1507_v61 }
  0xb2   : > { %v1509_v7 = vrot.slane %v1507_v61, 4  ;;  %v1176_v15 = vsel %vm3310_vm15, %v1171_v52, %v3485_v34  ;;  %v1457_v17 = vsel %vm3310_vm15, %v1452_v46, %v1456_v47  ;;  %v2515_v20 = vcombine.low %v3277_v51, %v3284_v56 }
  0xb3   : > { %1477 = vrot.lane.b32.xlu1 %v3475_v22, %s2903_s11  ;;  %v1589_v10 = vrot.slane %v1587_v60, 4  ;;  %v1467_v8 = vsel %vm3310_vm15, %v1462_v48, %v1466_v28  ;;  %v1592_v25 = vrot.slane %v1590_v11, 5  ;;  %v1596_v26 = vshll.u32 %v3544_v54, 16 }
  0xb4   : > { %v1511_v24 = vsel %vm3299_vm14, %v1509_v7, %v1510_v63  ;;  %v3583_v34 = vcombine.low %v1457_v17, %v1467_v8  ;;  %1022 = vst.msk [vmem:[#allocation3] sm:$0xff] %vm1021_vm9, %v2515_v20  ;;  %v1602_v51 = vrot.slane %v1600_v33, 4  ;;  %v1606_v56 = vshll.u32 %v972_v12, 16 }
  0xb5   : > { %1475 = vrot.lane.b32.xlu0 %v3413_v1, %s2903_s11  ;;  %v3585_v30 = vcombine.low %v1508_v5, %v1511_v24  ;;  %v1593_v29 = vor.u32 %v1592_v25, %v1589_v10  ;;  %v1598_v31 = vrot.slane %v1596_v26, 5  ;;  %v2553_v32 = vrot.slane %v3541_v53, 9 }
  0xb6   : > { %v1649_v35 = vrot.slane %v3544_v54, 5  ;;  %v2528_v36 = vcombine.low %v1166_v2, %v1176_v15  ;;  %v1330_v37 = vrot.slane %v3416_v44, 5  ;;  %v1608_v38 = vrot.slane %v1606_v56, 5 }
  0xb7   : > { %1521 = vrot.lane.b32.xlu1 %v3479_v27, %s2904_s12  ;;  %v1652_v14 = vrot.slane %v972_v12, 5  ;;  %v1594_v40 = vrot.slane %v1593_v29, 4  ;;  %v1603_v23 = vor.u32 %v1602_v51, %v1598_v31  ;;  %v1745_v57 = vsel %vm1743_vm0, %v2858_v39, 0 }
  0xb8   : > { %v3600_v42 = vsel %vm3299_vm14, %v2553_v32, %v1649_v35  ;;  %v1651_v47 = vrot.slane %v1649_v35, 4  ;;  %v2536_v58 = vrot.slane %v3411_v41, 9  ;;  %v1332_v59 = vrot.slane %v1330_v37, 4  ;;  %2761 = vmatpush3.bf16.msra.mxu0 %v1745_v57  ;;  %2788 = vmatprep.mubr.msk.bf16.mxu1 %vm1021_vm9, %v2528_v36 }
  0xb9   : > { %1519 = vrot.lane.b32.xlu0 %v3471_v18, %s2904_s12  ;;  %v1599_v18 = vsel %vm3310_vm15, %v1594_v40, %v1598_v31  ;;  %v1604_v44 = vrot.slane %v1603_v23, 4  ;;  %v1333_v28 = vrot.slane %v3445_v0, 5  ;;  %2789 = vmatmul.mubr.msk.bf16.gmra.mrb[8].mxu1 %vm1021_vm9, %v3516_v9  ;;  %v2547_v62 = vcombine.low %v3506_v3, %v3519_v16 }
  0xba   : > { %v3606_v49 = vsel %vm3299_vm14, %v1651_v47, %v1652_v14  ;;  %2792 = vmatprep.mubr.msk.bf16.mxu1 %vm1021_vm9, %v3551_v55 }
  0xbb   : > { %1559 = vrot.lane.b32.xlu1 %v3424_v50, %s2905_s15  ;;  %v2554_v52 = vcombine.low %v3600_v42, %v3606_v49  ;;  %v1609_v61 = vsel %vm3310_vm15, %v1604_v44, %v1608_v38  ;;  %v1334_v41 = vsel %vm3299_vm14, %v1332_v59, %v1333_v28 }
  0xbc   : > { %v2552_v63 = vcombine.low %v1599_v18, %v1609_v61 }
  0xbd   : > { %1557 = vrot.lane.b32.xlu0 %v3385_v19, %s2905_s15  ;;  %v1331_v19 = vsel %vm3299_vm14, %v2536_v58, %v1330_v37 }
  0xbe   : > { %v2544_v0 = vcombine.low %v1331_v19, %v1334_v41 }
  0xbf   : > { %1619 = vrot.lane.b32.xlu1 %v2528_v36, %s2906_s20 }
  0xc1   : > { %1617 = vrot.lane.b32.xlu0 %v3475_v22, %s2906_s20  ;;  %2793 = vmatmul.mubr.msk.bf16.gmra.mrb[12].mxu1 %vm1021_vm9, %v3583_v34  ;;  %vm1718_vm9 = vcmask 293888  }
  0xc3   : > { %1257 = vrot.lane.b32.xlu1 %v3475_v22, %s2902_s10 }
  0xc5   : > { %1661 = vrot.lane.b32.xlu0 %v3479_v27, %s2907_s7 }
  0xc7   : > { %1259 = vrot.lane.b32.xlu1 %v2528_v36, %s2902_s10 }
  0xc9   : > { %1663 = vrot.lane.b32.xlu0 %v2544_v0, %s2907_s7 }
  0xcb   : > { %1383 = vrot.lane.b32.xlu1 %v2544_v0, %s2901_s9 }
  0xcd   : > { %1381 = vrot.lane.b32.xlu0 %v3479_v27, %s2901_s9 }
  0xcf   : > { %1421 = vrot.lane.b32.xlu1 %v3466_v13, %s2900_s21 }
  0xd1   : > { %1419 = vrot.lane.b32.xlu0 %v3424_v50, %s2900_s21  ;;  %v2551_v50 = vcombine.low %v3541_v53, %v3544_v54 }
  0xd3   : > { %1481 = vrot.lane.b32.xlu1 %v3516_v9, %s2903_s11 }
  0xd5   : > { %1479 = vrot.lane.b32.xlu0 %v2528_v36, %s2903_s11 }
  0xd7   : > { %1525 = vrot.lane.b32.xlu1 %v3512_v4, %s2904_s12 }
  0xd9   : > { %1523 = vrot.lane.b32.xlu0 %v2544_v0, %s2904_s12 }
  0xdb   : > { %1563 = vrot.lane.b32.xlu1 %v3492_v45, %s2905_s15 }
  0xdd   : > { %1561 = vrot.lane.b32.xlu0 %v3466_v13, %s2905_s15 }
  0xdf   : > { %1623 = vrot.lane.b32.xlu1 %v3551_v55, %s2906_s20 }
  0xe1   : > { %1621 = vrot.lane.b32.xlu0 %v3516_v9, %s2906_s20 }
  0xe3   : > { %1261 = vrot.lane.b32.xlu1 %v3516_v9, %s2902_s10 }
  0xe5   : > { %1665 = vrot.lane.b32.xlu0 %v3512_v4, %s2907_s7 }
  0xe7   : > { %1263 = vrot.lane.b32.xlu1 %v3551_v55, %s2902_s10 }
  0xe9   : > { %1667 = vrot.lane.b32.xlu0 %v3538_v43, %s2907_s7 }
  0xeb   : > { %1387 = vrot.lane.b32.xlu1 %v3538_v43, %s2901_s9 }
  0xed   : > { %1385 = vrot.lane.b32.xlu0 %v3512_v4, %s2901_s9 }
  0xef   : > { %1425 = vrot.lane.b32.xlu1 %v2547_v62, %s2900_s21 }
  0xf1   : > { %1423 = vrot.lane.b32.xlu0 %v3492_v45, %s2900_s21  ;;  %v1412_v13 = vpop.permute.xlu0 %1411 }
  0xf2   : > { %v1414_v1 = vpop.permute.xlu1 %1413 }
  0xf3   : > { %1485 = vrot.lane.b32.xlu1 %v3583_v34, %s2903_s11 }
  0xf5   : > { %1483 = vrot.lane.b32.xlu0 %v3551_v55, %s2903_s11 }
  0xf7   : > { %1529 = vrot.lane.b32.xlu1 %v3585_v30, %s2904_s12 }
  0xf9   : > { %1527 = vrot.lane.b32.xlu0 %v3538_v43, %s2904_s12 }
  0xfb   : > { %1567 = vrot.lane.b32.xlu1 %v2551_v50, %s2905_s15 }
  0xfc   : > { %v1374_v22 = vpop.permute.xlu1 %1373 }
  0xfd   : > { %1565 = vrot.lane.b32.xlu0 %v2547_v62, %s2905_s15 }
  0xff   : > { %1627 = vrot.lane.b32.xlu1 %v2552_v63, %s2906_s20  ;;  %v1250_v27 = vpop.permute.xlu0 %1249 }
 0x100   : > { %1274 = vst.msk [vmem:[#allocation3] sm:$0xff] %vm1273_vm1, %v1250_v27 }
 0x101   : > { %v1376_v45 = vpop.permute.xlu1 %1375  ;;  %1398 = vst.msk [vmem:[#allocation3] sm:$0xff] %vm1397_vm2, %v1374_v22  ;;  %1625 = vrot.lane.b32.xlu0 %v3583_v34, %s2906_s20 }
 0x102   : > { %1436 = vst.msk [vmem:[#allocation3] sm:$0xff] %vm1435_vm3, %v1412_v13 }
 0x103   : > { %1671 = vrot.lane.b32.xlu1 %v2554_v52, %s2907_s7  ;;  %v1252_v3 = vpop.permute.xlu0 %1251 }
 0x104   : > { %1275 = vst.msk [vmem:[#allocation3 + $0x8] sm:$0xff] %vm1273_vm1, %v1252_v3 }
 0x105   : > { %v1474_v4 = vpop.permute.xlu1 %1473  ;;  %1399 = vst.msk [vmem:[#allocation3 + $0x8] sm:$0xff] %vm1397_vm2, %v1376_v45  ;;  %1669 = vrot.lane.b32.xlu0 %v3585_v30, %s2907_s7 }
 0x106   : > { %1437 = vst.msk [vmem:[#allocation3 + $0x8] sm:$0xff] %vm1435_vm3, %v1414_v1 }
 0x107   : > { %v1472_v9 = vpop.permute.xlu0 %1471  ;;  %1497 = vst.msk [vmem:[#allocation3 + $0x8] sm:$0xff] %vm1495_vm4, %v1474_v4 }
 0x108   : > { %1496 = vst.msk [vmem:[#allocation3] sm:$0xff] %vm1495_vm4, %v1472_v9 }
 0x109   : > { %v1518_v16 = vpop.permute.xlu1 %1517 }
 0x10a   : > { %1541 = vst.msk [vmem:[#allocation3 + $0x8] sm:$0xff] %vm1539_vm5, %v1518_v16 }
 0x10b   : > { %v1516_v43 = vpop.permute.xlu0 %1515 }
 0x10c   : > { %1540 = vst.msk [vmem:[#allocation3] sm:$0xff] %vm1539_vm5, %v1516_v43 }
 0x10d   : > { %v1556_v53 = vpop.permute.xlu1 %1555 }
 0x10e   : > { %1579 = vst.msk [vmem:[#allocation3 + $0x8] sm:$0xff] %vm1577_vm6, %v1556_v53 }
 0x10f   : > { %v1554_v54 = vpop.permute.xlu0 %1553 }
 0x110   : > { %1578 = vst.msk [vmem:[#allocation3] sm:$0xff] %vm1577_vm6, %v1554_v54 }
 0x111   : > { %v1616_v55 = vpop.permute.xlu1 %1615 }
 0x112   : > { %1639 = vst.msk [vmem:[#allocation3 + $0x8] sm:$0xff] %vm1637_vm7, %v1616_v55 }
 0x113   : > { %v1614_v46 = vpop.permute.xlu0 %1613 }
 0x114   : > { %1638 = vst.msk [vmem:[#allocation3] sm:$0xff] %vm1637_vm7, %v1614_v46 }
 0x115   : > { %v1254_v60 = vpop.permute.xlu1 %1253 }
 0x116   : > { %1276 = vst.msk [vmem:[#allocation3 + $0x10] sm:$0xff] %vm1273_vm1, %v1254_v60 }
 0x117   : > { %v1658_v11 = vpop.permute.xlu0 %1657 }
 0x118   : > { %1682 = vst.msk [vmem:[#allocation3] sm:$0xff] %vm1681_vm8, %v1658_v11 }
 0x119   : > { %v1256_v33 = vpop.permute.xlu1 %1255 }
 0x11a   : > { %1277 = vst.msk [vmem:[#allocation3 + $0x18] sm:$0xff] %vm1273_vm1, %v1256_v33 }
 0x11b   : > { %v1660_v2 = vpop.permute.xlu0 %1659 }
 0x11c   : > { %1683 = vst.msk [vmem:[#allocation3 + $0x8] sm:$0xff] %vm1681_vm8, %v1660_v2 }
 0x11d   : > { %v1380_v48 = vpop.permute.xlu1 %1379 }
 0x11e   : > { %1401 = vst.msk [vmem:[#allocation3 + $0x18] sm:$0xff] %vm1397_vm2, %v1380_v48 }
 0x11f   : > { %v1378_v5 = vpop.permute.xlu0 %1377  ;;  %v1690_v7 = vld [vmem:[#allocation3] sm:$0xff] }
 0x120   : > { %1400 = vst.msk [vmem:[#allocation3 + $0x10] sm:$0xff] %vm1397_vm2, %v1378_v5  ;;  %2762 = vmatprep.mubr.msk.bf16.mxu0 %vm1718_vm9, %v1690_v7 }
 0x121   : > { %v1418_v12 = vpop.permute.xlu1 %1417 }
 0x122   : > { %1439 = vst.msk [vmem:[#allocation3 + $0x18] sm:$0xff] %vm1435_vm3, %v1418_v12 }
 0x123   : > { %v1416_v15 = vpop.permute.xlu0 %1415  ;;  %v1691_v17 = vld [vmem:[#allocation3 + $0x8] sm:$0xff] }
 0x124   : > { %1438 = vst.msk [vmem:[#allocation3 + $0x10] sm:$0xff] %vm1435_vm3, %v1416_v15  ;;  %2763 = vmatmul.mubr.msk.bf16.vlgmr.msra.gmra.mrb[0].mxu0 %vm1718_vm9, %v1691_v17 }
 0x125   : > { %v1478_v20 = vpop.permute.xlu1 %1477 }
 0x126   : > { %1499 = vst.msk [vmem:[#allocation3 + $0x18] sm:$0xff] %vm1495_vm4, %v1478_v20 }
 0x127   : > { %v1476_v10 = vpop.permute.xlu0 %1475 }
 0x128   : > { %1498 = vst.msk [vmem:[#allocation3 + $0x10] sm:$0xff] %vm1495_vm4, %v1476_v10 }
 0x129   : > { %v1522_v8 = vpop.permute.xlu1 %1521 }
 0x12a   : > { %1543 = vst.msk [vmem:[#allocation3 + $0x18] sm:$0xff] %vm1539_vm5, %v1522_v8 }
 0x12b   : > { %v1520_v24 = vpop.permute.xlu0 %1519 }
 0x12c   : > { %1542 = vst.msk [vmem:[#allocation3 + $0x10] sm:$0xff] %vm1539_vm5, %v1520_v24 }
 0x12d   : > { %v1560_v25 = vpop.permute.xlu1 %1559 }
 0x12e   : > { %1581 = vst.msk [vmem:[#allocation3 + $0x18] sm:$0xff] %vm1577_vm6, %v1560_v25 }
 0x12f   : > { %v1558_v26 = vpop.permute.xlu0 %1557 }
 0x130   : > { %1580 = vst.msk [vmem:[#allocation3 + $0x10] sm:$0xff] %vm1577_vm6, %v1558_v26 }
 0x131   : > { %v1620_v34 = vpop.permute.xlu1 %1619 }
 0x132   : > { %1641 = vst.msk [vmem:[#allocation3 + $0x18] sm:$0xff] %vm1637_vm7, %v1620_v34 }
 0x133   : > { %v1618_v30 = vpop.permute.xlu0 %1617 }
 0x134   : > { %1640 = vst.msk [vmem:[#allocation3 + $0x10] sm:$0xff] %vm1637_vm7, %v1618_v30 }
 0x135   : > { %v1258_v51 = vpop.permute.xlu1 %1257 }
 0x136   : > { %1278 = vst.msk [vmem:[#allocation3 + $0x20] sm:$0xff] %vm1273_vm1, %v1258_v51 }
 0x137   : > { %v1662_v56 = vpop.permute.xlu0 %1661 }
 0x138   : > { %1684 = vst.msk [vmem:[#allocation3 + $0x10] sm:$0xff] %vm1681_vm8, %v1662_v56 }
 0x139   : > { %v1260_v29 = vpop.permute.xlu1 %1259 }
 0x13a   : > { %1279 = vst.msk [vmem:[#allocation3 + $0x28] sm:$0xff] %vm1273_vm1, %v1260_v29 }
 0x13b   : > { %v1664_v31 = vpop.permute.xlu0 %1663 }
 0x13c   : > { %1685 = vst.msk [vmem:[#allocation3 + $0x18] sm:$0xff] %vm1681_vm8, %v1664_v31 }
 0x13d   : > { %v1384_v32 = vpop.permute.xlu1 %1383 }
 0x13e   : > { %1403 = vst.msk [vmem:[#allocation3 + $0x28] sm:$0xff] %vm1397_vm2, %v1384_v32 }
 0x13f   : > { %v1382_v35 = vpop.permute.xlu0 %1381  ;;  %v1692_v36 = vld [vmem:[#allocation3 + $0x10] sm:$0xff] }
 0x140   : > { %1402 = vst.msk [vmem:[#allocation3 + $0x20] sm:$0xff] %vm1397_vm2, %v1382_v35  ;;  %2766 = vmatprep.mubr.msk.bf16.mxu0 %vm1718_vm9, %v1692_v36 }
 0x141   : > { %v1422_v37 = vpop.permute.xlu1 %1421 }
 0x142   : > { %1441 = vst.msk [vmem:[#allocation3 + $0x28] sm:$0xff] %vm1435_vm3, %v1422_v37 }
 0x143   : > { %v1420_v38 = vpop.permute.xlu0 %1419  ;;  %v1693_v14 = vld [vmem:[#allocation3 + $0x18] sm:$0xff] }
 0x144   : > { %1440 = vst.msk [vmem:[#allocation3 + $0x20] sm:$0xff] %vm1435_vm3, %v1420_v38  ;;  %2767 = vmatmul.mubr.msk.bf16.gmra.mrb[4].mxu0 %vm1718_vm9, %v1693_v14 }
 0x145   : > { %v1482_v39 = vpop.permute.xlu1 %1481 }
 0x146   : > { %1501 = vst.msk [vmem:[#allocation3 + $0x28] sm:$0xff] %vm1495_vm4, %v1482_v39 }
 0x147   : > { %v1480_v40 = vpop.permute.xlu0 %1479 }
 0x148   : > { %1500 = vst.msk [vmem:[#allocation3 + $0x20] sm:$0xff] %vm1495_vm4, %v1480_v40 }
 0x149   : > { %v1526_v23 = vpop.permute.xlu1 %1525 }
 0x14a   : > { %1545 = vst.msk [vmem:[#allocation3 + $0x28] sm:$0xff] %vm1539_vm5, %v1526_v23 }
 0x14b   : > { %v1524_v42 = vpop.permute.xlu0 %1523 }
 0x14c   : > { %1544 = vst.msk [vmem:[#allocation3 + $0x20] sm:$0xff] %vm1539_vm5, %v1524_v42 }
 0x14d   : > { %v1564_v47 = vpop.permute.xlu1 %1563 }
 0x14e   : > { %1583 = vst.msk [vmem:[#allocation3 + $0x28] sm:$0xff] %vm1577_vm6, %v1564_v47 }
 0x14f   : > { %v1562_v18 = vpop.permute.xlu0 %1561 }
 0x150   : > { %1582 = vst.msk [vmem:[#allocation3 + $0x20] sm:$0xff] %vm1577_vm6, %v1562_v18 }
 0x151   : > { %v1624_v44 = vpop.permute.xlu1 %1623 }
 0x152   : > { %1643 = vst.msk [vmem:[#allocation3 + $0x28] sm:$0xff] %vm1637_vm7, %v1624_v44 }
 0x153   : > { %v1622_v49 = vpop.permute.xlu0 %1621 }
 0x154   : > { %1642 = vst.msk [vmem:[#allocation3 + $0x20] sm:$0xff] %vm1637_vm7, %v1622_v49 }
 0x155   : > { %v1262_v52 = vpop.permute.xlu1 %1261 }
 0x156   : > { %1280 = vst.msk [vmem:[#allocation3 + $0x30] sm:$0xff] %vm1273_vm1, %v1262_v52 }
 0x157   : > { %v1666_v57 = vpop.permute.xlu0 %1665 }
 0x158   : > { %1686 = vst.msk [vmem:[#allocation3 + $0x20] sm:$0xff] %vm1681_vm8, %v1666_v57 }
 0x159   : > { %v1264_v58 = vpop.permute.xlu1 %1263 }
 0x15a   : > { %1281 = vst.msk [vmem:[#allocation3 + $0x38] sm:$0xff] %vm1273_vm1, %v1264_v58 }
 0x15b   : > { %v1668_v59 = vpop.permute.xlu0 %1667 }
 0x15c   : > { %1687 = vst.msk [vmem:[#allocation3 + $0x28] sm:$0xff] %vm1681_vm8, %v1668_v59 }
 0x15d   : > { %v1388_v28 = vpop.permute.xlu1 %1387 }
 0x15e   : > { %1405 = vst.msk [vmem:[#allocation3 + $0x38] sm:$0xff] %vm1397_vm2, %v1388_v28 }
 0x15f   : > { %v1386_v61 = vpop.permute.xlu0 %1385  ;;  %v1694_v63 = vld [vmem:[#allocation3 + $0x20] sm:$0xff] }
 0x160   : > { %1404 = vst.msk [vmem:[#allocation3 + $0x30] sm:$0xff] %vm1397_vm2, %v1386_v61  ;;  %2770 = vmatprep.mubr.msk.bf16.mxu0 %vm1718_vm9, %v1694_v63 }
 0x161   : > { %v1426_v19 = vpop.permute.xlu1 %1425 }
 0x162   : > { %1443 = vst.msk [vmem:[#allocation3 + $0x38] sm:$0xff] %vm1435_vm3, %v1426_v19 }
 0x163   : > { %v1424_v41 = vpop.permute.xlu0 %1423  ;;  %v1695_v0 = vld [vmem:[#allocation3 + $0x28] sm:$0xff] }
 0x164   : > { %1442 = vst.msk [vmem:[#allocation3 + $0x30] sm:$0xff] %vm1435_vm3, %v1424_v41  ;;  %2771 = vmatmul.mubr.msk.bf16.gmra.mrb[8].mxu0 %vm1718_vm9, %v1695_v0 }
 0x165   : > { %v1486_v6 = vpop.permute.xlu1 %1485  ;;  %v2782_v16 = vpop.f32.mrb[0].mxu1 }
 0x166   : > { %1503 = vst.msk [vmem:[#allocation3 + $0x38] sm:$0xff] %vm1495_vm4, %v1486_v6  ;;  %v1906_v43 = vpop.f32.mrb[1].mxu1  ;;  %v2053_v60 = vmul.f32 %v2782_v16, %v2782_v16 }
 0x167   : > { %v1484_v21 = vpop.permute.xlu0 %1483  ;;  %v2051_v53 = vmul.f32 %v1906_v43, %v1906_v43  ;;  %v2783_v54 = vpop.f32.mrb[2].mxu1 }
 0x168   : > { %1502 = vst.msk [vmem:[#allocation3 + $0x30] sm:$0xff] %vm1495_vm4, %v1484_v21  ;;  %v2690_v55 = vpack.c.bf16 %v2783_v54, %v2782_v16  ;;  %v1909_v46 = vpop.f32.mrb[3].mxu1  ;;  %v2054_v48 = vmul.f32 %v2783_v54, %v2783_v54 }
 0x169   : > { %v1530_v62 = vpop.permute.xlu1 %1529  ;;  %v2030_v11 = vadd.f32 %v1909_v46, %v1906_v43  ;;  %v2052_v33 = vmul.f32 %v1909_v46, %v1909_v46  ;;  %v2685_v2 = vpack.c.bf16 %v1909_v46, %v1906_v43 }
 0x16a   : > { %1547 = vst.msk [vmem:[#allocation3 + $0x38] sm:$0xff] %vm1539_vm5, %v1530_v62  ;;  %2729 = vst [vmem:[%s2990_s19 + $0x8] sm:$0xff] %v2690_v55  }
 0x16b   : > { %v1528_v1 = vpop.permute.xlu0 %1527  ;;  %v2031_v5 = vadd.f32 %v2782_v16, %v2030_v11  ;;  %v2067_v7 = vadd.f32 %v2052_v33, %v2051_v53  ;;  %2686 = vst [vmem:[%s2990_s19] sm:$0xff] %v2685_v2  }
 0x16c   : > { %1546 = vst.msk [vmem:[#allocation3 + $0x30] sm:$0xff] %vm1539_vm5, %v1528_v1 }
 0x16d   : > { %v1568_v50 = vpop.permute.xlu1 %1567  ;;  %v2068_v12 = vadd.f32 %v2067_v7, %v2053_v60  ;;  %v2032_v17 = vadd.f32 %v2783_v54, %v2031_v5 }
 0x16e   : > { %1585 = vst.msk [vmem:[#allocation3 + $0x38] sm:$0xff] %vm1577_vm6, %v1568_v50 }
 0x16f   : > { %v1566_v13 = vpop.permute.xlu0 %1565  ;;  %v2069_v24 = vadd.f32 %v2068_v12, %v2054_v48 }
 0x170   : > { %1584 = vst.msk [vmem:[#allocation3 + $0x30] sm:$0xff] %vm1577_vm6, %v1566_v13 }
 0x171   : > { %v1628_v22 = vpop.permute.xlu1 %1627 }
 0x172   : > { %1645 = vst.msk [vmem:[#allocation3 + $0x38] sm:$0xff] %vm1637_vm7, %v1628_v22 }
 0x173   : > { %v1626_v27 = vpop.permute.xlu0 %1625 }
 0x174   : > { %1644 = vst.msk [vmem:[#allocation3 + $0x30] sm:$0xff] %vm1637_vm7, %v1626_v27  ;;  %v2786_v15 = vpop.f32.mrb[4].mxu1 }
 0x175   : > { %v1672_v45 = vpop.permute.xlu1 %1671  ;;  %v1922_v20 = vpop.f32.mrb[5].mxu1  ;;  %v2057_v51 = vmul.f32 %v2786_v15, %v2786_v15 }
 0x176   : > { %1689 = vst.msk [vmem:[#allocation3 + $0x38] sm:$0xff] %vm1681_vm8, %v1672_v45  ;;  %v2033_v10 = vadd.f32 %v2032_v17, %v1922_v20  ;;  %v2055_v8 = vmul.f32 %v1922_v20, %v1922_v20  ;;  %v2787_v25 = vpop.f32.mrb[6].mxu1 }
 0x177   : > { %v1670_v3 = vpop.permute.xlu0 %1669  ;;  %v2700_v34 = vpack.c.bf16 %v2787_v25, %v2786_v15  ;;  %v1925_v30 = vpop.f32.mrb[7].mxu1  ;;  %v2058_v29 = vmul.f32 %v2787_v25, %v2787_v25 }
 0x178   : > { %1688 = vst.msk [vmem:[#allocation3 + $0x30] sm:$0xff] %vm1681_vm8, %v1670_v3  ;;  %v2070_v26 = vadd.f32 %v2069_v24, %v2055_v8  ;;  %v2056_v56 = vmul.f32 %v1925_v30, %v1925_v30  ;;  %v2034_v31 = vadd.f32 %v2033_v10, %v1925_v30  ;;  %v2695_v35 = vpack.c.bf16 %v1925_v30, %v1922_v20 }
 0x179   : > { %2731 = vst [vmem:[%s2990_s19 + $0x18] sm:$0xff] %v2700_v34  }
 0x17a   : > { %v2071_v32 = vadd.f32 %v2070_v26, %v2056_v56  ;;  %v2035_v36 = vadd.f32 %v2786_v15, %v2034_v31  ;;  %2730 = vst [vmem:[%s2990_s19 + $0x10] sm:$0xff] %v2695_v35  }
 0x17c   : > { %v2072_v37 = vadd.f32 %v2071_v32, %v2057_v51  ;;  %v2036_v39 = vadd.f32 %v2787_v25, %v2035_v36 }
 0x17d   : > { %v1697_v4 = vld [vmem:[#allocation3 + $0x38] sm:$0xff] }
 0x17e   : > { %v2073_v23 = vadd.f32 %v2072_v37, %v2058_v29 }
 0x17f   : > { %v1696_v9 = vld [vmem:[#allocation3 + $0x30] sm:$0xff] }
 0x180   : > { %2774 = vmatprep.mubr.msk.bf16.mxu0 %vm1718_vm9, %v1696_v9 }
 0x181   : > { %2775 = vmatmul.mubr.msk.bf16.gmra.mrb[12].mxu0 %vm1718_vm9, %v1697_v4 }
 0x18c   : > { %v2790_v38 = vpop.f32.mrb[8].mxu1 }
 0x18d   : > { %v1938_v14 = vpop.f32.mrb[9].mxu1  ;;  %v2061_v47 = vmul.f32 %v2790_v38, %v2790_v38 }
 0x18e   : > { %v2059_v40 = vmul.f32 %v1938_v14, %v1938_v14  ;;  %v2791_v42 = vpop.f32.mrb[10].mxu1  ;;  %v2037_v49 = vadd.f32 %v2036_v39, %v1938_v14 }
 0x18f   : > { %v2710_v18 = vpack.c.bf16 %v2791_v42, %v2790_v38  ;;  %v1941_v44 = vpop.f32.mrb[11].mxu1  ;;  %v2062_v59 = vmul.f32 %v2791_v42, %v2791_v42 }
 0x190   : > { %v2074_v52 = vadd.f32 %v2073_v23, %v2059_v40  ;;  %v2060_v57 = vmul.f32 %v1941_v44, %v1941_v44  ;;  %v2705_v58 = vpack.c.bf16 %v1941_v44, %v1938_v14  ;;  %v2038_v28 = vadd.f32 %v2037_v49, %v1941_v44 }
 0x191   : > { %2733 = vst [vmem:[%s2990_s19 + $0x28] sm:$0xff] %v2710_v18  }
 0x192   : > { %v2075_v61 = vadd.f32 %v2074_v52, %v2060_v57  ;;  %2732 = vst [vmem:[%s2990_s19 + $0x20] sm:$0xff] %v2705_v58   ;;  %v2039_v19 = vadd.f32 %v2790_v38, %v2038_v28 }
 0x194   : > { %v2794_v63 = vpop.f32.mrb[12].mxu1  ;;  %v2076_v41 = vadd.f32 %v2075_v61, %v2061_v47  ;;  %v2040_v62 = vadd.f32 %v2791_v42, %v2039_v19 }
 0x195   : > { %v1954_v0 = vpop.f32.mrb[13].mxu1  ;;  %v2065_v45 = vmul.f32 %v2794_v63, %v2794_v63 }
 0x196   : > { %v2063_v6 = vmul.f32 %v1954_v0, %v1954_v0  ;;  %v2795_v21 = vpop.f32.mrb[14].mxu1  ;;  %v2077_v1 = vadd.f32 %v2076_v41, %v2062_v59  ;;  %v2041_v3 = vadd.f32 %v2040_v62, %v1954_v0 }
 0x197   : > { %v2720_v50 = vpack.c.bf16 %v2795_v21, %v2794_v63  ;;  %v1957_v13 = vpop.f32.mrb[15].mxu1  ;;  %v2066_v9 = vmul.f32 %v2795_v21, %v2795_v21 }
 0x198   : > { %v2064_v22 = vmul.f32 %v1957_v13, %v1957_v13  ;;  %v2715_v27 = vpack.c.bf16 %v1957_v13, %v1954_v0  ;;  %v2078_v4 = vadd.f32 %v2077_v1, %v2063_v6  ;;  %v2042_v16 = vadd.f32 %v2041_v3, %v1957_v13 }
 0x199   : > { %2735 = vst [vmem:[%s2990_s19 + $0x38] sm:$0xff] %v2720_v50  }
 0x19a   : > { %2734 = vst [vmem:[%s2990_s19 + $0x30] sm:$0xff] %v2715_v27   ;;  %v2079_v43 = vadd.f32 %v2078_v4, %v2064_v22  ;;  %v2043_v53 = vadd.f32 %v2794_v63, %v2042_v16 }
 0x19c   : > { %v2080_v54 = vadd.f32 %v2079_v43, %v2065_v45  ;;  %v2044_v55 = vadd.f32 %v2795_v21, %v2043_v53 }
 0x19e   : > { %v2081_v46 = vadd.f32 %v2080_v54, %v2066_v9  ;;  %v2045_v60 = vrot.slane %v2044_v55, 4 }
 0x1a0   : > { %v2082_v11 = vrot.slane %v2081_v46, 4  ;;  %v2046_v33 = vadd.f32 %v2045_v60, %v2044_v55 }
 0x1a2   : > { %v2083_v2 = vadd.f32 %v2082_v11, %v2081_v46  ;;  %v2047_v48 = vrot.slane %v2046_v33, 2 }
 0x1a4   : > { %v2084_v5 = vrot.slane %v2083_v2, 2  ;;  %v2048_v7 = vadd.f32 %v2047_v48, %v2046_v33 }
 0x1a6   : > { %v2085_v12 = vadd.f32 %v2084_v5, %v2083_v2  ;;  %v2049_v15 = vrot.slane %v2048_v7, 1 }
 0x1a8   : > { %v2086_v17 = vrot.slane %v2085_v12, 1  ;;  %v2050_v20 = vadd.f32 %v2049_v15, %v2048_v7 }
 0x1aa   : > { %v2087_v10 = vadd.f32 %v2086_v17, %v2085_v12 }
 0x1ac   : > { %v2088_v8 = vsel %vm2027_vm10, %v2050_v20, %v2087_v10 }
 0x1ad   : > { %2089 = vst [vmem:[%s3001_s8] sm:$0x3] %v2088_v8 }
 0x1f7   : > { %v2764_v24 = vpop.f32.mrb[0].mxu0 }
 0x1f8   : > { %v1781_v25 = vpop.f32.mrb[1].mxu0  ;;  %v1992_v32 = vmul.f32 %v2764_v24, %v2764_v24 }
 0x1f9   : > { %v2765_v26 = vpop.f32.mrb[2].mxu0  ;;  %v1990_v51 = vmul.f32 %v1781_v25, %v1781_v25 }
 0x1fa   : > { %v2650_v34 = vpack.c.bf16 %v2765_v26, %v2764_v24  ;;  %v1784_v30 = vpop.f32.mrb[3].mxu0  ;;  %v1993_v37 = vmul.f32 %v2765_v26, %v2765_v26 }
 0x1fb   : > { %v1969_v56 = vadd.f32 %v1784_v30, %v1781_v25  ;;  %v1991_v29 = vmul.f32 %v1784_v30, %v1784_v30  ;;  %v2645_v31 = vpack.c.bf16 %v1784_v30, %v1781_v25 }
 0x1fc   : > { %2722 = vst [vmem:[%s2985_s16 + $0x8] sm:$0xff] %v2650_v34  }
 0x1fd   : > { %v1970_v35 = vadd.f32 %v2764_v24, %v1969_v56  ;;  %v2006_v36 = vadd.f32 %v1991_v29, %v1990_v51  ;;  %2646 = vst [vmem:[%s2985_s16] sm:$0xff] %v2645_v31  }
 0x1ff   : > { %v2007_v38 = vadd.f32 %v2006_v36, %v1992_v32  ;;  %v1971_v14 = vadd.f32 %v2765_v26, %v1970_v35 }
 0x201   : > { %v2008_v39 = vadd.f32 %v2007_v38, %v1993_v37 }
 0x217   : > { %v2768_v40 = vpop.f32.mrb[4].mxu0 }
 0x218   : > { %v1797_v23 = vpop.f32.mrb[5].mxu0  ;;  %v1996_v28 = vmul.f32 %v2768_v40, %v2768_v40 }
 0x219   : > { %v1972_v42 = vadd.f32 %v1971_v14, %v1797_v23  ;;  %v1994_v47 = vmul.f32 %v1797_v23, %v1797_v23  ;;  %v2769_v18 = vpop.f32.mrb[6].mxu0 }
 0x21a   : > { %v2660_v44 = vpack.c.bf16 %v2769_v18, %v2768_v40  ;;  %v1800_v49 = vpop.f32.mrb[7].mxu0  ;;  %v1997_v19 = vmul.f32 %v2769_v18, %v2769_v18 }
 0x21b   : > { %v2009_v52 = vadd.f32 %v2008_v39, %v1994_v47  ;;  %v1973_v57 = vadd.f32 %v1972_v42, %v1800_v49  ;;  %v1995_v58 = vmul.f32 %v1800_v49, %v1800_v49  ;;  %v2655_v59 = vpack.c.bf16 %v1800_v49, %v1797_v23 }
 0x21c   : > { %2724 = vst [vmem:[%s2985_s16 + $0x18] sm:$0xff] %v2660_v44  }
 0x21d   : > { %v1974_v61 = vadd.f32 %v2768_v40, %v1973_v57  ;;  %v2010_v63 = vadd.f32 %v2009_v52, %v1995_v58  ;;  %2723 = vst [vmem:[%s2985_s16 + $0x10] sm:$0xff] %v2655_v59  }
 0x21f   : > { %v2011_v41 = vadd.f32 %v2010_v63, %v1996_v28  ;;  %v1975_v0 = vadd.f32 %v2769_v18, %v1974_v61 }
 0x221   : > { %v2012_v6 = vadd.f32 %v2011_v41, %v1997_v19 }
 0x237   : > { %v2772_v21 = vpop.f32.mrb[8].mxu0 }
 0x238   : > { %v1813_v62 = vpop.f32.mrb[9].mxu0  ;;  %v2000_v16 = vmul.f32 %v2772_v21, %v2772_v21 }
 0x239   : > { %v1976_v1 = vadd.f32 %v1975_v0, %v1813_v62  ;;  %v1998_v50 = vmul.f32 %v1813_v62, %v1813_v62  ;;  %v2773_v13 = vpop.f32.mrb[10].mxu0 }
 0x23a   : > { %v2670_v22 = vpack.c.bf16 %v2773_v13, %v2772_v21  ;;  %v1816_v27 = vpop.f32.mrb[11].mxu0  ;;  %v2001_v54 = vmul.f32 %v2773_v13, %v2773_v13 }
 0x23b   : > { %v2013_v45 = vadd.f32 %v2012_v6, %v1998_v50  ;;  %v1977_v3 = vadd.f32 %v1976_v1, %v1816_v27  ;;  %v1999_v4 = vmul.f32 %v1816_v27, %v1816_v27  ;;  %v2665_v9 = vpack.c.bf16 %v1816_v27, %v1813_v62 }
 0x23c   : > { %2726 = vst [vmem:[%s2985_s16 + $0x28] sm:$0xff] %v2670_v22  }
 0x23d   : > { %v1978_v43 = vadd.f32 %v2772_v21, %v1977_v3  ;;  %v2014_v53 = vadd.f32 %v2013_v45, %v1999_v4  ;;  %2725 = vst [vmem:[%s2985_s16 + $0x20] sm:$0xff] %v2665_v9  }
 0x23f   : > { %v2015_v55 = vadd.f32 %v2014_v53, %v2000_v16  ;;  %v1979_v46 = vadd.f32 %v2773_v13, %v1978_v43 }
 0x241   : > { %v2016_v60 = vadd.f32 %v2015_v55, %v2001_v54 }
 0x254   : > { %v2776_v11 = vpop.f32.mrb[12].mxu0 }
 0x255   : > { %v1829_v33 = vpop.f32.mrb[13].mxu0  ;;  %v2004_v8 = vmul.f32 %v2776_v11, %v2776_v11 }
 0x256   : > { %v1980_v2 = vadd.f32 %v1979_v46, %v1829_v33  ;;  %v2002_v48 = vmul.f32 %v1829_v33, %v1829_v33  ;;  %v2777_v5 = vpop.f32.mrb[14].mxu0 }
 0x257   : > { %v2680_v7 = vpack.c.bf16 %v2777_v5, %v2776_v11  ;;  %v1832_v12 = vpop.f32.mrb[15].mxu0  ;;  %v2005_v26 = vmul.f32 %v2777_v5, %v2777_v5 }
 0x258   : > { %v2017_v15 = vadd.f32 %v2016_v60, %v2002_v48  ;;  %v1981_v17 = vadd.f32 %v1980_v2, %v1832_v12  ;;  %v2003_v20 = vmul.f32 %v1832_v12, %v1832_v12  ;;  %v2675_v10 = vpack.c.bf16 %v1832_v12, %v1829_v33 }
 0x259   : > { %2728 = vst [vmem:[%s2985_s16 + $0x38] sm:$0xff] %v2680_v7  }
 0x25a   : > { %v1982_v24 = vadd.f32 %v2776_v11, %v1981_v17  ;;  %v2018_v25 = vadd.f32 %v2017_v15, %v2003_v20  ;;  %2727 = vst [vmem:[%s2985_s16 + $0x30] sm:$0xff] %v2675_v10  }
 0x25c   : > { %v1983_v34 = vadd.f32 %v2777_v5, %v1982_v24  ;;  %v2019_v30 = vadd.f32 %v2018_v25, %v2004_v8 }
 0x25e   : > { %v1984_v51 = vrot.slane %v1983_v34, 4  ;;  %v2020_v56 = vadd.f32 %v2019_v30, %v2005_v26 }
 0x260   : > { %v1985_v29 = vadd.f32 %v1984_v51, %v1983_v34  ;;  %v2021_v31 = vrot.slane %v2020_v56, 4 }
 0x262   : > { %v1986_v32 = vrot.slane %v1985_v29, 2  ;;  %v2022_v35 = vadd.f32 %v2021_v31, %v2020_v56 }
 0x264   : > { %v1987_v36 = vadd.f32 %v1986_v32, %v1985_v29  ;;  %v2023_v37 = vrot.slane %v2022_v35, 2 }
 0x266   : > { %v1988_v38 = vrot.slane %v1987_v36, 1  ;;  %v2024_v14 = vadd.f32 %v2023_v37, %v2022_v35 }
 0x268   : > { %v2025_v39 = vrot.slane %v2024_v14, 1  ;;  %v1989_v40 = vadd.f32 %v1988_v38, %v1987_v36 }
 0x26a   : > { %v2026_v23 = vadd.f32 %v2025_v39, %v2024_v14 }
 0x26c   : > { %v2028_v42 = vsel %vm2027_vm10, %v1989_v40, %v2026_v23 }
 0x26d   : > { %2029 = vst [vmem:[%s2996_s28] sm:$0x3] %v2028_v42 }
 0x26e PF: > { %s17_s25 = sadd.s32 1, %s2897_s25   ;;  %s3836_s16 = sld [smem:[#allocation4_spill]] }
 0x26f   : > { %p14_p9 = scmp.ge.s32.totalorder %s17_s25, 6   ;;  %s3837_s19 = sld [smem:[#allocation5_spill]] }
 0x270   : > { %s3838_s21 = smov %s2889_s23  ;;  %s3839_s22 = smov %s2893_s24 }
 0x271   :  { %16 = sbr.rel (!%p14_p9) target bundleno = 3 (0x3), region = 105 }
 0x274   : > { %s3840_s23 = smov %s3836_s16 }
 0x275   : > { %s3841_s24 = smov %s3837_s19 }

// kernel: coblock_pallas.4
= control target key start
LH: loop header
LB: loop body
LE: loop exit
PB: predicated region body
PF: predicated region fallthrough
CT: control target
= control target key end

     0   :  { %s2797_s18 = smov 0   ;;  %s2799_s19 = smov 0   ;;  %s3689_s0 = inlined_call_operand.vmem [shape: bf16[2,16,16,128], index: 0, kind: input, shape index: {}]   ;;  %s3690_s1 = inlined_call_operand.vmem [shape: f32[1,128], index: 1, kind: input, shape index: {}]   ;;  %s3691_s2 = inlined_call_operand.vmem [shape: f32[1,128], index: 2, kind: input, shape index: {}]   ;;  %s3692_s3 = inlined_call_operand.vmem [shape: bf16[72,128], index: 3, kind: input, shape index: {}]   ;;  %s3693_s4 = inlined_call_operand.vmem [shape: bf16[2,16,16,128], index: 4, kind: output, shape index: {0}]   ;;  %s3694_s5 = inlined_call_operand.vmem [shape: f32[2,2,2,128], index: 5, kind: output, shape index: {1}]  }
   0x1   :  { %s2801_s20 = smov 0   ;;  %s2803_s21 = smov 0  }
   0x2   :  { %s2805_s22 = smov 0  }
   0x3 LB: > { %s25_s23 = sadd.s32 1, %s2748_s20  ;;  %s28_s24 = sadd.s32 1, %s2752_s21  ;;  %s2756_s22 = sphi %s2805_s22, %s16_s22   ;;  %s2752_s21 = sphi %s2803_s21, %s3712_s21   ;;  %s2748_s20 = sphi %s2801_s20, %s3711_s20   ;;  %s2744_s19 = sphi %s2799_s19, %s3710_s19   ;;  %s2740_s18 = sphi %s2797_s18, %s3709_s18  }
   0x4   : > { %p26_p0 = scmp.ge.s32.totalorder %s25_s23, 2  ;;  %p2310_p1 = scmp.ge.s32.totalorder %s2756_s22, 1 }
   0x5   : > { %p206_p2 = scmp.lt.s32.totalorder %s2756_s22, 5 }
   0x6   : > { %s3714_s23 = smov (%p26_p0, %s25_s23), 0  ;;  %s3716_s24 = smov (!%p26_p0, %s28_s24), %s2752_s21 }
   0x7   : > { %p207_p3 = pnand %p2310_p1, %p206_p2  ;;  %p30_p4 = scmp.ge.s32.totalorder %s3716_s24, 2 }
   0x8   : > { %p247_p5 = scmp.lt.s32.totalorder (!%p207_p3), %s2744_s19, 1  ;;  %s2313_s25 = sshll.u32 (!%p207_p3), %s2740_s18, 3 }
   0x9   : > { %s3718_s24 = smov (%p30_p4, %s3716_s24), 0  ;;  %210 = sbr.rel (%p207_p3) target bundleno = 653 (0x28d), region = 36 }
   0xa   : > { %3695 = sst [smem:[#allocation4_spill]] %s3718_s24  ;;  %p255_p6 = scmp.lt.s32.totalorder (!%p207_p3), %s2313_s25, 15 }
   0xb   : > { %p265_p7 = scmp.lt.s32.totalorder (!%p207_p3), %s2740_s18, 1  ;;  %p2319_p8 = scmp.ne.s32.totalorder (!%p207_p3), %s2740_s18, 0 }
  0x10   : > { %s3720_s19 = smov (!%p247_p5, %s2744_s19), 1  ;;  %s3722_s25 = smov (!%p255_p6, %s2313_s25), 15 }
  0x11   : > { %s2428_s26 = sshll.u32 %s3720_s19, 7  ;;  %s2315_s27 = sshll.u32 %s3720_s19, 5  ;;  %vm276_vm0 = vcmask (!%p2319_p8), 60416   ;;  %vm279_vm1 = vcmask (!%p2319_p8), 57344   ;;  %vm286_vm2 = vsmask.f32 (!%p2319_p8), 256 }
  0x12   : > { %s2834_s30 = scalar_lea.vmem %s3689_s0, %s2428_s26  ;;  %s2314_s6 = sshll.u32 %s3722_s25, 1  ;;  %v2758_v0 = vmov (!%p2319_p8), 0   ;;  %vm2855_vm3 = vmand (!%p2319_p8), %vm279_vm1, %vm286_vm2  ;;  %vm342_vm4 = vsmask.f32 (!%p2319_p8), 7938  ;;  %v291_v2 = vld [vmem:[#allocation2 + $0xc] sm:$0x1] (!%p2319_p8) }
  0x13   : > { %s259_s7 = sadd.s32 %s2315_s27, %s2314_s6  ;;  %s2317_s12 = sshll.u32 %s3720_s19, 1  ;;  %277 = vst.msk [vmem:[#allocation2] sm:$0xf] (!%p2319_p8), %vm276_vm0, %v2758_v0  ;;  %278 = vst.msk [vmem:[#allocation2 + $0x4] sm:$0xf] (!%p2319_p8), %vm276_vm0, %v2758_v0  ;;  %v292_v4 = vsel (!%p2319_p8), %vm2855_vm3, 0, %v291_v2 }
  0x14   : > { %s2316_s8 = sshll.u32 %s259_s7, 2  ;;  %275 = sbr.rel (%p2319_p8) target bundleno = 150 (0x96), region = 40  ;;  %282 = vst.msk [vmem:[#allocation2 + $0xcc] sm:$0xf] (!%p2319_p8), %vm276_vm0, %v2758_v0  ;;  %283 = vst.msk [vmem:[#allocation2 + $0xd0] sm:$0xf] (!%p2319_p8), %vm276_vm0, %v2758_v0 }
  0x15   : > { %s2839_s11 = scalar_lea.vmem %s3693_s4, %s2316_s8  ;;  %280 = vst.msk [vmem:[#allocation2 + $0x8] sm:$0x1] (!%p2319_p8), %vm279_vm1, %v2758_v0  ;;  %284 = vst.msk [vmem:[#allocation2 + $0xd4] sm:$0x1] (!%p2319_p8), %vm279_vm1, %v2758_v0  ;;  %v294_v3 = vld [vmem:[#allocation2 + $0x18] sm:$0x1] (!%p2319_p8) }
  0x16   : > { %s266_s13 = scalar_select %p265_p7, %s2740_s18, 1 }
  0x17   : > { %v295_v5 = vsel (!%p2319_p8), %vm2855_vm3, 0, %v294_v3  ;;  %v297_v6 = vld [vmem:[#allocation2 + $0x24] sm:$0x1] (!%p2319_p8)  ;;  %v300_v7 = vld [vmem:[#allocation2 + $0x30] sm:$0x1] (!%p2319_p8)  ;;  %vm2882_vm5 = vmand (!%p2319_p8), %vm279_vm1, %vm342_vm4 }
  0x18   : > { %s268_s14 = sadd.s32 %s2317_s12, %s266_s13  ;;  %293 = vst [vmem:[#allocation2 + $0xc] sm:$0x1] (!%p2319_p8), %v292_v4  ;;  %296 = vst [vmem:[#allocation2 + $0x18] sm:$0x1] (!%p2319_p8), %v295_v5  ;;  %v298_v8 = vsel (!%p2319_p8), %vm2855_vm3, 0, %v297_v6  ;;  %v301_v9 = vsel (!%p2319_p8), %vm2855_vm3, 0, %v300_v7 }
  0x19   : > { %s2318_s15 = sshll.u32 %s268_s14, 1  ;;  %v303_v10 = vld [vmem:[#allocation2 + $0x3c] sm:$0x1] (!%p2319_p8)  ;;  %v306_v11 = vld [vmem:[#allocation2 + $0x48] sm:$0x1] (!%p2319_p8)  ;;  %v2479_v45 = vld [vmem:[%s2834_s30] sm:$0xff] (!%p2319_p8)  }
  0x1a   : > { %s2845_s24 = scalar_lea.vmem %s3694_s5, %s2318_s15  ;;  %299 = vst [vmem:[#allocation2 + $0x24] sm:$0x1] (!%p2319_p8), %v298_v8  ;;  %302 = vst [vmem:[#allocation2 + $0x30] sm:$0x1] (!%p2319_p8), %v301_v9  ;;  %v304_v12 = vsel (!%p2319_p8), %vm2855_vm3, 0, %v303_v10  ;;  %v307_v13 = vsel (!%p2319_p8), %vm2855_vm3, 0, %v306_v11  ;;  %v2480_v3 = vunpack.c.l.bf16 (!%p2319_p8), %v2479_v45  ;;  %v2481_v4 = vunpack.c.h.bf16 (!%p2319_p8), %v2479_v45 }
  0x1b   : > { %v309_v14 = vld [vmem:[#allocation2 + $0x54] sm:$0x1]  ;;  %v312_v15 = vld [vmem:[#allocation2 + $0x60] sm:$0x1]  ;;  %305 = vst [vmem:[#allocation2 + $0x3c] sm:$0x1] %v304_v12  ;;  %vm2968_vm7 = vmand %vm276_vm0, %vm342_vm4 }
  0x1c   : > { %308 = vst [vmem:[#allocation2 + $0x48] sm:$0x1] %v307_v13  ;;  %v310_v16 = vsel %vm2855_vm3, 0, %v309_v14  ;;  %v313_v17 = vsel %vm2855_vm3, 0, %v312_v15  ;;  %v315_v18 = vld [vmem:[#allocation2 + $0x6c] sm:$0x1] }
  0x1d   : > { %v318_v19 = vld [vmem:[#allocation2 + $0x78] sm:$0x1]  ;;  %311 = vst [vmem:[#allocation2 + $0x54] sm:$0x1] %v310_v16  ;;  %314 = vst [vmem:[#allocation2 + $0x60] sm:$0x1] %v313_v17 }
  0x1e   : > { %v316_v20 = vsel %vm2855_vm3, 0, %v315_v18  ;;  %v319_v21 = vsel %vm2855_vm3, 0, %v318_v19  ;;  %v321_v22 = vld [vmem:[#allocation2 + $0x84] sm:$0x1]  ;;  %v324_v23 = vld [vmem:[#allocation2 + $0x90] sm:$0x1] }
  0x1f   : > { %317 = vst [vmem:[#allocation2 + $0x6c] sm:$0x1] %v316_v20  ;;  %320 = vst [vmem:[#allocation2 + $0x78] sm:$0x1] %v319_v21  ;;  %v322_v25 = vsel %vm2855_vm3, 0, %v321_v22  ;;  %v325_v26 = vsel %vm2855_vm3, 0, %v324_v23 }
  0x20   : > { %v327_v27 = vld [vmem:[#allocation2 + $0x9c] sm:$0x1]  ;;  %v330_v28 = vld [vmem:[#allocation2 + $0xa8] sm:$0x1]  ;;  %323 = vst [vmem:[#allocation2 + $0x84] sm:$0x1] %v322_v25 }
  0x21   : > { %326 = vst [vmem:[#allocation2 + $0x90] sm:$0x1] %v325_v26  ;;  %v328_v29 = vsel %vm2855_vm3, 0, %v327_v27  ;;  %v331_v30 = vsel %vm2855_vm3, 0, %v330_v28  ;;  %v333_v31 = vld [vmem:[#allocation2 + $0xb4] sm:$0x1] }
  0x22   : > { %v336_v32 = vld [vmem:[#allocation2 + $0xc0] sm:$0x1]  ;;  %329 = vst [vmem:[#allocation2 + $0x9c] sm:$0x1] %v328_v29  ;;  %332 = vst [vmem:[#allocation2 + $0xa8] sm:$0x1] %v331_v30 }
  0x23   : > { %v334_v33 = vsel %vm2855_vm3, 0, %v333_v31  ;;  %v337_v34 = vsel %vm2855_vm3, 0, %v336_v32  ;;  %v347_v35 = vld [vmem:[#allocation2 + $0x14] sm:$0x1]  ;;  %v350_v36 = vld [vmem:[#allocation2 + $0x20] sm:$0x1] }
  0x24   : > { %335 = vst [vmem:[#allocation2 + $0xb4] sm:$0x1] %v334_v33  ;;  %338 = vst [vmem:[#allocation2 + $0xc0] sm:$0x1] %v337_v34  ;;  %v348_v37 = vsel %vm2882_vm5, 0, %v347_v35  ;;  %v351_v38 = vsel %vm2882_vm5, 0, %v350_v36 }
  0x25   : > { %v353_v39 = vld [vmem:[#allocation2 + $0x2c] sm:$0x1]  ;;  %v356_v40 = vld [vmem:[#allocation2 + $0x38] sm:$0x1]  ;;  %349 = vst [vmem:[#allocation2 + $0x14] sm:$0x1] %v348_v37 }
  0x26   : > { %352 = vst [vmem:[#allocation2 + $0x20] sm:$0x1] %v351_v38  ;;  %v354_v41 = vsel %vm2882_vm5, 0, %v353_v39  ;;  %v357_v42 = vsel %vm2882_vm5, 0, %v356_v40  ;;  %v359_v43 = vld [vmem:[#allocation2 + $0x44] sm:$0x1] }
  0x27   : > { %v362_v44 = vld [vmem:[#allocation2 + $0x50] sm:$0x1]  ;;  %355 = vst [vmem:[#allocation2 + $0x2c] sm:$0x1] %v354_v41  ;;  %358 = vst [vmem:[#allocation2 + $0x38] sm:$0x1] %v357_v42 }
  0x28   : > { %v360_v46 = vsel %vm2882_vm5, 0, %v359_v43  ;;  %v363_v47 = vsel %vm2882_vm5, 0, %v362_v44  ;;  %v365_v48 = vld [vmem:[#allocation2 + $0x5c] sm:$0x1]  ;;  %v368_v49 = vld [vmem:[#allocation2 + $0x68] sm:$0x1] }
  0x29   : > { %361 = vst [vmem:[#allocation2 + $0x44] sm:$0x1] %v360_v46  ;;  %364 = vst [vmem:[#allocation2 + $0x50] sm:$0x1] %v363_v47  ;;  %v366_v50 = vsel %vm2882_vm5, 0, %v365_v48  ;;  %v369_v51 = vsel %vm2882_vm5, 0, %v368_v49 }
  0x2a   : > { %v371_v52 = vld [vmem:[#allocation2 + $0x74] sm:$0x1]  ;;  %v374_v53 = vld [vmem:[#allocation2 + $0x80] sm:$0x1]  ;;  %367 = vst [vmem:[#allocation2 + $0x5c] sm:$0x1] %v366_v50 }
  0x2b   : > { %370 = vst [vmem:[#allocation2 + $0x68] sm:$0x1] %v369_v51  ;;  %v372_v54 = vsel %vm2882_vm5, 0, %v371_v52  ;;  %v375_v55 = vsel %vm2882_vm5, 0, %v374_v53  ;;  %v377_v56 = vld [vmem:[#allocation2 + $0x8c] sm:$0x1] }
  0x2c   : > { %v380_v57 = vld [vmem:[#allocation2 + $0x98] sm:$0x1]  ;;  %373 = vst [vmem:[#allocation2 + $0x74] sm:$0x1] %v372_v54  ;;  %376 = vst [vmem:[#allocation2 + $0x80] sm:$0x1] %v375_v55 }
  0x2d   : > { %v378_v58 = vsel %vm2882_vm5, 0, %v377_v56  ;;  %v381_v59 = vsel %vm2882_vm5, 0, %v380_v57  ;;  %v383_v60 = vld [vmem:[#allocation2 + $0xa4] sm:$0x1]  ;;  %v386_v61 = vld [vmem:[#allocation2 + $0xb0] sm:$0x1] }
  0x2e   : > { %379 = vst [vmem:[#allocation2 + $0x8c] sm:$0x1] %v378_v58  ;;  %382 = vst [vmem:[#allocation2 + $0x98] sm:$0x1] %v381_v59  ;;  %v384_v62 = vsel %vm2882_vm5, 0, %v383_v60  ;;  %v387_v63 = vsel %vm2882_vm5, 0, %v386_v61 }
  0x2f   : > { %v389_v0 = vld [vmem:[#allocation2 + $0xbc] sm:$0x1]  ;;  %v392_v2 = vld [vmem:[#allocation2 + $0xc8] sm:$0x1]  ;;  %385 = vst [vmem:[#allocation2 + $0xa4] sm:$0x1] %v384_v62 }
  0x30   : > { %388 = vst [vmem:[#allocation2 + $0xb0] sm:$0x1] %v387_v63  ;;  %v390_v5 = vsel %vm2882_vm5, 0, %v389_v0  ;;  %v393_v6 = vsel %vm2882_vm5, 0, %v392_v2  ;;  %v288_v7 = vld [vmem:[#allocation2] sm:$0x1] }
  0x31   : > { %v339_v8 = vld [vmem:[#allocation2 + $0xcc] sm:$0x1]  ;;  %391 = vst [vmem:[#allocation2 + $0xbc] sm:$0x1] %v390_v5  ;;  %394 = vst [vmem:[#allocation2 + $0xc8] sm:$0x1] %v393_v6 }
  0x32   : > { %v289_v9 = vsel %vm2855_vm3, 0, %v288_v7  ;;  %v340_v10 = vsel %vm2855_vm3, 0, %v339_v8  ;;  %v344_v11 = vld [vmem:[#allocation2 + $0x8] sm:$0x1]  ;;  %v395_v12 = vld [vmem:[#allocation2 + $0xd4] sm:$0x1] }
  0x33   : > { %290 = vst [vmem:[#allocation2] sm:$0x1] %v289_v9  ;;  %341 = vst [vmem:[#allocation2 + $0xcc] sm:$0x1] %v340_v10  ;;  %v345_v13 = vsel %vm2882_vm5, 0, %v344_v11  ;;  %v396_v14 = vsel %vm2882_vm5, 0, %v395_v12 }
  0x34   : > { %v2942_v15 = vld [vmem:[%s3690_s1] ss:$0 sm:$0xff]  ;;  %346 = vst [vmem:[#allocation2 + $0x8] sm:$0x1] %v345_v13  ;;  %397 = vst [vmem:[#allocation2 + $0xd4] sm:$0x1] %v396_v14 }
  0x35   : > { %v2947_v16 = vld [vmem:[%s3691_s2] ss:$0 sm:$0xff]  ;;  %v469_v17 = vmul.f32 %v2480_v3, %v2942_v15  ;;  %v470_v18 = vmul.f32 %v2481_v4, %v2942_v15  ;;  %v2582_v19 = vld [vmem:[%s2834_s30 + $0x8] sm:$0xff]   ;;  %v2583_v24 = vld [vmem:[%s2834_s30 + $0x10] sm:$0xff]   ;;  %vm668_vm6 = vsmask.f32 4368 }
  0x36   : > { %v2484_v22 = vunpack.c.l.bf16 %v2582_v19  ;;  %v2485_v23 = vunpack.c.h.bf16 %v2582_v19  ;;  %v2488_v25 = vunpack.c.l.bf16 %v2583_v24  ;;  %v2489_v26 = vunpack.c.h.bf16 %v2583_v24  ;;  %v2584_v27 = vld [vmem:[%s2834_s30 + $0x18] sm:$0xff]   ;;  %v993_v57 = vld [vmem:[#allocation2 + $0xc] sm:$0xf]  ;;  %vm2976_vm8 = vmor %vm286_vm2, %vm668_vm6 }
  0x37   : > { %v508_v20 = vadd.f32 %v2947_v16, %v469_v17  ;;  %v509_v21 = vadd.f32 %v2947_v16, %v470_v18  ;;  %v2492_v34 = vunpack.c.l.bf16 %v2584_v27  ;;  %v2493_v35 = vunpack.c.h.bf16 %v2584_v27  ;;  %v997_v59 = vld [vmem:[#allocation2 + $0x14] sm:$0x1]  ;;  %v1000_v14 = vld [vmem:[#allocation2 + $0x18] sm:$0xf] }
  0x38   : > { %v471_v30 = vmul.f32 %v2484_v22, %v2942_v15  ;;  %v472_v31 = vmul.f32 %v2485_v23, %v2942_v15  ;;  %v473_v32 = vmul.f32 %v2488_v25, %v2942_v15  ;;  %v474_v33 = vmul.f32 %v2489_v26, %v2942_v15 }
  0x39   : > { %v540_v28 = vmax.f32 %v508_v20, 0.0  ;;  %v541_v29 = vmax.f32 %v509_v21, 0.0  ;;  %v475_v42 = vmul.f32 %v2492_v34, %v2942_v15  ;;  %v476_v43 = vmul.f32 %v2493_v35, %v2942_v15  ;;  %v1004_v20 = vld [vmem:[#allocation2 + $0x20] sm:$0x1] }
  0x3a   : > { %v510_v38 = vadd.f32 %v2947_v16, %v471_v30  ;;  %v511_v39 = vadd.f32 %v2947_v16, %v472_v31  ;;  %v512_v40 = vadd.f32 %v2947_v16, %v473_v32  ;;  %v513_v41 = vadd.f32 %v2947_v16, %v474_v33  ;;  %v2585_v34 = vld [vmem:[%s2834_s30 + $0x20] sm:$0xff]  }
  0x3b   : > { %v2429_v36 = vpack.c.bf16 %v540_v28, %v540_v28  ;;  %v2430_v37 = vpack.c.bf16 %v541_v29, %v541_v29  ;;  %v514_v55 = vadd.f32 %v2947_v16, %v475_v42  ;;  %v515_v56 = vadd.f32 %v2947_v16, %v476_v43  ;;  %v1007_v29 = vld [vmem:[#allocation2 + $0x24] sm:$0xf] }
  0x3c   : > { %v542_v48 = vmax.f32 %v510_v38, 0.0  ;;  %v543_v49 = vmax.f32 %v511_v39, 0.0  ;;  %v544_v50 = vmax.f32 %v512_v40, 0.0  ;;  %v545_v51 = vmax.f32 %v513_v41, 0.0  ;;  %v1011_v38 = vld [vmem:[#allocation2 + $0x2c] sm:$0x1] }
  0x3d   : > { %v671_v44 = vshrl.u32 %v2429_v36, 16  ;;  %v674_v45 = vshll.u32 %v2429_v36, 16  ;;  %v679_v46 = vshrl.u32 %v2430_v37, 16  ;;  %v682_v47 = vshll.u32 %v2430_v37, 16 }
  0x3e   : > { %v2431_v60 = vpack.c.bf16 %v542_v48, %v542_v48  ;;  %v2432_v61 = vpack.c.bf16 %v543_v49, %v543_v49  ;;  %v2433_v62 = vpack.c.bf16 %v544_v50, %v544_v50  ;;  %v2434_v63 = vpack.c.bf16 %v545_v51, %v545_v51  ;;  %v2587_v49 = vld [vmem:[%s2834_s30 + $0x30] sm:$0xff]  }
  0x3f   : > { %v673_v53 = vrot.slane %v671_v44, 7  ;;  %v681_v54 = vrot.slane %v679_v46, 7  ;;  %v546_v23 = vmax.f32 %v514_v55, 0.0  ;;  %v547_v24 = vmax.f32 %v515_v56, 0.0  ;;  %v2586_v44 = vld [vmem:[%s2834_s30 + $0x28] sm:$0xff]  }
  0x40   : > { %v688_v5 = vshrl.u32 %v2431_v60, 16  ;;  %v691_v6 = vshll.u32 %v2431_v60, 16  ;;  %v696_v7 = vshrl.u32 %v2432_v61, 16  ;;  %v699_v8 = vshll.u32 %v2432_v61, 16  ;;  %v1014_v55 = vld [vmem:[#allocation2 + $0x30] sm:$0xf] }
  0x41   : > { %v676_v0 = vor.u32 %v674_v45, %v673_v53  ;;  %v677_v2 = vrot.slane %v673_v53, 4  ;;  %v684_v3 = vor.u32 %v682_v47, %v681_v54  ;;  %v686_v4 = vrot.slane %v681_v54, 4 }
  0x42   : > { %v705_v12 = vshrl.u32 %v2433_v62, 16  ;;  %v690_v13 = vrot.slane %v688_v5, 7  ;;  %v698_v17 = vrot.slane %v696_v7, 7  ;;  %v708_v18 = vshll.u32 %v2433_v62, 16 }
  0x43   : > { %v994_v9 = vsel %vm2968_vm7, %v676_v0, %v993_v57  ;;  %v685_v10 = vsel %vm2976_vm8, %v677_v2, %v684_v3  ;;  %v998_v11 = vsel %vm2855_vm3, %v686_v4, %v997_v59  ;;  %v713_v19 = vshrl.u32 %v2434_v63, 16 }
  0x44   : > { %995 = vst [vmem:[#allocation2 + $0xc] sm:$0xf] %v994_v9  ;;  %996 = vst.msk [vmem:[#allocation2 + $0x10] sm:$0xf] %vm276_vm0, %v685_v10  ;;  %v707_v21 = vrot.slane %v705_v12, 7  ;;  %v716_v22 = vshll.u32 %v2434_v63, 16  ;;  %v693_v25 = vor.u32 %v691_v6, %v690_v13  ;;  %v701_v27 = vor.u32 %v699_v8, %v698_v17 }
  0x45   : > { %999 = vst [vmem:[#allocation2 + $0x14] sm:$0x1] %v998_v11  ;;  %v694_v26 = vrot.slane %v690_v13, 4  ;;  %v703_v28 = vrot.slane %v698_v17, 4  ;;  %v715_v32 = vrot.slane %v713_v19, 7  ;;  %v2435_v33 = vpack.c.bf16 %v546_v23, %v546_v23  ;;  %v3014_v11 = vld [vmem:[%s2834_s30 + $0x38] sm:$0xff]  }
  0x46   : > { %v710_v30 = vor.u32 %v708_v18, %v707_v21  ;;  %v711_v31 = vrot.slane %v707_v21, 4  ;;  %v1001_v35 = vsel %vm2968_vm7, %v693_v25, %v1000_v14  ;;  %v2436_v39 = vpack.c.bf16 %v547_v24, %v547_v24  ;;  %v1018_v63 = vld [vmem:[#allocation2 + $0x38] sm:$0x1] }
  0x47   : > { %v702_v36 = vsel %vm2976_vm8, %v694_v26, %v701_v27  ;;  %v1005_v37 = vsel %vm2855_vm3, %v703_v28, %v1004_v20  ;;  %1002 = vst [vmem:[#allocation2 + $0x18] sm:$0xf] %v1001_v35  ;;  %v718_v41 = vor.u32 %v716_v22, %v715_v32  ;;  %v720_v42 = vrot.slane %v715_v32, 4 }
  0x48   : > { %1003 = vst.msk [vmem:[#allocation2 + $0x1c] sm:$0xf] %vm276_vm0, %v702_v36  ;;  %1006 = vst [vmem:[#allocation2 + $0x20] sm:$0x1] %v1005_v37  ;;  %v1008_v40 = vsel %vm2968_vm7, %v710_v30, %v1007_v29  ;;  %v722_v43 = vshrl.u32 %v2435_v33, 16  ;;  %v725_v45 = vshll.u32 %v2435_v33, 16  ;;  %v2496_v48 = vunpack.c.l.bf16 %v2585_v34 }
  0x49   : > { %1009 = vst [vmem:[#allocation2 + $0x24] sm:$0xf] %v1008_v40  ;;  %v730_v46 = vshrl.u32 %v2436_v39, 16  ;;  %v733_v47 = vshll.u32 %v2436_v39, 16  ;;  %v719_v50 = vsel %vm2976_vm8, %v711_v31, %v718_v41  ;;  %v1012_v51 = vsel %vm2855_vm3, %v720_v42, %v1011_v38  ;;  %v1021_v42 = vld [vmem:[#allocation2 + $0x3c] sm:$0xf] }
  0x4a   : > { %v724_v53 = vrot.slane %v722_v43, 7  ;;  %v2497_v54 = vunpack.c.h.bf16 %v2585_v34  ;;  %1010 = vst.msk [vmem:[#allocation2 + $0x28] sm:$0xf] %vm276_vm0, %v719_v50  ;;  %1013 = vst [vmem:[#allocation2 + $0x2c] sm:$0x1] %v1012_v51  ;;  %v477_v57 = vmul.f32 %v2496_v48, %v2942_v15  ;;  %v2500_v59 = vunpack.c.l.bf16 %v2586_v44 }
  0x4b   : > { %v732_v56 = vrot.slane %v730_v46, 7  ;;  %v2501_v60 = vunpack.c.h.bf16 %v2586_v44  ;;  %v2504_v2 = vunpack.c.l.bf16 %v2587_v49  ;;  %v2505_v21 = vunpack.c.h.bf16 %v2587_v49  ;;  %v1025_v49 = vld [vmem:[#allocation2 + $0x44] sm:$0x1] }
  0x4c   : > { %v727_v61 = vor.u32 %v725_v45, %v724_v53  ;;  %v728_v62 = vrot.slane %v724_v53, 4  ;;  %v478_v0 = vmul.f32 %v2497_v54, %v2942_v15  ;;  %v516_v5 = vadd.f32 %v2947_v16, %v477_v57 }
  0x4d   : > { %v735_v3 = vor.u32 %v733_v47, %v732_v56  ;;  %v737_v4 = vrot.slane %v732_v56, 4  ;;  %v479_v6 = vmul.f32 %v2500_v59, %v2942_v15  ;;  %v480_v9 = vmul.f32 %v2501_v60, %v2942_v15 }
  0x4e   : > { %v1015_v7 = vsel %vm2968_vm7, %v727_v61, %v1014_v55  ;;  %v517_v8 = vadd.f32 %v2947_v16, %v478_v0  ;;  %v481_v10 = vmul.f32 %v2504_v2, %v2942_v15  ;;  %v548_v14 = vmax.f32 %v516_v5, 0.0  ;;  %v1028_v55 = vld [vmem:[#allocation2 + $0x48] sm:$0xf]  ;;  %v1035_v5 = vld [vmem:[#allocation2 + $0x54] sm:$0xf] }
  0x4f   : > { %1016 = vst [vmem:[#allocation2 + $0x30] sm:$0xf] %v1015_v7  ;;  %v736_v12 = vsel %vm2976_vm8, %v728_v62, %v735_v3  ;;  %v1019_v13 = vsel %vm2855_vm3, %v737_v4, %v1018_v63  ;;  %v518_v17 = vadd.f32 %v2947_v16, %v479_v6  ;;  %v519_v19 = vadd.f32 %v2947_v16, %v480_v9  ;;  %v1032_v62 = vld [vmem:[#allocation2 + $0x50] sm:$0x1]  ;;  %v2589_v6 = vld [vmem:[%s2834_s30 + $0x40] sm:$0xff]  }
  0x50   : > { %1017 = vst.msk [vmem:[#allocation2 + $0x34] sm:$0xf] %vm276_vm0, %v736_v12  ;;  %1020 = vst [vmem:[#allocation2 + $0x38] sm:$0x1] %v1019_v13  ;;  %v549_v18 = vmax.f32 %v517_v8, 0.0  ;;  %v520_v20 = vadd.f32 %v2947_v16, %v481_v10  ;;  %v2437_v22 = vpack.c.bf16 %v548_v14, %v548_v14  ;;  %v2508_v24 = vunpack.c.l.bf16 %v3014_v11 }
  0x51   : > { %v550_v23 = vmax.f32 %v518_v17, 0.0  ;;  %v2509_v25 = vunpack.c.h.bf16 %v3014_v11  ;;  %v551_v27 = vmax.f32 %v519_v19, 0.0  ;;  %v482_v29 = vmul.f32 %v2505_v21, %v2942_v15  ;;  %v2590_v11 = vld [vmem:[%s2834_s30 + $0x48] sm:$0xff]  }
  0x52   : > { %v2438_v26 = vpack.c.bf16 %v549_v18, %v549_v18  ;;  %v552_v28 = vmax.f32 %v520_v20, 0.0  ;;  %v739_v30 = vshrl.u32 %v2437_v22, 16  ;;  %v742_v31 = vshll.u32 %v2437_v22, 16  ;;  %v3047_v18 = vld [vmem:[%s2834_s30 + $0x50] sm:$0xff]  }
  0x53   : > { %v2439_v32 = vpack.c.bf16 %v550_v23, %v550_v23  ;;  %v483_v33 = vmul.f32 %v2508_v24, %v2942_v15  ;;  %v2440_v36 = vpack.c.bf16 %v551_v27, %v551_v27  ;;  %v521_v41 = vadd.f32 %v2947_v16, %v482_v29 }
  0x54   : > { %v747_v34 = vshrl.u32 %v2438_v26, 16  ;;  %v750_v35 = vshll.u32 %v2438_v26, 16  ;;  %v2441_v37 = vpack.c.bf16 %v552_v28, %v552_v28  ;;  %v741_v38 = vrot.slane %v739_v30, 7 }
  0x55   : > { %v756_v39 = vshrl.u32 %v2439_v32, 16  ;;  %v759_v40 = vshll.u32 %v2439_v32, 16  ;;  %v764_v44 = vshrl.u32 %v2440_v36, 16  ;;  %v767_v45 = vshll.u32 %v2440_v36, 16 }
  0x56   : > { %v749_v43 = vrot.slane %v747_v34, 7  ;;  %v773_v46 = vshrl.u32 %v2441_v37, 16  ;;  %v744_v47 = vor.u32 %v742_v31, %v741_v38  ;;  %v745_v48 = vrot.slane %v741_v38, 4  ;;  %v1039_v31 = vld [vmem:[#allocation2 + $0x5c] sm:$0x1] }
  0x57   : > { %v758_v50 = vrot.slane %v756_v39, 7  ;;  %v776_v51 = vshll.u32 %v2441_v37, 16  ;;  %v766_v56 = vrot.slane %v764_v44, 7  ;;  %v553_v63 = vmax.f32 %v521_v41, 0.0 }
  0x58   : > { %v752_v53 = vor.u32 %v750_v35, %v749_v43  ;;  %v754_v54 = vrot.slane %v749_v43, 4  ;;  %v775_v57 = vrot.slane %v773_v46, 7  ;;  %v1022_v59 = vsel %vm2968_vm7, %v744_v47, %v1021_v42 }
  0x59   : > { %v761_v60 = vor.u32 %v759_v40, %v758_v50  ;;  %v762_v61 = vrot.slane %v758_v50, 4  ;;  %1023 = vst [vmem:[#allocation2 + $0x3c] sm:$0xf] %v1022_v59  ;;  %v769_v3 = vor.u32 %v767_v45, %v766_v56  ;;  %v771_v4 = vrot.slane %v766_v56, 4 }
  0x5a   : > { %v753_v0 = vsel %vm2976_vm8, %v745_v48, %v752_v53  ;;  %v1026_v2 = vsel %vm2855_vm3, %v754_v54, %v1025_v49  ;;  %v778_v8 = vor.u32 %v776_v51, %v775_v57  ;;  %v2442_v9 = vpack.c.bf16 %v553_v63, %v553_v63  ;;  %v1042_v53 = vld [vmem:[#allocation2 + $0x60] sm:$0xf]  ;;  %v1046_v63 = vld [vmem:[#allocation2 + $0x68] sm:$0x1] }
  0x5b   : > { %1024 = vst.msk [vmem:[#allocation2 + $0x40] sm:$0xf] %vm276_vm0, %v753_v0  ;;  %1027 = vst [vmem:[#allocation2 + $0x44] sm:$0x1] %v1026_v2  ;;  %v1029_v7 = vsel %vm2968_vm7, %v761_v60, %v1028_v55  ;;  %v779_v10 = vrot.slane %v775_v57, 4  ;;  %v770_v12 = vsel %vm2976_vm8, %v762_v61, %v769_v3  ;;  %v1033_v13 = vsel %vm2855_vm3, %v771_v4, %v1032_v62 }
  0x5c   : > { %1030 = vst [vmem:[#allocation2 + $0x48] sm:$0xf] %v1029_v7  ;;  %v522_v14 = vadd.f32 %v2947_v16, %v483_v33  ;;  %v484_v17 = vmul.f32 %v2509_v25, %v2942_v15  ;;  %1031 = vst.msk [vmem:[#allocation2 + $0x4c] sm:$0xf] %vm276_vm0, %v770_v12  ;;  %v1036_v19 = vsel %vm2968_vm7, %v778_v8, %v1035_v5  ;;  %v781_v20 = vshrl.u32 %v2442_v9, 16 }
  0x5d   : > { %1034 = vst [vmem:[#allocation2 + $0x50] sm:$0x1] %v1033_v13  ;;  %v784_v21 = vshll.u32 %v2442_v9, 16  ;;  %v2512_v22 = vunpack.c.l.bf16 %v2589_v6  ;;  %1037 = vst [vmem:[#allocation2 + $0x54] sm:$0xf] %v1036_v19  ;;  %v2513_v26 = vunpack.c.h.bf16 %v2589_v6  ;;  %v2516_v27 = vunpack.c.l.bf16 %v2590_v11 }
  0x5e   : > { %v554_v23 = vmax.f32 %v522_v14, 0.0  ;;  %v523_v24 = vadd.f32 %v2947_v16, %v484_v17  ;;  %v783_v28 = vrot.slane %v781_v20, 7  ;;  %v2517_v29 = vunpack.c.h.bf16 %v2590_v11  ;;  %v1049_v17 = vld [vmem:[#allocation2 + $0x6c] sm:$0xf] }
  0x5f   : > { %v485_v25 = vmul.f32 %v2512_v22, %v2942_v15  ;;  %v2520_v30 = vunpack.c.l.bf16 %v3047_v18  ;;  %v486_v34 = vmul.f32 %v2513_v26, %v2942_v15  ;;  %v487_v35 = vmul.f32 %v2516_v27, %v2942_v15 }
  0x60   : > { %v2443_v32 = vpack.c.bf16 %v554_v23, %v554_v23  ;;  %v555_v33 = vmax.f32 %v523_v24, 0.0  ;;  %v786_v36 = vor.u32 %v784_v21, %v783_v28  ;;  %v788_v37 = vrot.slane %v783_v28, 4  ;;  %v1053_v23 = vld [vmem:[#allocation2 + $0x74] sm:$0x1] }
  0x61   : > { %v524_v38 = vadd.f32 %v2947_v16, %v485_v25  ;;  %v488_v39 = vmul.f32 %v2517_v29, %v2942_v15  ;;  %v525_v43 = vadd.f32 %v2947_v16, %v486_v34  ;;  %v526_v47 = vadd.f32 %v2947_v16, %v487_v35  ;;  %v1056_v25 = vld [vmem:[#allocation2 + $0x78] sm:$0xf] }
  0x62   : > { %v790_v40 = vshrl.u32 %v2443_v32, 16  ;;  %v793_v41 = vshll.u32 %v2443_v32, 16  ;;  %v2444_v42 = vpack.c.bf16 %v555_v33, %v555_v33  ;;  %v787_v44 = vsel %vm2976_vm8, %v779_v10, %v786_v36  ;;  %v2593_v36 = vld [vmem:[%s2834_s30 + $0x60] sm:$0xff]  }
  0x63   : > { %v1040_v45 = vsel %vm2855_vm3, %v788_v37, %v1039_v31  ;;  %v556_v46 = vmax.f32 %v524_v38, 0.0  ;;  %1038 = vst.msk [vmem:[#allocation2 + $0x58] sm:$0xf] %vm276_vm0, %v787_v44  ;;  %v557_v51 = vmax.f32 %v525_v43, 0.0  ;;  %v558_v55 = vmax.f32 %v526_v47, 0.0  ;;  %v2592_v31 = vld [vmem:[%s2834_s30 + $0x58] sm:$0xff]  }
  0x64   : > { %1041 = vst [vmem:[#allocation2 + $0x5c] sm:$0x1] %v1040_v45  ;;  %v792_v48 = vrot.slane %v790_v40, 7  ;;  %v798_v49 = vshrl.u32 %v2444_v42, 16  ;;  %v801_v50 = vshll.u32 %v2444_v42, 16  ;;  %v527_v56 = vadd.f32 %v2947_v16, %v488_v39 }
  0x65   : > { %v2445_v54 = vpack.c.bf16 %v556_v46, %v556_v46  ;;  %v489_v57 = vmul.f32 %v2520_v30, %v2942_v15  ;;  %v2446_v62 = vpack.c.bf16 %v557_v51, %v557_v51  ;;  %v2447_v3 = vpack.c.bf16 %v558_v55, %v558_v55  ;;  %v1060_v42 = vld [vmem:[#allocation2 + $0x80] sm:$0x1] }
  0x66   : > { %v795_v59 = vor.u32 %v793_v41, %v792_v48  ;;  %v796_v60 = vrot.slane %v792_v48, 4  ;;  %v800_v61 = vrot.slane %v798_v49, 7  ;;  %v559_v4 = vmax.f32 %v527_v56, 0.0 }
  0x67   : > { %v807_v0 = vshrl.u32 %v2445_v54, 16  ;;  %v810_v2 = vshll.u32 %v2445_v54, 16  ;;  %v815_v8 = vshrl.u32 %v2446_v62, 16  ;;  %v818_v10 = vshll.u32 %v2446_v62, 16  ;;  %v2594_v54 = vld [vmem:[%s2834_s30 + $0x68] sm:$0xff]  }
  0x68   : > { %v1043_v5 = vsel %vm2968_vm7, %v795_v59, %v1042_v53  ;;  %v803_v6 = vor.u32 %v801_v50, %v800_v61  ;;  %v805_v7 = vrot.slane %v800_v61, 4  ;;  %v824_v11 = vshrl.u32 %v2447_v3, 16 }
  0x69   : > { %1044 = vst [vmem:[#allocation2 + $0x60] sm:$0xf] %v1043_v5  ;;  %v809_v9 = vrot.slane %v807_v0, 7  ;;  %v827_v12 = vshll.u32 %v2447_v3, 16  ;;  %v817_v19 = vrot.slane %v815_v8, 7  ;;  %v2448_v20 = vpack.c.bf16 %v559_v4, %v559_v4 }
  0x6a   : > { %v804_v13 = vsel %vm2976_vm8, %v796_v60, %v803_v6  ;;  %v1047_v14 = vsel %vm2855_vm3, %v805_v7, %v1046_v63  ;;  %v826_v24 = vrot.slane %v824_v11, 7  ;;  %v528_v26 = vadd.f32 %v2947_v16, %v489_v57  ;;  %v1063_v0 = vld [vmem:[#allocation2 + $0x84] sm:$0xf] }
  0x6b   : > { %1045 = vst.msk [vmem:[#allocation2 + $0x64] sm:$0xf] %vm276_vm0, %v804_v13  ;;  %1048 = vst [vmem:[#allocation2 + $0x68] sm:$0x1] %v1047_v14  ;;  %v812_v21 = vor.u32 %v810_v2, %v809_v9  ;;  %v813_v22 = vrot.slane %v809_v9, 4  ;;  %v820_v27 = vor.u32 %v818_v10, %v817_v19  ;;  %v822_v28 = vrot.slane %v817_v19, 4 }
  0x6c   : > { %v832_v29 = vshrl.u32 %v2448_v20, 16  ;;  %v835_v30 = vshll.u32 %v2448_v20, 16  ;;  %v829_v33 = vor.u32 %v827_v12, %v826_v24  ;;  %v830_v34 = vrot.slane %v826_v24, 4 }
  0x6d   : > { %v1050_v32 = vsel %vm2968_vm7, %v812_v21, %v1049_v17  ;;  %v560_v35 = vmax.f32 %v528_v26, 0.0  ;;  %v821_v37 = vsel %vm2976_vm8, %v813_v22, %v820_v27  ;;  %v1054_v38 = vsel %vm2855_vm3, %v822_v28, %v1053_v23 }
  0x6e   : > { %1051 = vst [vmem:[#allocation2 + $0x6c] sm:$0xf] %v1050_v32  ;;  %v834_v39 = vrot.slane %v832_v29, 7  ;;  %v2521_v40 = vunpack.c.h.bf16 %v3047_v18  ;;  %1052 = vst.msk [vmem:[#allocation2 + $0x70] sm:$0xf] %vm276_vm0, %v821_v37  ;;  %v1057_v41 = vsel %vm2968_vm7, %v829_v33, %v1056_v25  ;;  %v2524_v44 = vunpack.c.l.bf16 %v2592_v31 }
  0x6f   : > { %1055 = vst [vmem:[#allocation2 + $0x74] sm:$0x1] %v1054_v38  ;;  %v2449_v43 = vpack.c.bf16 %v560_v35, %v560_v35  ;;  %v2525_v45 = vunpack.c.h.bf16 %v2592_v31  ;;  %1058 = vst [vmem:[#allocation2 + $0x78] sm:$0xf] %v1057_v41  ;;  %v2528_v49 = vunpack.c.l.bf16 %v2593_v36  ;;  %v2529_v63 = vunpack.c.h.bf16 %v2593_v36  ;;  %v1067_v33 = vld [vmem:[#allocation2 + $0x8c] sm:$0x1] }
  0x70   : > { %v837_v46 = vor.u32 %v835_v30, %v834_v39  ;;  %v839_v47 = vrot.slane %v834_v39, 4  ;;  %v490_v48 = vmul.f32 %v2521_v40, %v2942_v15  ;;  %v491_v18 = vmul.f32 %v2524_v44, %v2942_v15  ;;  %v1070_v40 = vld [vmem:[#allocation2 + $0x90] sm:$0xf]  ;;  %v1074_v41 = vld [vmem:[#allocation2 + $0x98] sm:$0x1] }
  0x71   : > { %v841_v50 = vshrl.u32 %v2449_v43, 16  ;;  %v844_v51 = vshll.u32 %v2449_v43, 16  ;;  %v492_v53 = vmul.f32 %v2525_v45, %v2942_v15  ;;  %v493_v59 = vmul.f32 %v2528_v49, %v2942_v15 }
  0x72   : > { %v838_v55 = vsel %vm2976_vm8, %v830_v34, %v837_v46  ;;  %v1061_v56 = vsel %vm2855_vm3, %v839_v47, %v1060_v42  ;;  %v529_v57 = vadd.f32 %v2947_v16, %v490_v48  ;;  %v530_v61 = vadd.f32 %v2947_v16, %v491_v18  ;;  %v1077_v48 = vld [vmem:[#allocation2 + $0x9c] sm:$0xf]  ;;  %v2595_v18 = vld [vmem:[%s2834_s30 + $0x70] sm:$0xff]  }
  0x73   : > { %1059 = vst.msk [vmem:[#allocation2 + $0x7c] sm:$0xf] %vm276_vm0, %v838_v55  ;;  %1062 = vst [vmem:[#allocation2 + $0x80] sm:$0x1] %v1061_v56  ;;  %v843_v60 = vrot.slane %v841_v50, 7  ;;  %v531_v62 = vadd.f32 %v2947_v16, %v492_v53  ;;  %v532_v3 = vadd.f32 %v2947_v16, %v493_v59  ;;  %v2532_v4 = vunpack.c.l.bf16 %v2594_v54 }
  0x74   : > { %v561_v2 = vmax.f32 %v529_v57, 0.0  ;;  %v2533_v5 = vunpack.c.h.bf16 %v2594_v54  ;;  %v562_v8 = vmax.f32 %v530_v61, 0.0  ;;  %v494_v12 = vmul.f32 %v2529_v63, %v2942_v15  ;;  %v2596_v57 = vld [vmem:[%s2834_s30 + $0x78] sm:$0xff]  }
  0x75   : > { %v846_v6 = vor.u32 %v844_v51, %v843_v60  ;;  %v847_v7 = vrot.slane %v843_v60, 4  ;;  %v563_v9 = vmax.f32 %v531_v62, 0.0  ;;  %v564_v11 = vmax.f32 %v532_v3, 0.0 }
  0x76   : > { %v2450_v10 = vpack.c.bf16 %v561_v2, %v561_v2  ;;  %v495_v13 = vmul.f32 %v2532_v4, %v2942_v15  ;;  %v2451_v17 = vpack.c.bf16 %v562_v8, %v562_v8  ;;  %v496_v20 = vmul.f32 %v2533_v5, %v2942_v15  ;;  %v1081_v4 = vld [vmem:[#allocation2 + $0xa4] sm:$0x1] }
  0x77   : > { %v1064_v14 = vsel %vm2968_vm7, %v846_v6, %v1063_v0  ;;  %v2452_v19 = vpack.c.bf16 %v563_v9, %v563_v9  ;;  %v2453_v23 = vpack.c.bf16 %v564_v11, %v564_v11  ;;  %v533_v24 = vadd.f32 %v2947_v16, %v494_v12 }
  0x78   : > { %1065 = vst [vmem:[#allocation2 + $0x84] sm:$0xf] %v1064_v14  ;;  %v849_v21 = vshrl.u32 %v2450_v10, 16  ;;  %v852_v22 = vshll.u32 %v2450_v10, 16  ;;  %v858_v26 = vshrl.u32 %v2451_v17, 16  ;;  %v861_v27 = vshll.u32 %v2451_v17, 16 }
  0x79   : > { %v866_v28 = vshrl.u32 %v2452_v19, 16  ;;  %v869_v25 = vshll.u32 %v2452_v19, 16  ;;  %v875_v30 = vshrl.u32 %v2453_v23, 16  ;;  %v878_v31 = vshll.u32 %v2453_v23, 16 }
  0x7a   : > { %v851_v29 = vrot.slane %v849_v21, 7  ;;  %v565_v32 = vmax.f32 %v533_v24, 0.0  ;;  %v860_v34 = vrot.slane %v858_v26, 7  ;;  %v534_v36 = vadd.f32 %v2947_v16, %v495_v13 }
  0x7b   : > { %v868_v35 = vrot.slane %v866_v28, 7  ;;  %v535_v37 = vadd.f32 %v2947_v16, %v496_v20  ;;  %v877_v42 = vrot.slane %v875_v30, 7  ;;  %v2536_v2 = vunpack.c.l.bf16 %v2595_v18 }
  0x7c   : > { %v854_v38 = vor.u32 %v852_v22, %v851_v29  ;;  %v856_v39 = vrot.slane %v851_v29, 4  ;;  %v2454_v43 = vpack.c.bf16 %v565_v32, %v565_v32  ;;  %v863_v44 = vor.u32 %v861_v27, %v860_v34  ;;  %v1088_v29 = vld [vmem:[#allocation2 + $0xb0] sm:$0x1] }
  0x7d   : > { %v864_v45 = vrot.slane %v860_v34, 4  ;;  %v871_v46 = vor.u32 %v869_v25, %v868_v35  ;;  %v873_v47 = vrot.slane %v868_v35, 4  ;;  %v880_v51 = vor.u32 %v878_v31, %v877_v42  ;;  %v1084_v25 = vld [vmem:[#allocation2 + $0xa8] sm:$0xf] }
  0x7e   : > { %v855_v49 = vsel %vm2976_vm8, %v847_v7, %v854_v38  ;;  %v1068_v50 = vsel %vm2855_vm3, %v856_v39, %v1067_v33  ;;  %v1071_v53 = vsel %vm2968_vm7, %v863_v44, %v1070_v40  ;;  %v883_v56 = vshrl.u32 %v2454_v43, 16 }
  0x7f   : > { %1066 = vst.msk [vmem:[#allocation2 + $0x88] sm:$0xf] %vm276_vm0, %v855_v49  ;;  %1069 = vst [vmem:[#allocation2 + $0x8c] sm:$0x1] %v1068_v50  ;;  %v872_v54 = vsel %vm2976_vm8, %v864_v45, %v871_v46  ;;  %v1075_v55 = vsel %vm2855_vm3, %v873_v47, %v1074_v41  ;;  %v1078_v59 = vsel %vm2968_vm7, %v880_v51, %v1077_v48  ;;  %v886_v60 = vshll.u32 %v2454_v43, 16 }
  0x80   : > { %1072 = vst [vmem:[#allocation2 + $0x90] sm:$0xf] %v1071_v53  ;;  %1073 = vst.msk [vmem:[#allocation2 + $0x94] sm:$0xf] %vm276_vm0, %v872_v54  ;;  %v566_v61 = vmax.f32 %v534_v36, 0.0  ;;  %v567_v62 = vmax.f32 %v535_v37, 0.0  ;;  %v2537_v3 = vunpack.c.h.bf16 %v2595_v18  ;;  %v2540_v7 = vunpack.c.l.bf16 %v2596_v57 }
  0x81   : > { %1076 = vst [vmem:[#allocation2 + $0x98] sm:$0x1] %v1075_v55  ;;  %1079 = vst [vmem:[#allocation2 + $0x9c] sm:$0xf] %v1078_v59  ;;  %v881_v63 = vrot.slane %v877_v42, 4  ;;  %v885_v0 = vrot.slane %v883_v56, 7  ;;  %v2541_v8 = vunpack.c.h.bf16 %v2596_v57  ;;  %v497_v11 = vmul.f32 %v2536_v2, %v2942_v15 }
  0x82   : > { %v2455_v5 = vpack.c.bf16 %v566_v61, %v566_v61  ;;  %v2456_v6 = vpack.c.bf16 %v567_v62, %v567_v62  ;;  %v498_v12 = vmul.f32 %v2537_v3, %v2942_v15  ;;  %v499_v27 = vmul.f32 %v2540_v7, %v2942_v15  ;;  %v1091_v49 = vld [vmem:[#allocation2 + $0xb4] sm:$0xf]  ;;  %v1095_v50 = vld [vmem:[#allocation2 + $0xbc] sm:$0x1] }
  0x83   : > { %v888_v9 = vor.u32 %v886_v60, %v885_v0  ;;  %v890_v10 = vrot.slane %v885_v0, 4  ;;  %v536_v22 = vadd.f32 %v2947_v16, %v497_v11  ;;  %v500_v28 = vmul.f32 %v2541_v8, %v2942_v15 }
  0x84   : > { %v892_v13 = vshrl.u32 %v2455_v5, 16  ;;  %v895_v14 = vshll.u32 %v2455_v5, 16  ;;  %v900_v17 = vshrl.u32 %v2456_v6, 16  ;;  %v903_v19 = vshll.u32 %v2456_v6, 16  ;;  %v1102_v5 = vld [vmem:[#allocation2 + $0xc8] sm:$0x1] }
  0x85   : > { %v889_v20 = vsel %vm2976_vm8, %v881_v63, %v888_v9  ;;  %v1082_v21 = vsel %vm2855_vm3, %v890_v10, %v1081_v4  ;;  %v537_v23 = vadd.f32 %v2947_v16, %v498_v12  ;;  %v568_v30 = vmax.f32 %v536_v22, 0.0  ;;  %v1098_v4 = vld [vmem:[#allocation2 + $0xc0] sm:$0xf] }
  0x86   : > { %1080 = vst.msk [vmem:[#allocation2 + $0xa0] sm:$0xf] %vm276_vm0, %v889_v20  ;;  %1083 = vst [vmem:[#allocation2 + $0xa4] sm:$0x1] %v1082_v21  ;;  %v894_v24 = vrot.slane %v892_v13, 7  ;;  %v902_v26 = vrot.slane %v900_v17, 7  ;;  %v538_v38 = vadd.f32 %v2947_v16, %v499_v27  ;;  %v539_v39 = vadd.f32 %v2947_v16, %v500_v28 }
  0x87   : > { %v569_v31 = vmax.f32 %v537_v23, 0.0  ;;  %v2457_v36 = vpack.c.bf16 %v568_v30, %v568_v30 }
  0x88   : > { %v897_v32 = vor.u32 %v895_v14, %v894_v24  ;;  %v898_v33 = vrot.slane %v894_v24, 4  ;;  %v905_v34 = vor.u32 %v903_v19, %v902_v26  ;;  %v907_v35 = vrot.slane %v902_v26, 4 }
  0x89   : > { %v2458_v37 = vpack.c.bf16 %v569_v31, %v569_v31  ;;  %v909_v42 = vshrl.u32 %v2457_v36, 16  ;;  %v912_v43 = vshll.u32 %v2457_v36, 16  ;;  %v570_v46 = vmax.f32 %v538_v38, 0.0 }
  0x8a   : > { %v1085_v40 = vsel %vm2968_vm7, %v897_v32, %v1084_v25  ;;  %v906_v15 = vsel %vm2976_vm8, %v898_v33, %v905_v34  ;;  %v1089_v41 = vsel %vm2855_vm3, %v907_v35, %v1088_v29  ;;  %v571_v47 = vmax.f32 %v539_v39, 0.0 }
  0x8b   : > { %1086 = vst [vmem:[#allocation2 + $0xa8] sm:$0xf] %v1085_v40  ;;  %1087 = vst.msk [vmem:[#allocation2 + $0xac] sm:$0xf] %vm276_vm0, %v906_v15  ;;  %v917_v44 = vshrl.u32 %v2458_v37, 16  ;;  %v920_v45 = vshll.u32 %v2458_v37, 16  ;;  %v2459_v51 = vpack.c.bf16 %v570_v46, %v570_v46 }
  0x8c   : > { %1090 = vst [vmem:[#allocation2 + $0xb0] sm:$0x1] %v1089_v41  ;;  %v911_v16 = vrot.slane %v909_v42, 7  ;;  %v2460_v18 = vpack.c.bf16 %v571_v47, %v571_v47 }
  0x8d   : > { %v919_v48 = vrot.slane %v917_v44, 7  ;;  %v926_v57 = vshrl.u32 %v2459_v51, 16  ;;  %v929_v59 = vshll.u32 %v2459_v51, 16 }
  0x8e   : > { %v914_v53 = vor.u32 %v912_v43, %v911_v16  ;;  %v915_v54 = vrot.slane %v911_v16, 4  ;;  %v934_v60 = vshrl.u32 %v2460_v18, 16  ;;  %v937_v61 = vshll.u32 %v2460_v18, 16 }
  0x8f   : > { %v922_v55 = vor.u32 %v920_v45, %v919_v48  ;;  %v924_v56 = vrot.slane %v919_v48, 4  ;;  %v928_v2 = vrot.slane %v926_v57, 7 }
  0x90   : > { %v1092_v62 = vsel %vm2968_vm7, %v914_v53, %v1091_v49  ;;  %v936_v3 = vrot.slane %v934_v60, 7 }
  0x91   : > { %v923_v63 = vsel %vm2976_vm8, %v915_v54, %v922_v55  ;;  %v1096_v0 = vsel %vm2855_vm3, %v924_v56, %v1095_v50  ;;  %1093 = vst [vmem:[#allocation2 + $0xb4] sm:$0xf] %v1092_v62  ;;  %v931_v6 = vor.u32 %v929_v59, %v928_v2  ;;  %v932_v7 = vrot.slane %v928_v2, 4 }
  0x92   : > { %1094 = vst.msk [vmem:[#allocation2 + $0xb8] sm:$0xf] %vm276_vm0, %v923_v63  ;;  %1097 = vst [vmem:[#allocation2 + $0xbc] sm:$0x1] %v1096_v0  ;;  %v939_v8 = vor.u32 %v937_v61, %v936_v3  ;;  %v941_v9 = vrot.slane %v936_v3, 4 }
  0x93   : > { %v1099_v10 = vsel %vm2968_vm7, %v931_v6, %v1098_v4 }
  0x94   : > { %v940_v11 = vsel %vm2976_vm8, %v932_v7, %v939_v8  ;;  %v1103_v12 = vsel %vm2855_vm3, %v941_v9, %v1102_v5  ;;  %1100 = vst [vmem:[#allocation2 + $0xc0] sm:$0xf] %v1099_v10 }
  0x95   : > { %1101 = vst.msk [vmem:[#allocation2 + $0xc4] sm:$0xf] %vm276_vm0, %v940_v11  ;;  %1104 = vst [vmem:[#allocation2 + $0xc8] sm:$0x1] %v1103_v12 }
  0x96 PF: > { %s2461_s28 = smul.u32 96, %s2740_s18  ;;  %vm1187_vm9 = vcmask 64512   ;;  %vm1196_vm10 = vsmask.f32 3328  ;;  %vm1197_vm11 = vsmask.f32 7440 }
  0x97   : > { %vm1456_vm12 = vcmask 1042432   ;;  %vm1457_vm13 = vcmask 1046532   ;;  %s2759_s18 = smov 24   ;;  %vm3208_vm15 = vmor %vm1196_vm10, %vm1197_vm11  ;;  %s2760_s30 = smov 16   ;;  %vm1925_vm0 = vcmask 1043456   ;;  %vm1439_vm1 = vcmask 130112  }
  0x98   : > { %s3161_s29 = scalar_lea.vmem [#allocation2], %s2461_s28  ;;  %vm3197_vm14 = vmor %vm1456_vm12, %vm1457_vm13  ;;  %s2761_s6 = smov 8   ;;  %vm1563_vm2 = vcmask 195712   ;;  %vm1601_vm3 = vcmask 261312   ;;  %vm1661_vm4 = vcmask 326912   ;;  %vm1705_vm5 = vcmask 392512  }
  0x99   : > { %s2762_s12 = smov 32   ;;  %s2763_s15 = smov 40   ;;  %vm1743_vm6 = vcmask 458112   ;;  %vm1803_vm7 = vcmask 523712   ;;  %vm1847_vm8 = vcmask 589312   ;;  %vm2084_vm10 = vcmask 1040384  }
  0x9a   : > { %s2764_s19 = smov 48   ;;  %s2765_s25 = smov 56  }
  0x9b   : > { %s2766_s26 = smov 64  }
  0x9c   : > { %v1112_v1 = vld [vmem:[%s3161_s29 + $0xc] sm:$0xf]  ;;  %v1113_v52 = vld [vmem:[%s3161_s29 + $0x10] sm:$0xf]  ;;  %v3166_v58 = vld [vmem:[%s3161_s29 + $0x18] sm:$0xf] }
  0x9d   : > { %v2358_v13 = vcombine.low %v1112_v1, %v1113_v52  ;;  %v1224_v14 = vshrl.u32 %v1112_v1, 16  ;;  %v1227_v17 = vshll.u32 %v1112_v1, 16  ;;  %v1233_v19 = vshll.u32 %v1113_v52, 16  ;;  %v3169_v20 = vld [vmem:[%s3161_s29 + $0x1c] sm:$0xf] }
  0x9e   : > { %v1237_v21 = vshrl.u32 %v1113_v52, 16  ;;  %v3173_v22 = vcombine.low %v3166_v58, %v3169_v20  ;;  %v1248_v23 = vshrl.u32 %v3166_v58, 16  ;;  %v1251_v24 = vshll.u32 %v3166_v58, 16  ;;  %v3178_v26 = vld [vmem:[%s3161_s29] sm:$0xf] }
  0x9f   : > { %v1226_v27 = vrot.slane %v1224_v14, 4  ;;  %v1229_v28 = vrot.slane %v1227_v17, 5  ;;  %1577 = vrot.lane.b32.xlu0 %v2358_v13, %s2759_s18  ;;  %1189 = vst.msk [vmem:[#allocation3 + $0x8] sm:$0xff] %vm1187_vm9, %v2358_v13  ;;  %v1261_v25 = vshrl.u32 %v3169_v20, 16  ;;  %v3184_v29 = vld [vmem:[%s3161_s29 + $0x4] sm:$0xf] }
  0xa0   : > { %v1200_v30 = vshrl.u32 %v3178_v26, 16  ;;  %v1239_v31 = vrot.slane %v1237_v21, 4  ;;  %1579 = vrot.lane.b32.xlu1 %v3173_v22, %s2759_s18  ;;  %1190 = vst.msk [vmem:[#allocation3 + $0x10] sm:$0xff] %vm1187_vm9, %v3173_v22  ;;  %v1111_v32 = vld [vmem:[%s3161_s29 + $0x8] sm:$0x1]  ;;  %v1203_v33 = vshll.u32 %v3178_v26, 16 }
  0xa1   : > { %v1209_v34 = vshll.u32 %v3184_v29, 16  ;;  %v1213_v35 = vshrl.u32 %v3184_v29, 16  ;;  %v1219_v38 = vshll.u32 %v1111_v32, 16  ;;  %v2373_v39 = vrot.slane %v3178_v26, 9  ;;  %v1114_v15 = vld [vmem:[%s3161_s29 + $0x14] sm:$0x1] }
  0xa2   : > { %v1202_v37 = vrot.slane %v1200_v30, 4  ;;  %v1461_v40 = vrot.slane %v3184_v29, 5  ;;  %v1205_v41 = vrot.slane %v1203_v33, 5  ;;  %v1464_v44 = vrot.slane %v1111_v32, 5  ;;  %v1117_v3 = vld [vmem:[%s3161_s29 + $0x20] sm:$0x1] }
  0xa3   : > { %v1211_v42 = vrot.slane %v1209_v34, 5  ;;  %v1215_v43 = vrot.slane %v1213_v35, 4  ;;  %v1221_v45 = vrot.slane %v1219_v38, 5  ;;  %v1230_v16 = vor.u32 %v1229_v28, %v1226_v27  ;;  %v3230_v14 = vld [vmem:[%s3161_s29 + $0x24] sm:$0xf] }
  0xa4   : > { %v1462_v46 = vsel %vm3197_vm14, %v2373_v39, %v1461_v40  ;;  %v1463_v47 = vrot.slane %v1461_v40, 4  ;;  %v1206_v48 = vor.u32 %v1205_v41, %v1202_v37  ;;  %v1235_v50 = vrot.slane %v1233_v19, 5  ;;  %v3248_v35 = vld [vmem:[%s3161_s29 + $0x2c] sm:$0x1]  ;;  %v2713_v38 = vld [vmem:[%s3692_s3] sm:$0xff]  }
  0xa5   : > { %v1216_v49 = vor.u32 %v1215_v43, %v1211_v42  ;;  %v1243_v51 = vshll.u32 %v1114_v15, 16  ;;  %v1231_v54 = vrot.slane %v1230_v16, 4  ;;  %v2374_v55 = vrot.slane %v1112_v1, 9  ;;  %2617 = vmatprep.subr.bf16.mxu0 %v2713_v38  ;;  %2643 = vmatprep.subr.bf16.mxu1 %v2713_v38 }
  0xa6   : > { %v1465_v53 = vsel %vm3197_vm14, %v1463_v47, %v1464_v44  ;;  %v1468_v56 = vrot.slane %v1113_v52, 5  ;;  %v1207_v57 = vrot.slane %v1206_v48, 4  ;;  %v1240_v61 = vor.u32 %v1239_v31, %v1235_v50  ;;  %v2714_v47 = vld [vmem:[%s3692_s3 + $0x8] sm:$0xff]   ;;  %2618 = vmatpush3.bf16.msra.mxu0 %v2713_v38  ;;  %2648 = vmatpush3.bf16.msra.mxu1 %v2713_v38 }
  0xa7   : > { %v1217_v59 = vrot.slane %v1216_v49, 4  ;;  %v2381_v60 = vcombine.low %v1462_v46, %v1465_v53  ;;  %v1236_v62 = vsel %vm3208_vm15, %v1231_v54, %v1235_v50  ;;  %v1245_v63 = vrot.slane %v1243_v51, 5  ;;  %v3266_v46 = vld [vmem:[%s3161_s29 + $0x34] sm:$0xf]  ;;  %v3282_v54 = vld [vmem:[%s3161_s29 + $0x38] sm:$0x1]  ;;  %2619 = vmatprep.subr.bf16.mxu0 %v2714_v47  ;;  %2644 = vmatprep.subr.bf16.mxu1 %v2714_v47 }
  0xa8   : > { %v1469_v0 = vsel %vm3197_vm14, %v2374_v55, %v1468_v56  ;;  %v1470_v2 = vrot.slane %v1468_v56, 4  ;;  %v1212_v4 = vsel %vm3208_vm15, %v1207_v57, %v1211_v42  ;;  %v1241_v6 = vrot.slane %v1240_v61, 4  ;;  %v3262_v42 = vld [vmem:[%s3161_s29 + $0x30] sm:$0xf] }
  0xa9   : > { %v1222_v5 = vsel %vm3208_vm15, %v1217_v59, %v1221_v45  ;;  %1539 = vrot.lane.b32.xlu1 %v2381_v60, %s2760_s30  ;;  %v1471_v7 = vrot.slane %v1114_v15, 5  ;;  %v1250_v9 = vrot.slane %v1248_v23, 4  ;;  %v1253_v10 = vrot.slane %v1251_v24, 5  ;;  %v3236_v24 = vld [vmem:[%s3161_s29 + $0x28] sm:$0xf] }
  0xaa   : > { %v2365_v8 = vcombine.low %v1212_v4, %v1222_v5  ;;  %v1257_v11 = vshll.u32 %v3169_v20, 16  ;;  %v1246_v12 = vsel %vm3208_vm15, %v1241_v6, %v1245_v63  ;;  %v1263_v52 = vrot.slane %v1261_v25, 4  ;;  %2620 = vmatpush3.bf16.msra.mxu0 %v2714_v47  ;;  %2649 = vmatpush3.bf16.msra.mxu1 %v2714_v47 }
  0xab   : > { %v1472_v1 = vsel %vm3197_vm14, %v1470_v2, %v1471_v7  ;;  %v1267_v13 = vshll.u32 %v1117_v3, 16  ;;  %v2366_v17 = vcombine.low %v1236_v62, %v1246_v12  ;;  %v1254_v21 = vor.u32 %v1253_v10, %v1250_v9 }
  0xac   : > { %1415 = vrot.lane.b32.xlu0 %v2365_v8, %s2761_s6  ;;  %v3233_v19 = vcombine.low %v1469_v0, %v1472_v1  ;;  %v1259_v23 = vrot.slane %v1257_v11, 5  ;;  %v2375_v28 = vrot.slane %v3166_v58, 9  ;;  %v1475_v30 = vrot.slane %v3169_v20, 5  ;;  %v2715_v0 = vld [vmem:[%s3692_s3 + $0x10] sm:$0xff]   ;;  %v3310_v1 = vld [vmem:[%s3161_s29 + $0x3c] sm:$0xf] }
  0xad   : > { %v1269_v27 = vrot.slane %v1267_v13, 5  ;;  %v1478_v25 = vrot.slane %v1117_v3, 5  ;;  %v1255_v31 = vrot.slane %v1254_v21, 4  ;;  %v3244_v33 = vcombine.low %v3230_v14, %v3236_v24  ;;  %2621 = vmatprep.subr.bf16.mxu0 %v2715_v0  ;;  %2645 = vmatprep.subr.bf16.mxu1 %v2715_v0  ;;  %v2716_v21 = vld [vmem:[%s3692_s3 + $0x18] sm:$0xff]  }
  0xae   : > { %1541 = vrot.lane.b32.xlu1 %v3233_v19, %s2760_s30  ;;  %v1264_v32 = vor.u32 %v1263_v52, %v1259_v23  ;;  %v1272_v34 = vshrl.u32 %v3230_v14, 16  ;;  %v1477_v37 = vrot.slane %v1475_v30, 4  ;;  %v1275_v58 = vshll.u32 %v3230_v14, 16  ;;  %2622 = vmatpush3.bf16.msra.mxu0 %v2715_v0 }
  0xaf   : > { %v1285_v20 = vshrl.u32 %v3236_v24, 16  ;;  %v1260_v39 = vsel %vm3208_vm15, %v1255_v31, %v1259_v23  ;;  %1191 = vst.msk [vmem:[#allocation3 + $0x18] sm:$0xff] %vm1187_vm9, %v3244_v33  ;;  %v1281_v41 = vshll.u32 %v3236_v24, 16  ;;  %v1291_v45 = vshll.u32 %v3248_v35, 16  ;;  %2650 = vmatpush3.bf16.msra.mxu1 %v2715_v0  ;;  %2623 = vmatprep.subr.bf16.mxu0 %v2716_v21 }
  0xb0   : > { %1417 = vrot.lane.b32.xlu0 %v2366_v17, %s2761_s6  ;;  %v1265_v40 = vrot.slane %v1264_v32, 4  ;;  %v1274_v15 = vrot.slane %v1272_v34, 4  ;;  %v1277_v43 = vrot.slane %v1275_v58, 5  ;;  %v1476_v48 = vsel %vm3197_vm14, %v2375_v28, %v1475_v30  ;;  %2646 = vmatprep.subr.bf16.mxu1 %v2716_v21 }
  0xb1   : > { %v1287_v44 = vrot.slane %v1285_v20, 4  ;;  %v1479_v49 = vsel %vm3197_vm14, %v1477_v37, %v1478_v25  ;;  %v3277_v50 = vrot.slane %v1281_v41, 5  ;;  %v1482_v56 = vrot.slane %v3236_v24, 5 }
  0xb2   : > { %v1270_v16 = vsel %vm3208_vm15, %v1265_v40, %v1269_v27  ;;  %v1278_v53 = vor.u32 %v1277_v43, %v1274_v15  ;;  %v3289_v57 = vcombine.low %v3262_v42, %v3266_v46  ;;  %v1296_v59 = vshrl.u32 %v3262_v42, 16  ;;  %v1127_v40 = vld [vmem:[%s3161_s29 + $0x48] sm:$0xf]  ;;  %2624 = vmatpush3.bf16.msra.mxu0 %v2716_v21 }
  0xb3   : > { %v3279_v51 = vcombine.low %v1260_v39, %v1270_v16  ;;  %v1288_v55 = vor.u32 %v1287_v44, %v3277_v50  ;;  %v3294_v60 = vcombine.low %v1476_v48, %v1479_v49  ;;  %v1293_v62 = vrot.slane %v1291_v45, 5  ;;  %v3349_v39 = vld [vmem:[%s3161_s29 + $0x44] sm:$0x1]  ;;  %2651 = vmatpush3.bf16.msra.mxu1 %v2716_v21  ;;  %v1128_v44 = vld [vmem:[%s3161_s29 + $0x4c] sm:$0xf] }
  0xb4   : > { %1637 = vrot.lane.b32.xlu0 %v2366_v17, %s2762_s12  ;;  %v1279_v61 = vrot.slane %v1278_v53, 4  ;;  %v1299_v63 = vshll.u32 %v3262_v42, 16  ;;  %v1309_v3 = vshrl.u32 %v3266_v46, 16  ;;  %1192 = vst.msk [vmem:[#allocation3 + $0x20] sm:$0xff] %vm1187_vm9, %v3289_v57  ;;  %v1298_v4 = vrot.slane %v1296_v59, 4 }
  0xb5   : > { %1639 = vrot.lane.b32.xlu1 %v3279_v51, %s2762_s12  ;;  %v1289_v2 = vrot.slane %v1288_v55, 4  ;;  %v1305_v5 = vshll.u32 %v3266_v46, 16  ;;  %v2376_v6 = vrot.slane %v3230_v14, 9  ;;  %v1315_v8 = vshll.u32 %v3282_v54, 16 }
  0xb6   : > { %v1301_v7 = vrot.slane %v1299_v63, 5  ;;  %v1484_v9 = vrot.slane %v1482_v56, 4  ;;  %v1485_v10 = vrot.slane %v3248_v35, 5  ;;  %v1311_v12 = vrot.slane %v1309_v3, 4 }
  0xb7   : > { %v1307_v11 = vrot.slane %v1305_v5, 5  ;;  %v1284_v52 = vsel %vm3208_vm15, %v1279_v61, %v3277_v50  ;;  %v1294_v13 = vsel %vm3208_vm15, %v1289_v2, %v1293_v62  ;;  %v1317_v17 = vrot.slane %v1315_v8, 5 }
  0xb8   : > { %1681 = vrot.lane.b32.xlu0 %v3233_v19, %s2763_s15  ;;  %v1302_v14 = vor.u32 %v1301_v7, %v1298_v4  ;;  %v3320_v19 = vld [vmem:[%s3161_s29 + $0x40] sm:$0xf]  ;;  %v2377_v24 = vrot.slane %v3262_v42, 9  ;;  %v1489_v27 = vrot.slane %v3266_v46, 5  ;;  %v1492_v25 = vrot.slane %v3282_v54, 5 }
  0xb9   : > { %1683 = vrot.lane.b32.xlu1 %v3294_v60, %s2763_s15  ;;  %v1312_v23 = vor.u32 %v1311_v12, %v1307_v11  ;;  %v3329_v28 = vcombine.low %v3310_v1, %v3320_v19  ;;  %v1320_v31 = vshrl.u32 %v3310_v1, 16  ;;  %v1323_v32 = vshll.u32 %v3310_v1, 16  ;;  %v1129_v54 = vld [vmem:[%s3161_s29 + $0x50] sm:$0x1] }
  0xba   : > { %v1303_v30 = vrot.slane %v1302_v14, 4  ;;  %v1491_v35 = vrot.slane %v1489_v27, 4  ;;  %v1333_v37 = vshrl.u32 %v3320_v19, 16  ;;  %v1329_v58 = vshll.u32 %v3320_v19, 16 }
  0xbb   : > { %v1313_v34 = vrot.slane %v1312_v23, 4  ;;  %1193 = vst.msk [vmem:[#allocation3 + $0x28] sm:$0xff] %vm1187_vm9, %v3329_v28  ;;  %v3342_v20 = vcombine.low %v1284_v52, %v1294_v13  ;;  %v1483_v38 = vsel %vm3197_vm14, %v2376_v6, %v1482_v56  ;;  %v1490_v42 = vsel %vm3197_vm14, %v2377_v24, %v1489_v27  ;;  %v1130_v6 = vld [vmem:[%s3161_s29 + $0x54] sm:$0xf]  ;;  %v1132_v27 = vld [vmem:[%s3161_s29 + $0x5c] sm:$0x1] }
  0xbc   : > { %1719 = vrot.lane.b32.xlu0 %v3173_v22, %s2764_s19  ;;  %v1486_v22 = vsel %vm3197_vm14, %v1484_v9, %v1485_v10  ;;  %v1308_v15 = vsel %vm3208_vm15, %v1303_v30, %v1307_v11  ;;  %v3358_v43 = vrot.slane %v1320_v31, 4  ;;  %v1493_v45 = vsel %vm3197_vm14, %v1491_v35, %v1492_v25  ;;  %v1131_v11 = vld [vmem:[%s3161_s29 + $0x58] sm:$0xf] }
  0xbd   : > { %1721 = vrot.lane.b32.xlu1 %v3244_v33, %s2764_s19  ;;  %v1318_v41 = vsel %vm3208_vm15, %v1313_v34, %v1317_v17  ;;  %v1325_v46 = vrot.slane %v1323_v32, 5  ;;  %v3365_v47 = vrot.slane %v1329_v58, 5  ;;  %v3367_v16 = vrot.slane %v1333_v37, 4 }
  0xbe   : > { %v1339_v48 = vshll.u32 %v3349_v39, 16  ;;  %v3372_v49 = vcombine.low %v1127_v40, %v1128_v44  ;;  %v1344_v50 = vshrl.u32 %v1127_v40, 16  ;;  %v1347_v53 = vshll.u32 %v1127_v40, 16 }
  0xbf   : > { %v3375_v55 = vcombine.low %v1483_v38, %v1486_v22  ;;  %v3377_v56 = vcombine.low %v1308_v15, %v1318_v41  ;;  %v1357_v59 = vshrl.u32 %v1128_v44, 16  ;;  %v3379_v61 = vcombine.low %v1490_v42, %v1493_v45  ;;  %v3411_v15 = vld [vmem:[%s3161_s29 + $0x60] sm:$0xf] }
  0xc0   : > { %1779 = vrot.lane.b32.xlu0 %v3279_v51, %s2765_s25  ;;  %1194 = vst.msk [vmem:[#allocation3 + $0x30] sm:$0xff] %vm1187_vm9, %v3372_v49  ;;  %v1346_v62 = vrot.slane %v1344_v50, 4  ;;  %v1349_v63 = vrot.slane %v1347_v53, 5  ;;  %v1353_v0 = vshll.u32 %v1128_v44, 16  ;;  %v1326_v2 = vor.u32 %v1325_v46, %v3358_v43  ;;  %v3424_v53 = vld [vmem:[%s3161_s29 + $0x64] sm:$0xf] }
  0xc1   : > { %1781 = vrot.lane.b32.xlu1 %v3342_v20, %s2765_s25  ;;  %v1336_v3 = vor.u32 %v3367_v16, %v3365_v47  ;;  %v1359_v4 = vrot.slane %v1357_v59, 4  ;;  %v1363_v5 = vshll.u32 %v1129_v54, 16  ;;  %v3391_v7 = vrot.slane %v1339_v48, 5 }
  0xc2   : > { %v1496_v8 = vrot.slane %v3320_v19, 5  ;;  %v1350_v9 = vor.u32 %v1349_v63, %v1346_v62  ;;  %v1355_v10 = vrot.slane %v1353_v0, 5  ;;  %v2379_v52 = vrot.slane %v1127_v40, 9  ;;  %v1135_v0 = vld [vmem:[%s3161_s29 + $0x68] sm:$0x1] }
  0xc3   : > { %v1365_v12 = vrot.slane %v1363_v5, 5  ;;  %v1503_v13 = vrot.slane %v1128_v44, 5  ;;  %v1506_v14 = vrot.slane %v1129_v54, 5  ;;  %v3395_v23 = vcombine.low %v1130_v6, %v1131_v11 }
  0xc4   : > { %1823 = vrot.lane.b32.xlu0 %v3294_v60, %s2766_s26  ;;  %v1351_v17 = vrot.slane %v1350_v9, 4  ;;  %v1360_v21 = vor.u32 %v1359_v4, %v1355_v10  ;;  %v1368_v24 = vshrl.u32 %v1130_v6, 16  ;;  %v1371_v25 = vshll.u32 %v1130_v6, 16 }
  0xc5   : > { %1419 = vrot.lane.b32.xlu1 %v3279_v51, %s2761_s6  ;;  %v1504_v51 = vsel %vm3197_vm14, %v2379_v52, %v1503_v13  ;;  %v1505_v30 = vrot.slane %v1503_v13, 4  ;;  %v1381_v31 = vshrl.u32 %v1131_v11, 16  ;;  %1195 = vst.msk [vmem:[#allocation3 + $0x38] sm:$0xff] %vm1187_vm9, %v3395_v23  ;;  %v1377_v37 = vshll.u32 %v1131_v11, 16 }
  0xc6   : > { %v1356_v32 = vsel %vm3208_vm15, %v1351_v17, %v1355_v10  ;;  %v1361_v34 = vrot.slane %v1360_v21, 4  ;;  %v1370_v35 = vrot.slane %v1368_v24, 4  ;;  %v1373_v38 = vrot.slane %v1371_v25, 5 }
  0xc7   : > { %v1507_v58 = vsel %vm3197_vm14, %v1505_v30, %v1506_v14  ;;  %v1383_v22 = vrot.slane %v1381_v31, 4  ;;  %v1387_v40 = vshll.u32 %v1132_v27, 16  ;;  %v1379_v43 = vrot.slane %v1377_v37, 5 }
  0xc8   : > { %1825 = vrot.lane.b32.xlu0 %v3375_v55, %s2766_s26  ;;  %v1366_v41 = vsel %vm3208_vm15, %v1361_v34, %v1365_v12  ;;  %v3415_v42 = vcombine.low %v1504_v51, %v1507_v58  ;;  %v2380_v44 = vrot.slane %v1130_v6, 9  ;;  %v3419_v45 = vrot.slane %v1326_v2, 4  ;;  %v3448_v51 = vld [vmem:[%s3161_s29 + $0x6c] sm:$0xf] }
  0xc9   : > { %1421 = vrot.lane.b32.xlu1 %v3342_v20, %s2761_s6  ;;  %v3421_v46 = vcombine.low %v1356_v32, %v1366_v41  ;;  %v1374_v48 = vor.u32 %v1373_v38, %v1370_v35  ;;  %v1510_v50 = vrot.slane %v1131_v11, 5  ;;  %v1384_v54 = vor.u32 %v1383_v22, %v1379_v43 }
  0xca   : > { %v1389_v59 = vrot.slane %v1387_v40, 5  ;;  %v1513_v62 = vrot.slane %v1132_v27, 5  ;;  %v1611_v63 = vshrl.u32 %v3411_v15, 16  ;;  %v1614_v5 = vshll.u32 %v3411_v15, 16 }
  0xcb   : > { %v1375_v4 = vrot.slane %v1374_v48, 4  ;;  %v1512_v2 = vrot.slane %v1510_v50, 4  ;;  %v1385_v6 = vrot.slane %v1384_v54, 4  ;;  %v1624_v9 = vshrl.u32 %v3424_v53, 16 }
  0xcc   : > { %1543 = vrot.lane.b32.xlu0 %v3294_v60, %s2760_s30  ;;  %v1511_v60 = vsel %vm3197_vm14, %v2380_v44, %v1510_v50  ;;  %v1613_v10 = vrot.slane %v1611_v63, 4  ;;  %v1620_v11 = vshll.u32 %v3424_v53, 16  ;;  %v1616_v13 = vrot.slane %v1614_v5, 5  ;;  %v1138_v44 = vld [vmem:[%s3161_s29 + $0x74] sm:$0x1] }
  0xcd   : > { %1545 = vrot.lane.b32.xlu1 %v3375_v55, %s2760_s30  ;;  %v1380_v12 = vsel %vm3208_vm15, %v1375_v4, %v1379_v43  ;;  %v1514_v52 = vsel %vm3197_vm14, %v1512_v2, %v1513_v62  ;;  %v1630_v14 = vshll.u32 %v1135_v0, 16  ;;  %v1390_v17 = vsel %vm3208_vm15, %v1385_v6, %v1389_v59 }
  0xce   : > { %v3445_v21 = vcombine.low %v1511_v60, %v1514_v52  ;;  %v1622_v24 = vrot.slane %v1620_v11, 5  ;;  %v1626_v27 = vrot.slane %v1624_v9, 4  ;;  %v1337_v30 = vrot.slane %v1336_v3, 4 }
  0xcf   : > { %v3456_v25 = vcombine.low %v1380_v12, %v1390_v17  ;;  %v1617_v31 = vor.u32 %v1616_v13, %v1613_v10  ;;  %v2391_v32 = vrot.slane %v3411_v15, 9  ;;  %v1632_v35 = vrot.slane %v1630_v14, 5 }
  0xd0   : > { %1581 = vrot.lane.b32.xlu0 %v3244_v33, %s2759_s18  ;;  %v3451_v33 = vld [vmem:[%s3161_s29 + $0x70] sm:$0xf]  ;;  %v1627_v34 = vor.u32 %v1626_v27, %v1622_v24  ;;  %v1673_v37 = vrot.slane %v3424_v53, 5  ;;  %v1676_v58 = vrot.slane %v1135_v0, 5  ;;  %v1753_v22 = vshrl.u32 %v3448_v51, 16 }
  0xd1   : > { %1583 = vrot.lane.b32.xlu1 %v3289_v57, %s2759_s18  ;;  %v1618_v38 = vrot.slane %v1617_v31, 4  ;;  %v1756_v16 = vshll.u32 %v3448_v51, 16  ;;  %v1766_v3 = vshrl.u32 %v3451_v33, 16  ;;  %v1332_v40 = vsel %vm3208_vm15, %v3419_v45, %v3365_v47 }
  0xd2   : > { %v1628_v41 = vrot.slane %v1627_v34, 4  ;;  %v1674_v43 = vsel %vm3197_vm14, %v2391_v32, %v1673_v37  ;;  %v1342_v48 = vsel %vm3208_vm15, %v1337_v30, %v3391_v7  ;;  %v2357_v54 = vcombine.low %v3178_v26, %v3184_v29 }
  0xd3   : > { %v1623_v50 = vsel %vm3208_vm15, %v1618_v38, %v1622_v24  ;;  %v1755_v59 = vrot.slane %v1753_v22, 4  ;;  %v1758_v62 = vrot.slane %v1756_v16, 5  ;;  %v1762_v63 = vshll.u32 %v3451_v33, 16 }
  0xd4   : > { %1641 = vrot.lane.b32.xlu0 %v3342_v20, %s2762_s12  ;;  %v1675_v20 = vrot.slane %v1673_v37, 4  ;;  %v1633_v47 = vsel %vm3208_vm15, %v1628_v41, %v1632_v35  ;;  %1188 = vst.msk [vmem:[#allocation3] sm:$0xff] %vm1187_vm9, %v2357_v54  ;;  %v1768_v26 = vrot.slane %v1766_v3, 4  ;;  %v1772_v29 = vshll.u32 %v1138_v44, 16 }
  0xd5   : > { %1643 = vrot.lane.b32.xlu1 %v3377_v56, %s2762_s12  ;;  %v3488_v7 = vcombine.low %v1623_v50, %v1633_v47  ;;  %v1759_v4 = vor.u32 %v1758_v62, %v1755_v59  ;;  %v1764_v60 = vrot.slane %v1762_v63, 5  ;;  %v2395_v2 = vrot.slane %v3448_v51, 9 }
  0xd6   : > { %v1677_v45 = vsel %vm3197_vm14, %v1675_v20, %v1676_v58  ;;  %v1815_v5 = vrot.slane %v3451_v33, 5  ;;  %v1774_v6 = vrot.slane %v1772_v29, 5  ;;  %v1818_v9 = vrot.slane %v1138_v44, 5 }
  0xd7   : > { %v3490_v0 = vcombine.low %v1674_v43, %v1677_v45  ;;  %v1760_v10 = vrot.slane %v1759_v4, 4  ;;  %v1769_v11 = vor.u32 %v1768_v26, %v1764_v60  ;;  %v2370_v13 = vcombine.low %v1332_v40, %v1342_v48 }
  0xd8   : > { %1685 = vrot.lane.b32.xlu0 %v3375_v55, %s2763_s15  ;;  %v2717_v55 = vld [vmem:[%s3692_s3 + $0x20] ss:$0 sps:$4 sm:$0xff]   ;;  %v3502_v12 = vsel %vm3197_vm14, %v2395_v2, %v1815_v5  ;;  %v1817_v52 = vrot.slane %v1815_v5, 4  ;;  %v2378_v14 = vrot.slane %v3310_v1, 9  ;;  %v1498_v17 = vrot.slane %v1496_v8, 4 }
  0xd9   : > { %1687 = vrot.lane.b32.xlu1 %v3379_v61, %s2763_s15  ;;  %v1499_v24 = vrot.slane %v3349_v39, 5  ;;  %v1765_v27 = vsel %vm3208_vm15, %v1760_v10, %v1764_v60  ;;  %v1770_v30 = vrot.slane %v1769_v11, 4  ;;  %2653 = vmatprep.subr.msk.bf16.mxu0 %vm1925_vm0, %v2717_v55  ;;  %v1927_v1 = vsel %vm1925_vm0, %v2717_v55, 0 }
  0xda   : > { %v3516_v31 = vsel %vm3197_vm14, %v1817_v52, %v1818_v9  ;;  %2654 = vmatprep.subr.msk.bf16.mxu1 %vm1925_vm0, %v2717_v55  ;;  %2626 = vmatpush3.bf16.msra.mxu0 %v1927_v1  ;;  %v1497_v34 = vsel %vm3197_vm14, %v2378_v14, %v1496_v8  ;;  %v2389_v36 = vcombine.low %v3411_v15, %v3424_v53  ;;  %vm1900_vm9 = vcmask 588800  }
  0xdb   : > { %v1775_v39 = vsel %vm3208_vm15, %v1770_v30, %v1774_v6  ;;  %2652 = vmatpush3.bf16.msra.mxu1 %v1927_v1  ;;  %v1500_v35 = vsel %vm3197_vm14, %v1498_v17, %v1499_v24 }
  0xdc   : > { %1723 = vrot.lane.b32.xlu0 %v3289_v57, %s2764_s19  ;;  %v2396_v57 = vcombine.low %v3502_v12, %v3516_v31  ;;  %v2394_v32 = vcombine.low %v1765_v27, %v1775_v39  ;;  %v2386_v18 = vcombine.low %v1497_v34, %v1500_v35 }
  0xdd   : > { %1725 = vrot.lane.b32.xlu1 %v3329_v28, %s2764_s19 }
  0xe0   : > { %1783 = vrot.lane.b32.xlu0 %v3377_v56, %s2765_s25 }
  0xe1   : > { %1785 = vrot.lane.b32.xlu1 %v2370_v13, %s2765_s25 }
  0xe4   : > { %1827 = vrot.lane.b32.xlu0 %v3379_v61, %s2766_s26 }
  0xe5   : > { %1423 = vrot.lane.b32.xlu1 %v3377_v56, %s2761_s6 }
  0xe8   : > { %1829 = vrot.lane.b32.xlu0 %v2386_v18, %s2766_s26 }
  0xe9   : > { %1425 = vrot.lane.b32.xlu1 %v2370_v13, %s2761_s6 }
  0xec   : > { %1547 = vrot.lane.b32.xlu0 %v3379_v61, %s2760_s30 }
  0xed   : > { %1549 = vrot.lane.b32.xlu1 %v2386_v18, %s2760_s30 }
  0xf0   : > { %1585 = vrot.lane.b32.xlu0 %v3329_v28, %s2759_s18 }
  0xf1   : > { %1587 = vrot.lane.b32.xlu1 %v3372_v49, %s2759_s18 }
  0xf4   : > { %1645 = vrot.lane.b32.xlu0 %v2370_v13, %s2762_s12 }
  0xf5   : > { %1647 = vrot.lane.b32.xlu1 %v3421_v46, %s2762_s12 }
  0xf8   : > { %1689 = vrot.lane.b32.xlu0 %v2386_v18, %s2763_s15 }
  0xf9   : > { %1691 = vrot.lane.b32.xlu1 %v3415_v42, %s2763_s15 }
  0xfc   : > { %1727 = vrot.lane.b32.xlu0 %v3372_v49, %s2764_s19  ;;  %v2393_v49 = vcombine.low %v3448_v51, %v3451_v33 }
  0xfd   : > { %1729 = vrot.lane.b32.xlu1 %v3395_v23, %s2764_s19 }
 0x100   : > { %1787 = vrot.lane.b32.xlu0 %v3421_v46, %s2765_s25 }
 0x101   : > { %1789 = vrot.lane.b32.xlu1 %v3456_v25, %s2765_s25 }
 0x104   : > { %1831 = vrot.lane.b32.xlu0 %v3415_v42, %s2766_s26 }
 0x105   : > { %1427 = vrot.lane.b32.xlu1 %v3421_v46, %s2761_s6 }
 0x108   : > { %1833 = vrot.lane.b32.xlu0 %v3445_v21, %s2766_s26 }
 0x109   : > { %1429 = vrot.lane.b32.xlu1 %v3456_v25, %s2761_s6 }
 0x10c   : > { %1551 = vrot.lane.b32.xlu0 %v3415_v42, %s2760_s30 }
 0x10d   : > { %1553 = vrot.lane.b32.xlu1 %v3445_v21, %s2760_s30 }
 0x110   : > { %1589 = vrot.lane.b32.xlu0 %v3395_v23, %s2759_s18 }
 0x111   : > { %1591 = vrot.lane.b32.xlu1 %v2389_v36, %s2759_s18  ;;  %v1578_v28 = vpop.permute.xlu0 %1577 }
 0x112   : > { %v1580_v19 = vpop.permute.xlu1 %1579 }
 0x114   : > { %1649 = vrot.lane.b32.xlu0 %v3456_v25, %s2762_s12 }
 0x115   : > { %1651 = vrot.lane.b32.xlu1 %v3488_v7, %s2762_s12 }
 0x118   : > { %1693 = vrot.lane.b32.xlu0 %v3445_v21, %s2763_s15 }
 0x119   : > { %1695 = vrot.lane.b32.xlu1 %v3490_v0, %s2763_s15 }
 0x11b   : > { %v1540_v56 = vpop.permute.xlu1 %1539 }
 0x11c   : > { %1731 = vrot.lane.b32.xlu0 %v2389_v36, %s2764_s19 }
 0x11d   : > { %1733 = vrot.lane.b32.xlu1 %v2393_v49, %s2764_s19 }
 0x11e   : > { %v1416_v61 = vpop.permute.xlu0 %1415 }
 0x11f   : > { %1440 = vst.msk [vmem:[#allocation3] sm:$0xff] %vm1439_vm1, %v1416_v61 }
 0x120   : > { %1564 = vst.msk [vmem:[#allocation3] sm:$0xff] %vm1563_vm2, %v1540_v56  ;;  %1791 = vrot.lane.b32.xlu0 %v3488_v7, %s2765_s25  ;;  %v1542_v8 = vpop.permute.xlu1 %1541 }
 0x121   : > { %1793 = vrot.lane.b32.xlu1 %v2394_v32, %s2765_s25  ;;  %1602 = vst.msk [vmem:[#allocation3] sm:$0xff] %vm1601_vm3, %v1578_v28 }
 0x122   : > { %v1418_v23 = vpop.permute.xlu0 %1417 }
 0x123   : > { %1441 = vst.msk [vmem:[#allocation3 + $0x8] sm:$0xff] %vm1439_vm1, %v1418_v23 }
 0x124   : > { %1565 = vst.msk [vmem:[#allocation3 + $0x8] sm:$0xff] %vm1563_vm2, %v1542_v8  ;;  %1835 = vrot.lane.b32.xlu0 %v3490_v0, %s2766_s26 }
 0x125   : > { %1837 = vrot.lane.b32.xlu1 %v2396_v57, %s2766_s26  ;;  %1603 = vst.msk [vmem:[#allocation3 + $0x8] sm:$0xff] %vm1601_vm3, %v1580_v19 }
 0x126   : > { %v1638_v15 = vpop.permute.xlu0 %1637 }
 0x127   : > { %1662 = vst.msk [vmem:[#allocation3] sm:$0xff] %vm1661_vm4, %v1638_v15  ;;  %v1640_v42 = vpop.permute.xlu1 %1639 }
 0x128   : > { %1663 = vst.msk [vmem:[#allocation3 + $0x8] sm:$0xff] %vm1661_vm4, %v1640_v42 }
 0x12a   : > { %v1682_v46 = vpop.permute.xlu0 %1681 }
 0x12b   : > { %1706 = vst.msk [vmem:[#allocation3] sm:$0xff] %vm1705_vm5, %v1682_v46  ;;  %v1684_v53 = vpop.permute.xlu1 %1683 }
 0x12c   : > { %1707 = vst.msk [vmem:[#allocation3 + $0x8] sm:$0xff] %vm1705_vm5, %v1684_v53 }
 0x12e   : > { %v1720_v21 = vpop.permute.xlu0 %1719 }
 0x12f   : > { %1744 = vst.msk [vmem:[#allocation3] sm:$0xff] %vm1743_vm6, %v1720_v21  ;;  %v1722_v51 = vpop.permute.xlu1 %1721 }
 0x130   : > { %1745 = vst.msk [vmem:[#allocation3 + $0x8] sm:$0xff] %vm1743_vm6, %v1722_v51 }
 0x132   : > { %v1780_v33 = vpop.permute.xlu0 %1779 }
 0x133   : > { %1804 = vst.msk [vmem:[#allocation3] sm:$0xff] %vm1803_vm7, %v1780_v33  ;;  %v1782_v25 = vpop.permute.xlu1 %1781 }
 0x134   : > { %1805 = vst.msk [vmem:[#allocation3 + $0x8] sm:$0xff] %vm1803_vm7, %v1782_v25 }
 0x136   : > { %v1824_v37 = vpop.permute.xlu0 %1823 }
 0x137   : > { %1848 = vst.msk [vmem:[#allocation3] sm:$0xff] %vm1847_vm8, %v1824_v37  ;;  %v1420_v58 = vpop.permute.xlu1 %1419 }
 0x138   : > { %1442 = vst.msk [vmem:[#allocation3 + $0x10] sm:$0xff] %vm1439_vm1, %v1420_v58 }
 0x13a   : > { %v1826_v38 = vpop.permute.xlu0 %1825 }
 0x13b   : > { %1849 = vst.msk [vmem:[#allocation3 + $0x8] sm:$0xff] %vm1847_vm8, %v1826_v38  ;;  %v1422_v22 = vpop.permute.xlu1 %1421 }
 0x13c   : > { %1443 = vst.msk [vmem:[#allocation3 + $0x18] sm:$0xff] %vm1439_vm1, %v1422_v22 }
 0x13e   : > { %v1544_v16 = vpop.permute.xlu0 %1543  ;;  %v1856_v3 = vld [vmem:[#allocation3] sm:$0xff] }
 0x13f   : > { %1566 = vst.msk [vmem:[#allocation3 + $0x10] sm:$0xff] %vm1563_vm2, %v1544_v16  ;;  %v1546_v40 = vpop.permute.xlu1 %1545  ;;  %2627 = vmatprep.mubr.msk.bf16.mxu0 %vm1900_vm9, %v1856_v3 }
 0x140   : > { %1567 = vst.msk [vmem:[#allocation3 + $0x18] sm:$0xff] %vm1563_vm2, %v1546_v40 }
 0x142   : > { %v1582_v41 = vpop.permute.xlu0 %1581  ;;  %v1857_v43 = vld [vmem:[#allocation3 + $0x8] sm:$0xff] }
 0x143   : > { %1604 = vst.msk [vmem:[#allocation3 + $0x10] sm:$0xff] %vm1601_vm3, %v1582_v41  ;;  %v1584_v20 = vpop.permute.xlu1 %1583  ;;  %2628 = vmatmul.mubr.msk.bf16.vlgmr.msra.gmra.mrb[0].mxu0 %vm1900_vm9, %v1857_v43 }
 0x144   : > { %1605 = vst.msk [vmem:[#allocation3 + $0x18] sm:$0xff] %vm1601_vm3, %v1584_v20 }
 0x146   : > { %v1642_v44 = vpop.permute.xlu0 %1641 }
 0x147   : > { %1664 = vst.msk [vmem:[#allocation3 + $0x10] sm:$0xff] %vm1661_vm4, %v1642_v44  ;;  %v1644_v48 = vpop.permute.xlu1 %1643 }
 0x148   : > { %1665 = vst.msk [vmem:[#allocation3 + $0x18] sm:$0xff] %vm1661_vm4, %v1644_v48 }
 0x14a   : > { %v1686_v50 = vpop.permute.xlu0 %1685 }
 0x14b   : > { %1708 = vst.msk [vmem:[#allocation3 + $0x10] sm:$0xff] %vm1705_vm5, %v1686_v50  ;;  %v1688_v54 = vpop.permute.xlu1 %1687 }
 0x14c   : > { %1709 = vst.msk [vmem:[#allocation3 + $0x18] sm:$0xff] %vm1705_vm5, %v1688_v54 }
 0x14e   : > { %v1724_v59 = vpop.permute.xlu0 %1723 }
 0x14f   : > { %1746 = vst.msk [vmem:[#allocation3 + $0x10] sm:$0xff] %vm1743_vm6, %v1724_v59  ;;  %v1726_v47 = vpop.permute.xlu1 %1725 }
 0x150   : > { %1747 = vst.msk [vmem:[#allocation3 + $0x18] sm:$0xff] %vm1743_vm6, %v1726_v47 }
 0x152   : > { %v1784_v45 = vpop.permute.xlu0 %1783 }
 0x153   : > { %1806 = vst.msk [vmem:[#allocation3 + $0x10] sm:$0xff] %vm1803_vm7, %v1784_v45  ;;  %v1786_v62 = vpop.permute.xlu1 %1785 }
 0x154   : > { %1807 = vst.msk [vmem:[#allocation3 + $0x18] sm:$0xff] %vm1803_vm7, %v1786_v62 }
 0x156   : > { %v1828_v63 = vpop.permute.xlu0 %1827 }
 0x157   : > { %1850 = vst.msk [vmem:[#allocation3 + $0x10] sm:$0xff] %vm1847_vm8, %v1828_v63  ;;  %v1424_v7 = vpop.permute.xlu1 %1423 }
 0x158   : > { %1444 = vst.msk [vmem:[#allocation3 + $0x20] sm:$0xff] %vm1439_vm1, %v1424_v7 }
 0x15a   : > { %v1830_v0 = vpop.permute.xlu0 %1829 }
 0x15b   : > { %1851 = vst.msk [vmem:[#allocation3 + $0x18] sm:$0xff] %vm1847_vm8, %v1830_v0  ;;  %v1426_v26 = vpop.permute.xlu1 %1425 }
 0x15c   : > { %1445 = vst.msk [vmem:[#allocation3 + $0x28] sm:$0xff] %vm1439_vm1, %v1426_v26 }
 0x15e   : > { %v1548_v29 = vpop.permute.xlu0 %1547  ;;  %v1858_v4 = vld [vmem:[#allocation3 + $0x10] sm:$0xff] }
 0x15f   : > { %1568 = vst.msk [vmem:[#allocation3 + $0x20] sm:$0xff] %vm1563_vm2, %v1548_v29  ;;  %v1550_v60 = vpop.permute.xlu1 %1549  ;;  %2631 = vmatprep.mubr.msk.bf16.mxu0 %vm1900_vm9, %v1858_v4 }
 0x160   : > { %1569 = vst.msk [vmem:[#allocation3 + $0x28] sm:$0xff] %vm1563_vm2, %v1550_v60 }
 0x162   : > { %v1586_v2 = vpop.permute.xlu0 %1585  ;;  %v1859_v5 = vld [vmem:[#allocation3 + $0x18] sm:$0xff] }
 0x163   : > { %1606 = vst.msk [vmem:[#allocation3 + $0x20] sm:$0xff] %vm1601_vm3, %v1586_v2  ;;  %v1588_v6 = vpop.permute.xlu1 %1587  ;;  %2632 = vmatmul.mubr.msk.bf16.gmra.mrb[4].mxu0 %vm1900_vm9, %v1859_v5 }
 0x164   : > { %1607 = vst.msk [vmem:[#allocation3 + $0x28] sm:$0xff] %vm1601_vm3, %v1588_v6 }
 0x166   : > { %v1646_v9 = vpop.permute.xlu0 %1645 }
 0x167   : > { %1666 = vst.msk [vmem:[#allocation3 + $0x20] sm:$0xff] %vm1661_vm4, %v1646_v9  ;;  %v1648_v55 = vpop.permute.xlu1 %1647 }
 0x168   : > { %1667 = vst.msk [vmem:[#allocation3 + $0x28] sm:$0xff] %vm1661_vm4, %v1648_v55 }
 0x16a   : > { %v1690_v10 = vpop.permute.xlu0 %1689 }
 0x16b   : > { %1710 = vst.msk [vmem:[#allocation3 + $0x20] sm:$0xff] %vm1705_vm5, %v1690_v10  ;;  %v1692_v11 = vpop.permute.xlu1 %1691 }
 0x16c   : > { %1711 = vst.msk [vmem:[#allocation3 + $0x28] sm:$0xff] %vm1705_vm5, %v1692_v11 }
 0x16e   : > { %v1728_v12 = vpop.permute.xlu0 %1727 }
 0x16f   : > { %1748 = vst.msk [vmem:[#allocation3 + $0x20] sm:$0xff] %vm1743_vm6, %v1728_v12  ;;  %v1730_v52 = vpop.permute.xlu1 %1729 }
 0x170   : > { %1749 = vst.msk [vmem:[#allocation3 + $0x28] sm:$0xff] %vm1743_vm6, %v1730_v52 }
 0x172   : > { %v1788_v13 = vpop.permute.xlu0 %1787 }
 0x173   : > { %1808 = vst.msk [vmem:[#allocation3 + $0x20] sm:$0xff] %vm1803_vm7, %v1788_v13  ;;  %v1790_v14 = vpop.permute.xlu1 %1789 }
 0x174   : > { %1809 = vst.msk [vmem:[#allocation3 + $0x28] sm:$0xff] %vm1803_vm7, %v1790_v14 }
 0x176   : > { %v1832_v17 = vpop.permute.xlu0 %1831 }
 0x177   : > { %1852 = vst.msk [vmem:[#allocation3 + $0x20] sm:$0xff] %vm1847_vm8, %v1832_v17  ;;  %v1428_v24 = vpop.permute.xlu1 %1427 }
 0x178   : > { %1446 = vst.msk [vmem:[#allocation3 + $0x30] sm:$0xff] %vm1439_vm1, %v1428_v24 }
 0x17a   : > { %v1834_v27 = vpop.permute.xlu0 %1833 }
 0x17b   : > { %1853 = vst.msk [vmem:[#allocation3 + $0x28] sm:$0xff] %vm1847_vm8, %v1834_v27  ;;  %v1430_v30 = vpop.permute.xlu1 %1429 }
 0x17c   : > { %1447 = vst.msk [vmem:[#allocation3 + $0x38] sm:$0xff] %vm1439_vm1, %v1430_v30 }
 0x17e   : > { %v1552_v31 = vpop.permute.xlu0 %1551  ;;  %v1860_v57 = vld [vmem:[#allocation3 + $0x20] sm:$0xff] }
 0x17f   : > { %1570 = vst.msk [vmem:[#allocation3 + $0x30] sm:$0xff] %vm1563_vm2, %v1552_v31  ;;  %v1554_v1 = vpop.permute.xlu1 %1553  ;;  %2635 = vmatprep.mubr.msk.bf16.mxu1 %vm1900_vm9, %v1860_v57 }
 0x180   : > { %1571 = vst.msk [vmem:[#allocation3 + $0x38] sm:$0xff] %vm1563_vm2, %v1554_v1 }
 0x182   : > { %v1590_v39 = vpop.permute.xlu0 %1589  ;;  %v1861_v32 = vld [vmem:[#allocation3 + $0x28] sm:$0xff] }
 0x183   : > { %1608 = vst.msk [vmem:[#allocation3 + $0x30] sm:$0xff] %vm1601_vm3, %v1590_v39  ;;  %v1592_v34 = vpop.permute.xlu1 %1591  ;;  %2636 = vmatmul.mubr.msk.bf16.vlgmr.msra.gmra.mrb[0].mxu1 %vm1900_vm9, %v1861_v32 }
 0x184   : > { %1609 = vst.msk [vmem:[#allocation3 + $0x38] sm:$0xff] %vm1601_vm3, %v1592_v34 }
 0x186   : > { %v1650_v35 = vpop.permute.xlu0 %1649 }
 0x187   : > { %1668 = vst.msk [vmem:[#allocation3 + $0x30] sm:$0xff] %vm1661_vm4, %v1650_v35  ;;  %v1652_v18 = vpop.permute.xlu1 %1651 }
 0x188   : > { %1669 = vst.msk [vmem:[#allocation3 + $0x38] sm:$0xff] %vm1661_vm4, %v1652_v18 }
 0x18a   : > { %v1694_v36 = vpop.permute.xlu0 %1693 }
 0x18b   : > { %1712 = vst.msk [vmem:[#allocation3 + $0x30] sm:$0xff] %vm1705_vm5, %v1694_v36  ;;  %v1696_v19 = vpop.permute.xlu1 %1695 }
 0x18c   : > { %1713 = vst.msk [vmem:[#allocation3 + $0x38] sm:$0xff] %vm1705_vm5, %v1696_v19 }
 0x18e   : > { %v1732_v28 = vpop.permute.xlu0 %1731 }
 0x18f   : > { %1750 = vst.msk [vmem:[#allocation3 + $0x30] sm:$0xff] %vm1743_vm6, %v1732_v28  ;;  %v1734_v49 = vpop.permute.xlu1 %1733 }
 0x190   : > { %1751 = vst.msk [vmem:[#allocation3 + $0x38] sm:$0xff] %vm1743_vm6, %v1734_v49 }
 0x192   : > { %v1792_v56 = vpop.permute.xlu0 %1791 }
 0x193   : > { %1810 = vst.msk [vmem:[#allocation3 + $0x30] sm:$0xff] %vm1803_vm7, %v1792_v56  ;;  %v1794_v61 = vpop.permute.xlu1 %1793 }
 0x194   : > { %1811 = vst.msk [vmem:[#allocation3 + $0x38] sm:$0xff] %vm1803_vm7, %v1794_v61 }
 0x196   : > { %v1836_v8 = vpop.permute.xlu0 %1835 }
 0x197   : > { %1854 = vst.msk [vmem:[#allocation3 + $0x30] sm:$0xff] %vm1847_vm8, %v1836_v8  ;;  %v1838_v23 = vpop.permute.xlu1 %1837 }
 0x198   : > { %1855 = vst.msk [vmem:[#allocation3 + $0x38] sm:$0xff] %vm1847_vm8, %v1838_v23 }
 0x19e   : > { %v1862_v15 = vld [vmem:[#allocation3 + $0x30] sm:$0xff] }
 0x19f   : > { %2639 = vmatprep.mubr.msk.bf16.mxu1 %vm1900_vm9, %v1862_v15  ;;  %v1863_v42 = vld [vmem:[#allocation3 + $0x38] sm:$0xff] }
 0x1a0   : > { %2640 = vmatmul.mubr.msk.bf16.gmra.mrb[4].mxu1 %vm1900_vm9, %v1863_v42 }
 0x216   : > { %v2629_v46 = vpop.f32.mrb[0].mxu0 }
 0x217   : > { %v1963_v53 = vpop.f32.mrb[1].mxu0  ;;  %v2049_v22 = vmul.f32 %v2629_v46, %v2629_v46 }
 0x218   : > { %v2630_v21 = vpop.f32.mrb[2].mxu0  ;;  %v2047_v25 = vmul.f32 %v1963_v53, %v1963_v53 }
 0x219   : > { %v2550_v51 = vpack.c.bf16 %v2630_v21, %v2629_v46  ;;  %v1966_v33 = vpop.f32.mrb[3].mxu0  ;;  %v2050_v40 = vmul.f32 %v2630_v21, %v2630_v21 }
 0x21a   : > { %v2026_v37 = vadd.f32 %v1966_v33, %v1963_v53  ;;  %v2048_v58 = vmul.f32 %v1966_v33, %v1966_v33  ;;  %v2545_v38 = vpack.c.bf16 %v1966_v33, %v1963_v53 }
 0x21b   : > { %2597 = vst [vmem:[%s2839_s11 + $0x8] sm:$0xff] %v2550_v51  }
 0x21c   : > { %v2027_v16 = vadd.f32 %v2629_v46, %v2026_v37  ;;  %v2063_v3 = vadd.f32 %v2048_v58, %v2047_v25  ;;  %2546 = vst [vmem:[%s2839_s11] sm:$0xff] %v2545_v38  }
 0x21e   : > { %v2064_v41 = vadd.f32 %v2063_v3, %v2049_v22  ;;  %v2028_v43 = vadd.f32 %v2630_v21, %v2027_v16 }
 0x220   : > { %v2065_v20 = vadd.f32 %v2064_v41, %v2050_v40 }
 0x236   : > { %v2633_v44 = vpop.f32.mrb[4].mxu0 }
 0x237   : > { %v1979_v48 = vpop.f32.mrb[5].mxu0  ;;  %v2053_v26 = vmul.f32 %v2633_v44, %v2633_v44 }
 0x238   : > { %v2029_v50 = vadd.f32 %v2028_v43, %v1979_v48  ;;  %v2051_v54 = vmul.f32 %v1979_v48, %v1979_v48  ;;  %v2634_v59 = vpop.f32.mrb[6].mxu0 }
 0x239   : > { %v2560_v47 = vpack.c.bf16 %v2634_v59, %v2633_v44  ;;  %v1982_v45 = vpop.f32.mrb[7].mxu0  ;;  %v2054_v60 = vmul.f32 %v2634_v59, %v2634_v59 }
 0x23a   : > { %v2066_v62 = vadd.f32 %v2065_v20, %v2051_v54  ;;  %v2030_v63 = vadd.f32 %v2029_v50, %v1982_v45  ;;  %v2052_v7 = vmul.f32 %v1982_v45, %v1982_v45  ;;  %v2555_v0 = vpack.c.bf16 %v1982_v45, %v1979_v48 }
 0x23b   : > { %2599 = vst [vmem:[%s2839_s11 + $0x18] sm:$0xff] %v2560_v47  }
 0x23c   : > { %v2031_v29 = vadd.f32 %v2633_v44, %v2030_v63  ;;  %v2067_v4 = vadd.f32 %v2066_v62, %v2052_v7  ;;  %2598 = vst [vmem:[%s2839_s11 + $0x10] sm:$0xff] %v2555_v0  }
 0x23e   : > { %v2068_v2 = vadd.f32 %v2067_v4, %v2053_v26  ;;  %v2032_v5 = vadd.f32 %v2634_v59, %v2031_v29 }
 0x240   : > { %v2069_v6 = vadd.f32 %v2068_v2, %v2054_v60 }
 0x256   : > { %v2637_v9 = vpop.f32.mrb[0].mxu1 }
 0x257   : > { %v1995_v55 = vpop.f32.mrb[1].mxu1  ;;  %v2057_v30 = vmul.f32 %v2637_v9, %v2637_v9 }
 0x258   : > { %v2033_v10 = vadd.f32 %v2032_v5, %v1995_v55  ;;  %v2055_v11 = vmul.f32 %v1995_v55, %v1995_v55  ;;  %v2638_v12 = vpop.f32.mrb[2].mxu1 }
 0x259   : > { %v2570_v52 = vpack.c.bf16 %v2638_v12, %v2637_v9  ;;  %v1998_v13 = vpop.f32.mrb[3].mxu1  ;;  %v2058_v1 = vmul.f32 %v2638_v12, %v2638_v12 }
 0x25a   : > { %v2070_v14 = vadd.f32 %v2069_v6, %v2055_v11  ;;  %v2034_v17 = vadd.f32 %v2033_v10, %v1998_v13  ;;  %v2056_v24 = vmul.f32 %v1998_v13, %v1998_v13  ;;  %v2565_v27 = vpack.c.bf16 %v1998_v13, %v1995_v55 }
 0x25b   : > { %2601 = vst [vmem:[%s2839_s11 + $0x28] sm:$0xff] %v2570_v52  }
 0x25c   : > { %v2035_v31 = vadd.f32 %v2637_v9, %v2034_v17  ;;  %v2071_v57 = vadd.f32 %v2070_v14, %v2056_v24  ;;  %2600 = vst [vmem:[%s2839_s11 + $0x20] sm:$0xff] %v2565_v27  }
 0x25e   : > { %v2072_v39 = vadd.f32 %v2071_v57, %v2057_v30  ;;  %v2036_v32 = vadd.f32 %v2638_v12, %v2035_v31 }
 0x260   : > { %v2073_v34 = vadd.f32 %v2072_v39, %v2058_v1 }
 0x273   : > { %v2641_v35 = vpop.f32.mrb[4].mxu1 }
 0x274   : > { %v2011_v18 = vpop.f32.mrb[5].mxu1  ;;  %v2061_v42 = vmul.f32 %v2641_v35, %v2641_v35 }
 0x275   : > { %v2037_v36 = vadd.f32 %v2036_v32, %v2011_v18  ;;  %v2059_v19 = vmul.f32 %v2011_v18, %v2011_v18  ;;  %v2642_v28 = vpop.f32.mrb[6].mxu1 }
 0x276   : > { %v2580_v49 = vpack.c.bf16 %v2642_v28, %v2641_v35  ;;  %v2014_v56 = vpop.f32.mrb[7].mxu1  ;;  %v2062_v21 = vmul.f32 %v2642_v28, %v2642_v28 }
 0x277   : > { %v2074_v61 = vadd.f32 %v2073_v34, %v2059_v19  ;;  %v2038_v8 = vadd.f32 %v2037_v36, %v2014_v56  ;;  %v2060_v23 = vmul.f32 %v2014_v56, %v2014_v56  ;;  %v2575_v15 = vpack.c.bf16 %v2014_v56, %v2011_v18 }
 0x278   : > { %2603 = vst [vmem:[%s2839_s11 + $0x38] sm:$0xff] %v2580_v49  }
 0x279   : > { %v2039_v46 = vadd.f32 %v2641_v35, %v2038_v8  ;;  %v2075_v53 = vadd.f32 %v2074_v61, %v2060_v23  ;;  %2602 = vst [vmem:[%s2839_s11 + $0x30] sm:$0xff] %v2575_v15  }
 0x27b   : > { %v2040_v51 = vadd.f32 %v2642_v28, %v2039_v46  ;;  %v2076_v33 = vadd.f32 %v2075_v53, %v2061_v42 }
 0x27d   : > { %v2041_v25 = vrot.slane %v2040_v51, 4  ;;  %v2077_v37 = vadd.f32 %v2076_v33, %v2062_v21 }
 0x27f   : > { %v2042_v58 = vadd.f32 %v2041_v25, %v2040_v51  ;;  %v2078_v38 = vrot.slane %v2077_v37, 4 }
 0x281   : > { %v2043_v22 = vrot.slane %v2042_v58, 2  ;;  %v2079_v16 = vadd.f32 %v2078_v38, %v2077_v37 }
 0x283   : > { %v2044_v3 = vadd.f32 %v2043_v22, %v2042_v58  ;;  %v2080_v40 = vrot.slane %v2079_v16, 2 }
 0x285   : > { %v2045_v41 = vrot.slane %v2044_v3, 1  ;;  %v2081_v43 = vadd.f32 %v2080_v40, %v2079_v16 }
 0x287   : > { %v2082_v20 = vrot.slane %v2081_v43, 1  ;;  %v2046_v44 = vadd.f32 %v2045_v41, %v2044_v3 }
 0x289   : > { %v2083_v48 = vadd.f32 %v2082_v20, %v2081_v43 }
 0x28b   : > { %v2085_v50 = vsel %vm2084_vm10, %v2046_v44, %v2083_v48 }
 0x28c   : > { %2086 = vst [vmem:[%s2845_s24] sm:$0x3] %v2085_v50 }
 0x28d PF: > { %s16_s22 = sadd.s32 1, %s2756_s22   ;;  %s3708_s11 = sld [smem:[#allocation4_spill]] }
 0x28e   : > { %p13_p9 = scmp.ge.s32.totalorder %s16_s22, 6   ;;  %s3709_s18 = smov %s2748_s20 }
 0x28f   : > { %s3710_s19 = smov %s2752_s21  ;;  %s3711_s20 = smov %s3714_s23 }
 0x290   :  { %15 = sbr.rel (!%p13_p9) target bundleno = 3 (0x3), region = 85 }
 0x293   : > { %s3712_s21 = smov %s3708_s11 }

</bundles_post_ra>
